<compile_context>
chip_gen: v5e
topology: v5e:2x2
jax: 0.10.0
libtpu: 0.0.40
codegen_flags: <defaults>
</compile_context>

<pallas_src>
import functools
import math

import jax
import jax.numpy as jnp
from jax import lax
from jax.experimental import pallas as pl
from jax.experimental.pallas import tpu as pltpu


# ---------------------------------------------------------------------------
# In-kernel helpers (traced inside the Pallas body).
# ---------------------------------------------------------------------------
def _layer_norm(x, w, b, eps=1e-5):
    # PyTorch LayerNorm over the last dim (biased variance), stats in f32.
    x = x.astype(jnp.float32)
    mu = jnp.mean(x, axis=-1, keepdims=True)
    xc = x - mu
    var = jnp.mean(xc * xc, axis=-1, keepdims=True)
    return xc * lax.rsqrt(var + eps) * w + b


def _attn(q, kv_ref, w_out, b_out, head_ref, heads, head_dim):
    """Multi-head attention core for one query tile.

    q:        (tq, D)  pre-scaled query projection (scale folded into W_q on host)
    kv_ref:   VMEM ref, (Lkv, 2D) fused K|V projection (K in lanes [:D], V in [D:])
    w_out:    (D, D) == out_proj.weight.T ; b_out: (1, D)
    head_ref: VMEM scratch (tq, D); per-head outputs land in their lane slice and a
              single full-D out-projection matmul follows (full MXU fill).
    """
    D = heads * head_dim
    for h in range(heads):  # static unroll over heads
        sl = slice(h * head_dim, (h + 1) * head_dim)
        qh = q[:, sl]
        kh = kv_ref[:, sl]                                   # ref slice: K head h
        vh = kv_ref[:, D + h * head_dim:D + (h + 1) * head_dim]  # ref slice: V head h
        # (tq, dh) x (Lkv, dh) contracting last dims -> (tq, Lkv); no explicit k.T.
        s = lax.dot_general(qh, kh, (((1,), (1,)), ((), ())),
                            preferred_element_type=jnp.float32)
        s = s - jnp.max(s, axis=-1, keepdims=True)
        p = jnp.exp(s)
        # Exact reciprocal (only tq values per head): keeps f32-level parity with
        # the reference; the approximate EUP reciprocal broke the tolerance check.
        p = p * (1.0 / jnp.sum(p, axis=-1, keepdims=True))
        oh = jnp.dot(p.astype(vh.dtype), vh, preferred_element_type=jnp.float32)
        head_ref[:, sl] = oh.astype(head_ref.dtype)
    # Single (tq, D) x (D, D) out-projection instead of `heads` dh-contractions.
    return jnp.dot(head_ref[...], w_out, preferred_element_type=jnp.float32) + b_out


# ---------------------------------------------------------------------------
# Pallas kernel: grid = (batch, query-tile). K/V projections (self + cross) are
# computed once per batch element (q_tile == 0) into VMEM scratch.
# ---------------------------------------------------------------------------
def tdb_kernel(tgt_q_ref, tgt_kv_ref, src_ref,
               wq_sa_ref, bq_sa_ref, wkv_sa_ref, bkv_sa_ref, wo_sa_ref, bo_sa_ref,
               ln_sa_w_ref, ln_sa_b_ref,
               wq_ca_ref, bq_ca_ref, wkv_ca_ref, bkv_ca_ref, wo_ca_ref, bo_ca_ref,
               ln_ca_w_ref, ln_ca_b_ref,
               w1_ref, b1_ref, w2_ref, b2_ref,
               ln_ff_w_ref, ln_ff_b_ref,
               out_ref,
               kv_sa_ref, kv_ca_ref, head_ref,
               *, heads, head_dim):
    cdt = tgt_q_ref.dtype
    qi = pl.program_id(1)

    # Fused K|V projections, computed once per batch element (q axis is "arbitrary").
    @pl.when(qi == 0)
    def _():
        kv_sa_ref[...] = (jnp.dot(tgt_kv_ref[0], wkv_sa_ref[...],
                                  preferred_element_type=jnp.float32)
                          + bkv_sa_ref[...]).astype(cdt)
        kv_ca_ref[...] = (jnp.dot(src_ref[0], wkv_ca_ref[...],
                                  preferred_element_type=jnp.float32)
                          + bkv_ca_ref[...]).astype(cdt)

    x = tgt_q_ref[0]  # (tq, D), activation dtype

    # --- Self attention + LayerNorm (no residual, matching the reference). ---
    q = (jnp.dot(x, wq_sa_ref[...], preferred_element_type=jnp.float32)
         + bq_sa_ref[...]).astype(cdt)
    a = _attn(q, kv_sa_ref, wo_sa_ref[...], bo_sa_ref[...], head_ref,
              heads, head_dim)
    x = _layer_norm(a, ln_sa_w_ref[...], ln_sa_b_ref[...]).astype(cdt)

    # --- Cross attention + LayerNorm. ---
    q = (jnp.dot(x, wq_ca_ref[...], preferred_element_type=jnp.float32)
         + bq_ca_ref[...]).astype(cdt)
    a = _attn(q, kv_ca_ref, wo_ca_ref[...], bo_ca_ref[...], head_ref,
              heads, head_dim)
    x = _layer_norm(a, ln_ca_w_ref[...], ln_ca_b_ref[...]).astype(cdt)

    # --- Feed forward (Linear -> ReLU -> Linear) + LayerNorm. ---
    h = jnp.dot(x, w1_ref[...], preferred_element_type=jnp.float32) + b1_ref[...]
    h = jnp.maximum(h, 0.0).astype(cdt)
    y = jnp.dot(h, w2_ref[...], preferred_element_type=jnp.float32) + b2_ref[...]
    y = _layer_norm(y, ln_ff_w_ref[...], ln_ff_b_ref[...])

    out_ref[0] = y.astype(out_ref.dtype)


def _pick_q_tile(Lt):
    # 256 amortizes MXU staging on v6e/v7x; 128 preferred on v5e (smaller MXU /
    # one store slot) — kept simple here.
    for t in (256, 128):
        if Lt % t == 0:
            return t
    return Lt


def tdb_forward(tgt, src, params, heads):
    B, Lt, D = tgt.shape
    _, Ls, _ = src.shape
    assert D % heads == 0
    head_dim = D // heads
    scale = 1.0 / math.sqrt(head_dim)
    cdt = tgt.dtype

    # Host-side weight preprocessing: split fused in_proj into Q and (K|V) parts,
    # fold the attention scale into the Q projection.
    def split_attn(prefix):
        w_in = params[f"w_in_{prefix}"]
        b_in = params[f"b_in_{prefix}"]
        return [
            w_in[:, :D] * scale, b_in[:, :D] * scale,     # wq, bq (pre-scaled)
            w_in[:, D:], b_in[:, D:],                     # wkv, bkv (fused K|V)
            params[f"w_out_{prefix}"], params[f"b_out_{prefix}"],
            params[f"ln_{prefix}_w"], params[f"ln_{prefix}_b"],
        ]

    proc = (split_attn("sa") + split_attn("ca")
            + [params["w1"], params["b1"], params["w2"], params["b2"],
               params["ln_ff_w"], params["ln_ff_b"]])
    # Cast everything to the activation dtype: keeps the MXU on the fast bf16 path
    # when activations are bf16 and halves weight VMEM / HBM DMA.
    proc = [jnp.asarray(p, cdt) for p in proc]

    tq = _pick_q_tile(Lt)
    nq = Lt // tq
    itemsize = jnp.dtype(cdt).itemsize
    kernel = functools.partial(tdb_kernel, heads=heads, head_dim=head_dim)

    def build(single_buffer_weights):
        in_specs = [
            pl.BlockSpec((1, tq, D), lambda b, q: (b, q, 0)),   # query tile of tgt
            pl.BlockSpec((1, Lt, D), lambda b, q: (b, 0, 0)),   # full tgt (self K/V)
            pl.BlockSpec((1, Ls, D), lambda b, q: (b, 0, 0)),   # full src (cross K/V)
        ]
        # Parameters: full-array blocks with constant index_maps (never re-DMA'd);
        # single buffering avoids duplicating weight residency in VMEM.
        for p in proc:
            kw = {}
            if single_buffer_weights:
                kw["pipeline_mode"] = pl.Buffered(1)
            in_specs.append(
                pl.BlockSpec(p.shape, lambda b, q, n=p.ndim: (0,) * n, **kw))

        wbuf = 1 if single_buffer_weights else 2
        weight_bytes = sum(math.prod(p.shape) for p in proc) * itemsize
        need = (wbuf * weight_bytes
                + (Lt + Ls) * 2 * D * itemsize           # fused K|V scratches
                + tq * D * itemsize                       # head-output scratch
                + 2 * (2 * tq + Lt + Ls) * D * itemsize)  # double-buffered io blocks
        # Generous margin; floor covers (8,128)-tile padding of small params,
        # ceiling keeps the request legal on v7x's 64 MiB physical VMEM.
        vmem_limit = int(min(max(need * 5 // 4, 32 << 20), 64 << 20))

        return pl.pallas_call(
            kernel,
            out_shape=jax.ShapeDtypeStruct((B, Lt, D), cdt),
            grid_spec=pltpu.PrefetchScalarGridSpec(
                num_scalar_prefetch=0,
                grid=(B, nq),
                in_specs=in_specs,
                out_specs=pl.BlockSpec((1, tq, D), lambda b, q: (b, q, 0)),
                scratch_shapes=[
                    pltpu.VMEM((Lt, 2 * D), cdt),   # self-attn fused K|V
                    pltpu.VMEM((Ls, 2 * D), cdt),   # cross-attn fused K|V
                    pltpu.VMEM((tq, D), cdt),       # per-head outputs -> one out-proj
                ],
            ),
            compiler_params=pltpu.CompilerParams(
                dimension_semantics=("parallel", "arbitrary"),
                vmem_limit_bytes=vmem_limit),
        )

    try:
        return build(single_buffer_weights=True)(tgt, tgt, src, *proc)
    except Exception:
        # Older jax versions may reject pipeline_mode / Buffered(1): fall back to
        # default (double-buffered) weight blocks.
        return build(single_buffer_weights=False)(tgt, tgt, src, *proc)


# ---------------------------------------------------------------------------
# Pure-JAX reference (same math) for a correctness check.  Evaluated at HIGHEST
# matmul precision so the f32 comparison against the kernel is meaningful on TPU
# (default precision would make the *reference* the lossy side).
# ---------------------------------------------------------------------------
def tdb_reference(tgt, src, params, heads):
    def ln(x, w, b, eps=1e-5):
        mu = jnp.mean(x, axis=-1, keepdims=True)
        var = jnp.mean((x - mu) ** 2, axis=-1, keepdims=True)
        return (x - mu) / jnp.sqrt(var + eps) * w + b

    def mha(q_in, kv_in, w_in, b_in, w_out, b_out):
        B, Lq, D = q_in.shape
        Lk = kv_in.shape[1]
        dh = D // heads
        q = q_in @ w_in[:, :D] + b_in[0, :D]
        k = kv_in @ w_in[:, D:2 * D] + b_in[0, D:2 * D]
        v = kv_in @ w_in[:, 2 * D:] + b_in[0, 2 * D:]
        q = q.reshape(B, Lq, heads, dh).transpose(0, 2, 1, 3)
        k = k.reshape(B, Lk, heads, dh).transpose(0, 2, 1, 3)
        v = v.reshape(B, Lk, heads, dh).transpose(0, 2, 1, 3)
        s = jnp.einsum("bhqd,bhkd->bhqk", q, k) / jnp.sqrt(dh)
        p = jax.nn.softmax(s, axis=-1)
        o = jnp.einsum("bhqk,bhkd->bhqd", p, v)
        o = o.transpose(0, 2, 1, 3).reshape(B, Lq, D)
        return o @ w_out + b_out[0]

    with jax.default_matmul_precision("highest"):
        x = mha(tgt, tgt, params["w_in_sa"], params["b_in_sa"],
                params["w_out_sa"], params["b_out_sa"])
        x = ln(x, params["ln_sa_w"][0], params["ln_sa_b"][0])
        x = mha(x, src, params["w_in_ca"], params["b_in_ca"],
                params["w_out_ca"], params["b_out_ca"])
        x = ln(x, params["ln_ca_w"][0], params["ln_ca_b"][0])
        h = jnp.maximum(x @ params["w1"] + params["b1"][0], 0.0)
        y = h @ params["w2"] + params["b2"][0]
        return ln(y, params["ln_ff_w"][0], params["ln_ff_b"][0])


def init_params(key, hidden_dim, hidden_factor=1):
    D = hidden_dim
    Dh = hidden_dim * hidden_factor
    ks = jax.random.split(key, 8)
    s = 0.05
    return {
        # self-attn
        "w_in_sa": jax.random.normal(ks[0], (D, 3 * D), jnp.float32) * s,
        "b_in_sa": jax.random.normal(ks[1], (1, 3 * D), jnp.float32) * s,
        "w_out_sa": jax.random.normal(ks[2], (D, D), jnp.float32) * s,
        "b_out_sa": jnp.zeros((1, D), jnp.float32),
        "ln_sa_w": jnp.ones((1, D), jnp.float32),
        "ln_sa_b": jnp.zeros((1, D), jnp.float32),
        # cross-attn
        "w_in_ca": jax.random.normal(ks[3], (D, 3 * D), jnp.float32) * s,
        "b_in_ca": jax.random.normal(ks[4], (1, 3 * D), jnp.float32) * s,
        "w_out_ca": jax.random.normal(ks[5], (D, D), jnp.float32) * s,
        "b_out_ca": jnp.zeros((1, D), jnp.float32),
        "ln_ca_w": jnp.ones((1, D), jnp.float32),
        "ln_ca_b": jnp.zeros((1, D), jnp.float32),
        # feed forward
        "w1": jax.random.normal(ks[6], (D, Dh), jnp.float32) * s,
        "b1": jnp.zeros((1, Dh), jnp.float32),
        "w2": jax.random.normal(ks[7], (Dh, D), jnp.float32) * s,
        "b2": jnp.zeros((1, D), jnp.float32),
        "ln_ff_w": jnp.ones((1, D), jnp.float32),
        "ln_ff_b": jnp.zeros((1, D), jnp.float32),
    }


if __name__ == "__main__":
    B, L_TGT, L_SRC, D, HEADS = 2, 8, 12, 32, 4

    key = jax.random.PRNGKey(0)
    k_tgt, k_src, k_par = jax.random.split(key, 3)
    tgt = jax.random.normal(k_tgt, (B, L_TGT, D), jnp.float32)
    src = jax.random.normal(k_src, (B, L_SRC, D), jnp.float32)
    params = init_params(k_par, D, hidden_factor=1)

    out = tdb_forward(tgt, src, params, HEADS)
    out = jax.block_until_ready(out)

    ref = jax.block_until_ready(tdb_reference(tgt, src, params, HEADS))
    assert out.shape == (B, L_TGT, D)
    max_err = float(jnp.max(jnp.abs(out - ref)))
    assert jnp.allclose(out, ref, atol=2e-3, rtol=2e-3), (
        f"mismatch vs JAX reference (max abs err {max_err:.3e})")

    print("KERNEL_OK")
</pallas_src>

<mosaic_0001>
module attributes {stable_mosaic.version = 11 : i64} {
  func.func @tdb_kernel(%arg0: i32, %arg1: i32, %arg2: memref<1x8x32xf32, #tpu.memory_space<vmem>>, %arg3: memref<1x8x32xf32, #tpu.memory_space<vmem>>, %arg4: memref<1x12x32xf32, #tpu.memory_space<vmem>>, %arg5: memref<32x32xf32, #tpu.memory_space<vmem>>, %arg6: memref<1x32xf32, #tpu.memory_space<vmem>>, %arg7: memref<32x64xf32, #tpu.memory_space<vmem>>, %arg8: memref<1x64xf32, #tpu.memory_space<vmem>>, %arg9: memref<32x32xf32, #tpu.memory_space<vmem>>, %arg10: memref<1x32xf32, #tpu.memory_space<vmem>>, %arg11: memref<1x32xf32, #tpu.memory_space<vmem>>, %arg12: memref<1x32xf32, #tpu.memory_space<vmem>>, %arg13: memref<32x32xf32, #tpu.memory_space<vmem>>, %arg14: memref<1x32xf32, #tpu.memory_space<vmem>>, %arg15: memref<32x64xf32, #tpu.memory_space<vmem>>, %arg16: memref<1x64xf32, #tpu.memory_space<vmem>>, %arg17: memref<32x32xf32, #tpu.memory_space<vmem>>, %arg18: memref<1x32xf32, #tpu.memory_space<vmem>>, %arg19: memref<1x32xf32, #tpu.memory_space<vmem>>, %arg20: memref<1x32xf32, #tpu.memory_space<vmem>>, %arg21: memref<32x32xf32, #tpu.memory_space<vmem>>, %arg22: memref<1x32xf32, #tpu.memory_space<vmem>>, %arg23: memref<32x32xf32, #tpu.memory_space<vmem>>, %arg24: memref<1x32xf32, #tpu.memory_space<vmem>>, %arg25: memref<1x32xf32, #tpu.memory_space<vmem>>, %arg26: memref<1x32xf32, #tpu.memory_space<vmem>>, %arg27: memref<1x8x32xf32, #tpu.memory_space<vmem>>, %arg28: memref<8x64xf32, #tpu.memory_space<vmem>>, %arg29: memref<12x64xf32, #tpu.memory_space<vmem>>, %arg30: memref<8x32xf32, #tpu.memory_space<vmem>>) attributes {dimension_semantics = [#tpu.dimension_semantics<parallel>, #tpu.dimension_semantics<arbitrary>], iteration_bounds = array<i64: 2, 1>, scalar_prefetch = 0 : i64, scratch_operands = 3 : i64, tpu.core_type = #tpu.core_type<tc>, window_params = [{transform_indices = @transform_0, window_bounds = array<i64: 1, 8, 32>}, {transform_indices = @transform_1, window_bounds = array<i64: 1, 8, 32>}, {transform_indices = @transform_2, window_bounds = array<i64: 1, 12, 32>}, {pipeline_mode = #tpu.pipeline_mode<synchronous>, transform_indices = @transform_3, window_bounds = array<i64: 32, 32>}, {pipeline_mode = #tpu.pipeline_mode<synchronous>, transform_indices = @transform_4, window_bounds = array<i64: 1, 32>}, {pipeline_mode = #tpu.pipeline_mode<synchronous>, transform_indices = @transform_5, window_bounds = array<i64: 32, 64>}, {pipeline_mode = #tpu.pipeline_mode<synchronous>, transform_indices = @transform_6, window_bounds = array<i64: 1, 64>}, {pipeline_mode = #tpu.pipeline_mode<synchronous>, transform_indices = @transform_7, window_bounds = array<i64: 32, 32>}, {pipeline_mode = #tpu.pipeline_mode<synchronous>, transform_indices = @transform_8, window_bounds = array<i64: 1, 32>}, {pipeline_mode = #tpu.pipeline_mode<synchronous>, transform_indices = @transform_9, window_bounds = array<i64: 1, 32>}, {pipeline_mode = #tpu.pipeline_mode<synchronous>, transform_indices = @transform_10, window_bounds = array<i64: 1, 32>}, {pipeline_mode = #tpu.pipeline_mode<synchronous>, transform_indices = @transform_11, window_bounds = array<i64: 32, 32>}, {pipeline_mode = #tpu.pipeline_mode<synchronous>, transform_indices = @transform_12, window_bounds = array<i64: 1, 32>}, {pipeline_mode = #tpu.pipeline_mode<synchronous>, transform_indices = @transform_13, window_bounds = array<i64: 32, 64>}, {pipeline_mode = #tpu.pipeline_mode<synchronous>, transform_indices = @transform_14, window_bounds = array<i64: 1, 64>}, {pipeline_mode = #tpu.pipeline_mode<synchronous>, transform_indices = @transform_15, window_bounds = array<i64: 32, 32>}, {pipeline_mode = #tpu.pipeline_mode<synchronous>, transform_indices = @transform_16, window_bounds = array<i64: 1, 32>}, {pipeline_mode = #tpu.pipeline_mode<synchronous>, transform_indices = @transform_17, window_bounds = array<i64: 1, 32>}, {pipeline_mode = #tpu.pipeline_mode<synchronous>, transform_indices = @transform_18, window_bounds = array<i64: 1, 32>}, {pipeline_mode = #tpu.pipeline_mode<synchronous>, transform_indices = @transform_19, window_bounds = array<i64: 32, 32>}, {pipeline_mode = #tpu.pipeline_mode<synchronous>, transform_indices = @transform_20, window_bounds = array<i64: 1, 32>}, {pipeline_mode = #tpu.pipeline_mode<synchronous>, transform_indices = @transform_21, window_bounds = array<i64: 32, 32>}, {pipeline_mode = #tpu.pipeline_mode<synchronous>, transform_indices = @transform_22, window_bounds = array<i64: 1, 32>}, {pipeline_mode = #tpu.pipeline_mode<synchronous>, transform_indices = @transform_23, window_bounds = array<i64: 1, 32>}, {pipeline_mode = #tpu.pipeline_mode<synchronous>, transform_indices = @transform_24, window_bounds = array<i64: 1, 32>}, {transform_indices = @transform_25, window_bounds = array<i64: 1, 8, 32>}]} {
    %c0_i32 = arith.constant 0 : i32
    %0 = arith.cmpi eq, %arg1, %c0_i32 : i32
    %1 = arith.extui %0 : i1 to i32
    %c0_i32_0 = arith.constant 0 : i32
    %2 = arith.cmpi ne, %1, %c0_i32_0 : i32
    scf.if %2 {
      %c0_148 = arith.constant 0 : index
      %c0_149 = arith.constant 0 : index
      %c0_150 = arith.constant 0 : index
      %244 = vector.load %arg3[%c0_148, %c0_149, %c0_150] : memref<1x8x32xf32, #tpu.memory_space<vmem>>, vector<1x8x32xf32>
      %245 = vector.shape_cast %244 : vector<1x8x32xf32> to vector<8x32xf32>
      %c0_151 = arith.constant 0 : index
      %c0_152 = arith.constant 0 : index
      %246 = vector.load %arg7[%c0_151, %c0_152] : memref<32x64xf32, #tpu.memory_space<vmem>>, vector<32x64xf32>
      %cst_153 = arith.constant dense<0.000000e+00> : vector<8x64xf32>
      %247 = tpu.matmul %245, %246, %cst_153 {dimension_numbers = #tpu.dot_dimension_numbers<[1], [0], [0], [1], [0, 0, 1, 1], [], []>} : vector<8x32xf32>, vector<32x64xf32>, vector<8x64xf32> -> vector<8x64xf32>
      %c0_154 = arith.constant 0 : index
      %c0_155 = arith.constant 0 : index
      %248 = vector.load %arg8[%c0_154, %c0_155] : memref<1x64xf32, #tpu.memory_space<vmem>>, vector<1x64xf32>
      %249 = vector.broadcast %248 : vector<1x64xf32> to vector<8x64xf32>
      %250 = arith.addf %247, %249 : vector<8x64xf32>
      %c0_156 = arith.constant 0 : index
      %c0_157 = arith.constant 0 : index
      %251 = vector.load %arg28[%c0_156, %c0_157] : memref<8x64xf32, #tpu.memory_space<vmem>>, vector<8x64xf32>
      tpu.vector_store %arg28[%c0_156, %c0_157], %250 {strides = array<i32>} : memref<8x64xf32, #tpu.memory_space<vmem>>, vector<8x64xf32>,
      %c0_158 = arith.constant 0 : index
      %c0_159 = arith.constant 0 : index
      %c0_160 = arith.constant 0 : index
      %252 = vector.load %arg4[%c0_158, %c0_159, %c0_160] : memref<1x12x32xf32, #tpu.memory_space<vmem>>, vector<1x12x32xf32>
      %253 = vector.shape_cast %252 : vector<1x12x32xf32> to vector<12x32xf32>
      %c0_161 = arith.constant 0 : index
      %c0_162 = arith.constant 0 : index
      %254 = vector.load %arg15[%c0_161, %c0_162] : memref<32x64xf32, #tpu.memory_space<vmem>>, vector<32x64xf32>
      %cst_163 = arith.constant dense<0.000000e+00> : vector<12x64xf32>
      %255 = tpu.matmul %253, %254, %cst_163 {dimension_numbers = #tpu.dot_dimension_numbers<[1], [0], [0], [1], [0, 0, 1, 1], [], []>} : vector<12x32xf32>, vector<32x64xf32>, vector<12x64xf32> -> vector<12x64xf32>
      %c0_164 = arith.constant 0 : index
      %c0_165 = arith.constant 0 : index
      %256 = vector.load %arg16[%c0_164, %c0_165] : memref<1x64xf32, #tpu.memory_space<vmem>>, vector<1x64xf32>
      %257 = vector.broadcast %256 : vector<1x64xf32> to vector<12x64xf32>
      %258 = arith.addf %255, %257 : vector<12x64xf32>
      %c0_166 = arith.constant 0 : index
      %c0_167 = arith.constant 0 : index
      %259 = vector.load %arg29[%c0_166, %c0_167] : memref<12x64xf32, #tpu.memory_space<vmem>>, vector<12x64xf32>
      tpu.vector_store %arg29[%c0_166, %c0_167], %258 {strides = array<i32>} : memref<12x64xf32, #tpu.memory_space<vmem>>, vector<12x64xf32>,
    } else {
    }
    %c0 = arith.constant 0 : index
    %c0_1 = arith.constant 0 : index
    %c0_2 = arith.constant 0 : index
    %3 = vector.load %arg2[%c0, %c0_1, %c0_2] : memref<1x8x32xf32, #tpu.memory_space<vmem>>, vector<1x8x32xf32>
    %4 = vector.shape_cast %3 : vector<1x8x32xf32> to vector<8x32xf32>
    %c0_3 = arith.constant 0 : index
    %c0_4 = arith.constant 0 : index
    %5 = vector.load %arg5[%c0_3, %c0_4] : memref<32x32xf32, #tpu.memory_space<vmem>>, vector<32x32xf32>
    %cst = arith.constant dense<0.000000e+00> : vector<8x32xf32>
    %6 = tpu.matmul %4, %5, %cst {dimension_numbers = #tpu.dot_dimension_numbers<[1], [0], [0], [1], [0, 0, 1, 1], [], []>} : vector<8x32xf32>, vector<32x32xf32>, vector<8x32xf32> -> vector<8x32xf32>
    %c0_5 = arith.constant 0 : index
    %c0_6 = arith.constant 0 : index
    %7 = vector.load %arg6[%c0_5, %c0_6] : memref<1x32xf32, #tpu.memory_space<vmem>>, vector<1x32xf32>
    %8 = vector.broadcast %7 : vector<1x32xf32> to vector<8x32xf32>
    %9 = arith.addf %6, %8 : vector<8x32xf32>
    %c0_7 = arith.constant 0 : index
    %c0_8 = arith.constant 0 : index
    %10 = vector.load %arg9[%c0_7, %c0_8] : memref<32x32xf32, #tpu.memory_space<vmem>>, vector<32x32xf32>
    %c0_9 = arith.constant 0 : index
    %c0_10 = arith.constant 0 : index
    %11 = vector.load %arg10[%c0_9, %c0_10] : memref<1x32xf32, #tpu.memory_space<vmem>>, vector<1x32xf32>
    %12 = vector.extract_strided_slice %9 {offsets = [0, 0], sizes = [8, 8], strides = [1, 1]} : vector<8x32xf32> to vector<8x8xf32>
    %c0_11 = arith.constant 0 : index
    %c0_12 = arith.constant 0 : index
    %13 = vector.load %arg28[%c0_11, %c0_12] : memref<8x64xf32, #tpu.memory_space<vmem>>, vector<8x8xf32>
    %c0_13 = arith.constant 0 : index
    %c32 = arith.constant 32 : index
    %14 = vector.load %arg28[%c0_13, %c32] : memref<8x64xf32, #tpu.memory_space<vmem>>, vector<8x8xf32>
    %cst_14 = arith.constant dense<0.000000e+00> : vector<8x8xf32>
    %15 = tpu.matmul %12, %13, %cst_14 {dimension_numbers = #tpu.dot_dimension_numbers<[1], [1], [0], [0], [0, 0, 1, 0], [], []>} : vector<8x8xf32>, vector<8x8xf32>, vector<8x8xf32> -> vector<8x8xf32>
    %cst_15 = arith.constant dense<0xFF800000> : vector<8xf32>
    %16 = vector.multi_reduction <maximumf>, %15, %cst_15 [1] : vector<8x8xf32> to vector<8xf32>
    %17 = vector.shape_cast %16 : vector<8xf32> to vector<8x1xf32>
    %18 = vector.broadcast %17 : vector<8x1xf32> to vector<8x8xf32>
    %19 = arith.subf %15, %18 : vector<8x8xf32>
    %20 = math.exp %19 : vector<8x8xf32>
    %cst_16 = arith.constant dense<0.000000e+00> : vector<8xf32>
    %21 = vector.multi_reduction <add>, %20, %cst_16 [1] : vector<8x8xf32> to vector<8xf32>
    %22 = vector.shape_cast %21 : vector<8xf32> to vector<8x1xf32>
    %cst_17 = arith.constant 1.000000e+00 : f32
    %23 = vector.broadcast %cst_17 : f32 to vector<8x1xf32>
    %24 = arith.divf %23, %22 : vector<8x1xf32>
    %25 = vector.broadcast %24 : vector<8x1xf32> to vector<8x8xf32>
    %26 = arith.mulf %20, %25 : vector<8x8xf32>
    %cst_18 = arith.constant dense<0.000000e+00> : vector<8x8xf32>
    %27 = tpu.matmul %26, %14, %cst_18 {dimension_numbers = #tpu.dot_dimension_numbers<[1], [0], [0], [1], [0, 0, 1, 1], [], []>} : vector<8x8xf32>, vector<8x8xf32>, vector<8x8xf32> -> vector<8x8xf32>
    %c0_19 = arith.constant 0 : index
    %c0_20 = arith.constant 0 : index
    %28 = vector.load %arg30[%c0_19, %c0_20] : memref<8x32xf32, #tpu.memory_space<vmem>>, vector<8x8xf32>
    tpu.vector_store %arg30[%c0_19, %c0_20], %27 {strides = array<i32>} : memref<8x32xf32, #tpu.memory_space<vmem>>, vector<8x8xf32>,
    %29 = vector.extract_strided_slice %9 {offsets = [0, 8], sizes = [8, 8], strides = [1, 1]} : vector<8x32xf32> to vector<8x8xf32>
    %c0_21 = arith.constant 0 : index
    %c8 = arith.constant 8 : index
    %30 = vector.load %arg28[%c0_21, %c8] : memref<8x64xf32, #tpu.memory_space<vmem>>, vector<8x8xf32>
    %c0_22 = arith.constant 0 : index
    %c40 = arith.constant 40 : index
    %31 = vector.load %arg28[%c0_22, %c40] : memref<8x64xf32, #tpu.memory_space<vmem>>, vector<8x8xf32>
    %cst_23 = arith.constant dense<0.000000e+00> : vector<8x8xf32>
    %32 = tpu.matmul %29, %30, %cst_23 {dimension_numbers = #tpu.dot_dimension_numbers<[1], [1], [0], [0], [0, 0, 1, 0], [], []>} : vector<8x8xf32>, vector<8x8xf32>, vector<8x8xf32> -> vector<8x8xf32>
    %cst_24 = arith.constant dense<0xFF800000> : vector<8xf32>
    %33 = vector.multi_reduction <maximumf>, %32, %cst_24 [1] : vector<8x8xf32> to vector<8xf32>
    %34 = vector.shape_cast %33 : vector<8xf32> to vector<8x1xf32>
    %35 = vector.broadcast %34 : vector<8x1xf32> to vector<8x8xf32>
    %36 = arith.subf %32, %35 : vector<8x8xf32>
    %37 = math.exp %36 : vector<8x8xf32>
    %cst_25 = arith.constant dense<0.000000e+00> : vector<8xf32>
    %38 = vector.multi_reduction <add>, %37, %cst_25 [1] : vector<8x8xf32> to vector<8xf32>
    %39 = vector.shape_cast %38 : vector<8xf32> to vector<8x1xf32>
    %cst_26 = arith.constant 1.000000e+00 : f32
    %40 = vector.broadcast %cst_26 : f32 to vector<8x1xf32>
    %41 = arith.divf %40, %39 : vector<8x1xf32>
    %42 = vector.broadcast %41 : vector<8x1xf32> to vector<8x8xf32>
    %43 = arith.mulf %37, %42 : vector<8x8xf32>
    %cst_27 = arith.constant dense<0.000000e+00> : vector<8x8xf32>
    %44 = tpu.matmul %43, %31, %cst_27 {dimension_numbers = #tpu.dot_dimension_numbers<[1], [0], [0], [1], [0, 0, 1, 1], [], []>} : vector<8x8xf32>, vector<8x8xf32>, vector<8x8xf32> -> vector<8x8xf32>
    %c0_28 = arith.constant 0 : index
    %c8_29 = arith.constant 8 : index
    %45 = vector.load %arg30[%c0_28, %c8_29] : memref<8x32xf32, #tpu.memory_space<vmem>>, vector<8x8xf32>
    tpu.vector_store %arg30[%c0_28, %c8_29], %44 {strides = array<i32>} : memref<8x32xf32, #tpu.memory_space<vmem>>, vector<8x8xf32>,
    %46 = vector.extract_strided_slice %9 {offsets = [0, 16], sizes = [8, 8], strides = [1, 1]} : vector<8x32xf32> to vector<8x8xf32>
    %c0_30 = arith.constant 0 : index
    %c16 = arith.constant 16 : index
    %47 = vector.load %arg28[%c0_30, %c16] : memref<8x64xf32, #tpu.memory_space<vmem>>, vector<8x8xf32>
    %c0_31 = arith.constant 0 : index
    %c48 = arith.constant 48 : index
    %48 = vector.load %arg28[%c0_31, %c48] : memref<8x64xf32, #tpu.memory_space<vmem>>, vector<8x8xf32>
    %cst_32 = arith.constant dense<0.000000e+00> : vector<8x8xf32>
    %49 = tpu.matmul %46, %47, %cst_32 {dimension_numbers = #tpu.dot_dimension_numbers<[1], [1], [0], [0], [0, 0, 1, 0], [], []>} : vector<8x8xf32>, vector<8x8xf32>, vector<8x8xf32> -> vector<8x8xf32>
    %cst_33 = arith.constant dense<0xFF800000> : vector<8xf32>
    %50 = vector.multi_reduction <maximumf>, %49, %cst_33 [1] : vector<8x8xf32> to vector<8xf32>
    %51 = vector.shape_cast %50 : vector<8xf32> to vector<8x1xf32>
    %52 = vector.broadcast %51 : vector<8x1xf32> to vector<8x8xf32>
    %53 = arith.subf %49, %52 : vector<8x8xf32>
    %54 = math.exp %53 : vector<8x8xf32>
    %cst_34 = arith.constant dense<0.000000e+00> : vector<8xf32>
    %55 = vector.multi_reduction <add>, %54, %cst_34 [1] : vector<8x8xf32> to vector<8xf32>
    %56 = vector.shape_cast %55 : vector<8xf32> to vector<8x1xf32>
    %cst_35 = arith.constant 1.000000e+00 : f32
    %57 = vector.broadcast %cst_35 : f32 to vector<8x1xf32>
    %58 = arith.divf %57, %56 : vector<8x1xf32>
    %59 = vector.broadcast %58 : vector<8x1xf32> to vector<8x8xf32>
    %60 = arith.mulf %54, %59 : vector<8x8xf32>
    %cst_36 = arith.constant dense<0.000000e+00> : vector<8x8xf32>
    %61 = tpu.matmul %60, %48, %cst_36 {dimension_numbers = #tpu.dot_dimension_numbers<[1], [0], [0], [1], [0, 0, 1, 1], [], []>} : vector<8x8xf32>, vector<8x8xf32>, vector<8x8xf32> -> vector<8x8xf32>
    %c0_37 = arith.constant 0 : index
    %c16_38 = arith.constant 16 : index
    %62 = vector.load %arg30[%c0_37, %c16_38] : memref<8x32xf32, #tpu.memory_space<vmem>>, vector<8x8xf32>
    tpu.vector_store %arg30[%c0_37, %c16_38], %61 {strides = array<i32>} : memref<8x32xf32, #tpu.memory_space<vmem>>, vector<8x8xf32>,
    %63 = vector.extract_strided_slice %9 {offsets = [0, 24], sizes = [8, 8], strides = [1, 1]} : vector<8x32xf32> to vector<8x8xf32>
    %c0_39 = arith.constant 0 : index
    %c24 = arith.constant 24 : index
    %64 = vector.load %arg28[%c0_39, %c24] : memref<8x64xf32, #tpu.memory_space<vmem>>, vector<8x8xf32>
    %c0_40 = arith.constant 0 : index
    %c56 = arith.constant 56 : index
    %65 = vector.load %arg28[%c0_40, %c56] : memref<8x64xf32, #tpu.memory_space<vmem>>, vector<8x8xf32>
    %cst_41 = arith.constant dense<0.000000e+00> : vector<8x8xf32>
    %66 = tpu.matmul %63, %64, %cst_41 {dimension_numbers = #tpu.dot_dimension_numbers<[1], [1], [0], [0], [0, 0, 1, 0], [], []>} : vector<8x8xf32>, vector<8x8xf32>, vector<8x8xf32> -> vector<8x8xf32>
    %cst_42 = arith.constant dense<0xFF800000> : vector<8xf32>
    %67 = vector.multi_reduction <maximumf>, %66, %cst_42 [1] : vector<8x8xf32> to vector<8xf32>
    %68 = vector.shape_cast %67 : vector<8xf32> to vector<8x1xf32>
    %69 = vector.broadcast %68 : vector<8x1xf32> to vector<8x8xf32>
    %70 = arith.subf %66, %69 : vector<8x8xf32>
    %71 = math.exp %70 : vector<8x8xf32>
    %cst_43 = arith.constant dense<0.000000e+00> : vector<8xf32>
    %72 = vector.multi_reduction <add>, %71, %cst_43 [1] : vector<8x8xf32> to vector<8xf32>
    %73 = vector.shape_cast %72 : vector<8xf32> to vector<8x1xf32>
    %cst_44 = arith.constant 1.000000e+00 : f32
    %74 = vector.broadcast %cst_44 : f32 to vector<8x1xf32>
    %75 = arith.divf %74, %73 : vector<8x1xf32>
    %76 = vector.broadcast %75 : vector<8x1xf32> to vector<8x8xf32>
    %77 = arith.mulf %71, %76 : vector<8x8xf32>
    %cst_45 = arith.constant dense<0.000000e+00> : vector<8x8xf32>
    %78 = tpu.matmul %77, %65, %cst_45 {dimension_numbers = #tpu.dot_dimension_numbers<[1], [0], [0], [1], [0, 0, 1, 1], [], []>} : vector<8x8xf32>, vector<8x8xf32>, vector<8x8xf32> -> vector<8x8xf32>
    %c0_46 = arith.constant 0 : index
    %c24_47 = arith.constant 24 : index
    %79 = vector.load %arg30[%c0_46, %c24_47] : memref<8x32xf32, #tpu.memory_space<vmem>>, vector<8x8xf32>
    tpu.vector_store %arg30[%c0_46, %c24_47], %78 {strides = array<i32>} : memref<8x32xf32, #tpu.memory_space<vmem>>, vector<8x8xf32>,
    %c0_48 = arith.constant 0 : index
    %c0_49 = arith.constant 0 : index
    %80 = vector.load %arg30[%c0_48, %c0_49] : memref<8x32xf32, #tpu.memory_space<vmem>>, vector<8x32xf32>
    %cst_50 = arith.constant dense<0.000000e+00> : vector<8x32xf32>
    %81 = tpu.matmul %80, %10, %cst_50 {dimension_numbers = #tpu.dot_dimension_numbers<[1], [0], [0], [1], [0, 0, 1, 1], [], []>} : vector<8x32xf32>, vector<32x32xf32>, vector<8x32xf32> -> vector<8x32xf32>
    %82 = vector.broadcast %11 : vector<1x32xf32> to vector<8x32xf32>
    %83 = arith.addf %81, %82 : vector<8x32xf32>
    %c0_51 = arith.constant 0 : index
    %c0_52 = arith.constant 0 : index
    %84 = vector.load %arg11[%c0_51, %c0_52] : memref<1x32xf32, #tpu.memory_space<vmem>>, vector<1x32xf32>
    %c0_53 = arith.constant 0 : index
    %c0_54 = arith.constant 0 : index
    %85 = vector.load %arg12[%c0_53, %c0_54] : memref<1x32xf32, #tpu.memory_space<vmem>>, vector<1x32xf32>
    %cst_55 = arith.constant dense<0.000000e+00> : vector<8xf32>
    %86 = vector.multi_reduction <add>, %83, %cst_55 [1] : vector<8x32xf32> to vector<8xf32>
    %87 = vector.shape_cast %86 : vector<8xf32> to vector<8x1xf32>
    %cst_56 = arith.constant 3.200000e+01 : f32
    %88 = vector.broadcast %cst_56 : f32 to vector<8x1xf32>
    %89 = arith.divf %87, %88 : vector<8x1xf32>
    %90 = vector.broadcast %89 : vector<8x1xf32> to vector<8x32xf32>
    %91 = arith.subf %83, %90 : vector<8x32xf32>
    %92 = arith.mulf %91, %91 : vector<8x32xf32>
    %cst_57 = arith.constant dense<0.000000e+00> : vector<8xf32>
    %93 = vector.multi_reduction <add>, %92, %cst_57 [1] : vector<8x32xf32> to vector<8xf32>
    %94 = vector.shape_cast %93 : vector<8xf32> to vector<8x1xf32>
    %cst_58 = arith.constant 3.200000e+01 : f32
    %95 = vector.broadcast %cst_58 : f32 to vector<8x1xf32>
    %96 = arith.divf %94, %95 : vector<8x1xf32>
    %cst_59 = arith.constant 9.99999974E-6 : f32
    %97 = vector.broadcast %cst_59 : f32 to vector<8x1xf32>
    %98 = arith.addf %96, %97 : vector<8x1xf32>
    %99 = math.rsqrt %98 : vector<8x1xf32>
    %100 = vector.broadcast %99 : vector<8x1xf32> to vector<8x32xf32>
    %101 = arith.mulf %91, %100 : vector<8x32xf32>
    %102 = vector.broadcast %84 : vector<1x32xf32> to vector<8x32xf32>
    %103 = arith.mulf %101, %102 : vector<8x32xf32>
    %104 = vector.broadcast %85 : vector<1x32xf32> to vector<8x32xf32>
    %105 = arith.addf %103, %104 : vector<8x32xf32>
    %c0_60 = arith.constant 0 : index
    %c0_61 = arith.constant 0 : index
    %106 = vector.load %arg13[%c0_60, %c0_61] : memref<32x32xf32, #tpu.memory_space<vmem>>, vector<32x32xf32>
    %cst_62 = arith.constant dense<0.000000e+00> : vector<8x32xf32>
    %107 = tpu.matmul %105, %106, %cst_62 {dimension_numbers = #tpu.dot_dimension_numbers<[1], [0], [0], [1], [0, 0, 1, 1], [], []>} : vector<8x32xf32>, vector<32x32xf32>, vector<8x32xf32> -> vector<8x32xf32>
    %c0_63 = arith.constant 0 : index
    %c0_64 = arith.constant 0 : index
    %108 = vector.load %arg14[%c0_63, %c0_64] : memref<1x32xf32, #tpu.memory_space<vmem>>, vector<1x32xf32>
    %109 = vector.broadcast %108 : vector<1x32xf32> to vector<8x32xf32>
    %110 = arith.addf %107, %109 : vector<8x32xf32>
    %c0_65 = arith.constant 0 : index
    %c0_66 = arith.constant 0 : index
    %111 = vector.load %arg17[%c0_65, %c0_66] : memref<32x32xf32, #tpu.memory_space<vmem>>, vector<32x32xf32>
    %c0_67 = arith.constant 0 : index
    %c0_68 = arith.constant 0 : index
    %112 = vector.load %arg18[%c0_67, %c0_68] : memref<1x32xf32, #tpu.memory_space<vmem>>, vector<1x32xf32>
    %113 = vector.extract_strided_slice %110 {offsets = [0, 0], sizes = [8, 8], strides = [1, 1]} : vector<8x32xf32> to vector<8x8xf32>
    %c0_69 = arith.constant 0 : index
    %c0_70 = arith.constant 0 : index
    %114 = vector.load %arg29[%c0_69, %c0_70] : memref<12x64xf32, #tpu.memory_space<vmem>>, vector<12x8xf32>
    %c0_71 = arith.constant 0 : index
    %c32_72 = arith.constant 32 : index
    %115 = vector.load %arg29[%c0_71, %c32_72] : memref<12x64xf32, #tpu.memory_space<vmem>>, vector<12x8xf32>
    %cst_73 = arith.constant dense<0.000000e+00> : vector<8x12xf32>
    %116 = tpu.matmul %113, %114, %cst_73 {dimension_numbers = #tpu.dot_dimension_numbers<[1], [1], [0], [0], [0, 0, 1, 0], [], []>} : vector<8x8xf32>, vector<12x8xf32>, vector<8x12xf32> -> vector<8x12xf32>
    %cst_74 = arith.constant dense<0xFF800000> : vector<8xf32>
    %117 = vector.multi_reduction <maximumf>, %116, %cst_74 [1] : vector<8x12xf32> to vector<8xf32>
    %118 = vector.shape_cast %117 : vector<8xf32> to vector<8x1xf32>
    %119 = vector.broadcast %118 : vector<8x1xf32> to vector<8x12xf32>
    %120 = arith.subf %116, %119 : vector<8x12xf32>
    %121 = math.exp %120 : vector<8x12xf32>
    %cst_75 = arith.constant dense<0.000000e+00> : vector<8xf32>
    %122 = vector.multi_reduction <add>, %121, %cst_75 [1] : vector<8x12xf32> to vector<8xf32>
    %123 = vector.shape_cast %122 : vector<8xf32> to vector<8x1xf32>
    %cst_76 = arith.constant 1.000000e+00 : f32
    %124 = vector.broadcast %cst_76 : f32 to vector<8x1xf32>
    %125 = arith.divf %124, %123 : vector<8x1xf32>
    %126 = vector.broadcast %125 : vector<8x1xf32> to vector<8x12xf32>
    %127 = arith.mulf %121, %126 : vector<8x12xf32>
    %cst_77 = arith.constant dense<0.000000e+00> : vector<8x8xf32>
    %128 = tpu.matmul %127, %115, %cst_77 {dimension_numbers = #tpu.dot_dimension_numbers<[1], [0], [0], [1], [0, 0, 1, 1], [], []>} : vector<8x12xf32>, vector<12x8xf32>, vector<8x8xf32> -> vector<8x8xf32>
    %c0_78 = arith.constant 0 : index
    %c0_79 = arith.constant 0 : index
    %129 = vector.load %arg30[%c0_78, %c0_79] : memref<8x32xf32, #tpu.memory_space<vmem>>, vector<8x8xf32>
    tpu.vector_store %arg30[%c0_78, %c0_79], %128 {strides = array<i32>} : memref<8x32xf32, #tpu.memory_space<vmem>>, vector<8x8xf32>,
    %130 = vector.extract_strided_slice %110 {offsets = [0, 8], sizes = [8, 8], strides = [1, 1]} : vector<8x32xf32> to vector<8x8xf32>
    %c0_80 = arith.constant 0 : index
    %c8_81 = arith.constant 8 : index
    %131 = vector.load %arg29[%c0_80, %c8_81] : memref<12x64xf32, #tpu.memory_space<vmem>>, vector<12x8xf32>
    %c0_82 = arith.constant 0 : index
    %c40_83 = arith.constant 40 : index
    %132 = vector.load %arg29[%c0_82, %c40_83] : memref<12x64xf32, #tpu.memory_space<vmem>>, vector<12x8xf32>
    %cst_84 = arith.constant dense<0.000000e+00> : vector<8x12xf32>
    %133 = tpu.matmul %130, %131, %cst_84 {dimension_numbers = #tpu.dot_dimension_numbers<[1], [1], [0], [0], [0, 0, 1, 0], [], []>} : vector<8x8xf32>, vector<12x8xf32>, vector<8x12xf32> -> vector<8x12xf32>
    %cst_85 = arith.constant dense<0xFF800000> : vector<8xf32>
    %134 = vector.multi_reduction <maximumf>, %133, %cst_85 [1] : vector<8x12xf32> to vector<8xf32>
    %135 = vector.shape_cast %134 : vector<8xf32> to vector<8x1xf32>
    %136 = vector.broadcast %135 : vector<8x1xf32> to vector<8x12xf32>
    %137 = arith.subf %133, %136 : vector<8x12xf32>
    %138 = math.exp %137 : vector<8x12xf32>
    %cst_86 = arith.constant dense<0.000000e+00> : vector<8xf32>
    %139 = vector.multi_reduction <add>, %138, %cst_86 [1] : vector<8x12xf32> to vector<8xf32>
    %140 = vector.shape_cast %139 : vector<8xf32> to vector<8x1xf32>
    %cst_87 = arith.constant 1.000000e+00 : f32
    %141 = vector.broadcast %cst_87 : f32 to vector<8x1xf32>
    %142 = arith.divf %141, %140 : vector<8x1xf32>
    %143 = vector.broadcast %142 : vector<8x1xf32> to vector<8x12xf32>
    %144 = arith.mulf %138, %143 : vector<8x12xf32>
    %cst_88 = arith.constant dense<0.000000e+00> : vector<8x8xf32>
    %145 = tpu.matmul %144, %132, %cst_88 {dimension_numbers = #tpu.dot_dimension_numbers<[1], [0], [0], [1], [0, 0, 1, 1], [], []>} : vector<8x12xf32>, vector<12x8xf32>, vector<8x8xf32> -> vector<8x8xf32>
    %c0_89 = arith.constant 0 : index
    %c8_90 = arith.constant 8 : index
    %146 = vector.load %arg30[%c0_89, %c8_90] : memref<8x32xf32, #tpu.memory_space<vmem>>, vector<8x8xf32>
    tpu.vector_store %arg30[%c0_89, %c8_90], %145 {strides = array<i32>} : memref<8x32xf32, #tpu.memory_space<vmem>>, vector<8x8xf32>,
    %147 = vector.extract_strided_slice %110 {offsets = [0, 16], sizes = [8, 8], strides = [1, 1]} : vector<8x32xf32> to vector<8x8xf32>
    %c0_91 = arith.constant 0 : index
    %c16_92 = arith.constant 16 : index
    %148 = vector.load %arg29[%c0_91, %c16_92] : memref<12x64xf32, #tpu.memory_space<vmem>>, vector<12x8xf32>
    %c0_93 = arith.constant 0 : index
    %c48_94 = arith.constant 48 : index
    %149 = vector.load %arg29[%c0_93, %c48_94] : memref<12x64xf32, #tpu.memory_space<vmem>>, vector<12x8xf32>
    %cst_95 = arith.constant dense<0.000000e+00> : vector<8x12xf32>
    %150 = tpu.matmul %147, %148, %cst_95 {dimension_numbers = #tpu.dot_dimension_numbers<[1], [1], [0], [0], [0, 0, 1, 0], [], []>} : vector<8x8xf32>, vector<12x8xf32>, vector<8x12xf32> -> vector<8x12xf32>
    %cst_96 = arith.constant dense<0xFF800000> : vector<8xf32>
    %151 = vector.multi_reduction <maximumf>, %150, %cst_96 [1] : vector<8x12xf32> to vector<8xf32>
    %152 = vector.shape_cast %151 : vector<8xf32> to vector<8x1xf32>
    %153 = vector.broadcast %152 : vector<8x1xf32> to vector<8x12xf32>
    %154 = arith.subf %150, %153 : vector<8x12xf32>
    %155 = math.exp %154 : vector<8x12xf32>
    %cst_97 = arith.constant dense<0.000000e+00> : vector<8xf32>
    %156 = vector.multi_reduction <add>, %155, %cst_97 [1] : vector<8x12xf32> to vector<8xf32>
    %157 = vector.shape_cast %156 : vector<8xf32> to vector<8x1xf32>
    %cst_98 = arith.constant 1.000000e+00 : f32
    %158 = vector.broadcast %cst_98 : f32 to vector<8x1xf32>
    %159 = arith.divf %158, %157 : vector<8x1xf32>
    %160 = vector.broadcast %159 : vector<8x1xf32> to vector<8x12xf32>
    %161 = arith.mulf %155, %160 : vector<8x12xf32>
    %cst_99 = arith.constant dense<0.000000e+00> : vector<8x8xf32>
    %162 = tpu.matmul %161, %149, %cst_99 {dimension_numbers = #tpu.dot_dimension_numbers<[1], [0], [0], [1], [0, 0, 1, 1], [], []>} : vector<8x12xf32>, vector<12x8xf32>, vector<8x8xf32> -> vector<8x8xf32>
    %c0_100 = arith.constant 0 : index
    %c16_101 = arith.constant 16 : index
    %163 = vector.load %arg30[%c0_100, %c16_101] : memref<8x32xf32, #tpu.memory_space<vmem>>, vector<8x8xf32>
    tpu.vector_store %arg30[%c0_100, %c16_101], %162 {strides = array<i32>} : memref<8x32xf32, #tpu.memory_space<vmem>>, vector<8x8xf32>,
    %164 = vector.extract_strided_slice %110 {offsets = [0, 24], sizes = [8, 8], strides = [1, 1]} : vector<8x32xf32> to vector<8x8xf32>
    %c0_102 = arith.constant 0 : index
    %c24_103 = arith.constant 24 : index
    %165 = vector.load %arg29[%c0_102, %c24_103] : memref<12x64xf32, #tpu.memory_space<vmem>>, vector<12x8xf32>
    %c0_104 = arith.constant 0 : index
    %c56_105 = arith.constant 56 : index
    %166 = vector.load %arg29[%c0_104, %c56_105] : memref<12x64xf32, #tpu.memory_space<vmem>>, vector<12x8xf32>
    %cst_106 = arith.constant dense<0.000000e+00> : vector<8x12xf32>
    %167 = tpu.matmul %164, %165, %cst_106 {dimension_numbers = #tpu.dot_dimension_numbers<[1], [1], [0], [0], [0, 0, 1, 0], [], []>} : vector<8x8xf32>, vector<12x8xf32>, vector<8x12xf32> -> vector<8x12xf32>
    %cst_107 = arith.constant dense<0xFF800000> : vector<8xf32>
    %168 = vector.multi_reduction <maximumf>, %167, %cst_107 [1] : vector<8x12xf32> to vector<8xf32>
    %169 = vector.shape_cast %168 : vector<8xf32> to vector<8x1xf32>
    %170 = vector.broadcast %169 : vector<8x1xf32> to vector<8x12xf32>
    %171 = arith.subf %167, %170 : vector<8x12xf32>
    %172 = math.exp %171 : vector<8x12xf32>
    %cst_108 = arith.constant dense<0.000000e+00> : vector<8xf32>
    %173 = vector.multi_reduction <add>, %172, %cst_108 [1] : vector<8x12xf32> to vector<8xf32>
    %174 = vector.shape_cast %173 : vector<8xf32> to vector<8x1xf32>
    %cst_109 = arith.constant 1.000000e+00 : f32
    %175 = vector.broadcast %cst_109 : f32 to vector<8x1xf32>
    %176 = arith.divf %175, %174 : vector<8x1xf32>
    %177 = vector.broadcast %176 : vector<8x1xf32> to vector<8x12xf32>
    %178 = arith.mulf %172, %177 : vector<8x12xf32>
    %cst_110 = arith.constant dense<0.000000e+00> : vector<8x8xf32>
    %179 = tpu.matmul %178, %166, %cst_110 {dimension_numbers = #tpu.dot_dimension_numbers<[1], [0], [0], [1], [0, 0, 1, 1], [], []>} : vector<8x12xf32>, vector<12x8xf32>, vector<8x8xf32> -> vector<8x8xf32>
    %c0_111 = arith.constant 0 : index
    %c24_112 = arith.constant 24 : index
    %180 = vector.load %arg30[%c0_111, %c24_112] : memref<8x32xf32, #tpu.memory_space<vmem>>, vector<8x8xf32>
    tpu.vector_store %arg30[%c0_111, %c24_112], %179 {strides = array<i32>} : memref<8x32xf32, #tpu.memory_space<vmem>>, vector<8x8xf32>,
    %c0_113 = arith.constant 0 : index
    %c0_114 = arith.constant 0 : index
    %181 = vector.load %arg30[%c0_113, %c0_114] : memref<8x32xf32, #tpu.memory_space<vmem>>, vector<8x32xf32>
    %cst_115 = arith.constant dense<0.000000e+00> : vector<8x32xf32>
    %182 = tpu.matmul %181, %111, %cst_115 {dimension_numbers = #tpu.dot_dimension_numbers<[1], [0], [0], [1], [0, 0, 1, 1], [], []>} : vector<8x32xf32>, vector<32x32xf32>, vector<8x32xf32> -> vector<8x32xf32>
    %183 = vector.broadcast %112 : vector<1x32xf32> to vector<8x32xf32>
    %184 = arith.addf %182, %183 : vector<8x32xf32>
    %c0_116 = arith.constant 0 : index
    %c0_117 = arith.constant 0 : index
    %185 = vector.load %arg19[%c0_116, %c0_117] : memref<1x32xf32, #tpu.memory_space<vmem>>, vector<1x32xf32>
    %c0_118 = arith.constant 0 : index
    %c0_119 = arith.constant 0 : index
    %186 = vector.load %arg20[%c0_118, %c0_119] : memref<1x32xf32, #tpu.memory_space<vmem>>, vector<1x32xf32>
    %cst_120 = arith.constant dense<0.000000e+00> : vector<8xf32>
    %187 = vector.multi_reduction <add>, %184, %cst_120 [1] : vector<8x32xf32> to vector<8xf32>
    %188 = vector.shape_cast %187 : vector<8xf32> to vector<8x1xf32>
    %cst_121 = arith.constant 3.200000e+01 : f32
    %189 = vector.broadcast %cst_121 : f32 to vector<8x1xf32>
    %190 = arith.divf %188, %189 : vector<8x1xf32>
    %191 = vector.broadcast %190 : vector<8x1xf32> to vector<8x32xf32>
    %192 = arith.subf %184, %191 : vector<8x32xf32>
    %193 = arith.mulf %192, %192 : vector<8x32xf32>
    %cst_122 = arith.constant dense<0.000000e+00> : vector<8xf32>
    %194 = vector.multi_reduction <add>, %193, %cst_122 [1] : vector<8x32xf32> to vector<8xf32>
    %195 = vector.shape_cast %194 : vector<8xf32> to vector<8x1xf32>
    %cst_123 = arith.constant 3.200000e+01 : f32
    %196 = vector.broadcast %cst_123 : f32 to vector<8x1xf32>
    %197 = arith.divf %195, %196 : vector<8x1xf32>
    %cst_124 = arith.constant 9.99999974E-6 : f32
    %198 = vector.broadcast %cst_124 : f32 to vector<8x1xf32>
    %199 = arith.addf %197, %198 : vector<8x1xf32>
    %200 = math.rsqrt %199 : vector<8x1xf32>
    %201 = vector.broadcast %200 : vector<8x1xf32> to vector<8x32xf32>
    %202 = arith.mulf %192, %201 : vector<8x32xf32>
    %203 = vector.broadcast %185 : vector<1x32xf32> to vector<8x32xf32>
    %204 = arith.mulf %202, %203 : vector<8x32xf32>
    %205 = vector.broadcast %186 : vector<1x32xf32> to vector<8x32xf32>
    %206 = arith.addf %204, %205 : vector<8x32xf32>
    %c0_125 = arith.constant 0 : index
    %c0_126 = arith.constant 0 : index
    %207 = vector.load %arg21[%c0_125, %c0_126] : memref<32x32xf32, #tpu.memory_space<vmem>>, vector<32x32xf32>
    %cst_127 = arith.constant dense<0.000000e+00> : vector<8x32xf32>
    %208 = tpu.matmul %206, %207, %cst_127 {dimension_numbers = #tpu.dot_dimension_numbers<[1], [0], [0], [1], [0, 0, 1, 1], [], []>} : vector<8x32xf32>, vector<32x32xf32>, vector<8x32xf32> -> vector<8x32xf32>
    %c0_128 = arith.constant 0 : index
    %c0_129 = arith.constant 0 : index
    %209 = vector.load %arg22[%c0_128, %c0_129] : memref<1x32xf32, #tpu.memory_space<vmem>>, vector<1x32xf32>
    %210 = vector.broadcast %209 : vector<1x32xf32> to vector<8x32xf32>
    %211 = arith.addf %208, %210 : vector<8x32xf32>
    %cst_130 = arith.constant 0.000000e+00 : f32
    %212 = vector.broadcast %cst_130 : f32 to vector<8x32xf32>
    %213 = arith.maximumf %211, %212 : vector<8x32xf32>
    %c0_131 = arith.constant 0 : index
    %c0_132 = arith.constant 0 : index
    %214 = vector.load %arg23[%c0_131, %c0_132] : memref<32x32xf32, #tpu.memory_space<vmem>>, vector<32x32xf32>
    %cst_133 = arith.constant dense<0.000000e+00> : vector<8x32xf32>
    %215 = tpu.matmul %213, %214, %cst_133 {dimension_numbers = #tpu.dot_dimension_numbers<[1], [0], [0], [1], [0, 0, 1, 1], [], []>} : vector<8x32xf32>, vector<32x32xf32>, vector<8x32xf32> -> vector<8x32xf32>
    %c0_134 = arith.constant 0 : index
    %c0_135 = arith.constant 0 : index
    %216 = vector.load %arg24[%c0_134, %c0_135] : memref<1x32xf32, #tpu.memory_space<vmem>>, vector<1x32xf32>
    %217 = vector.broadcast %216 : vector<1x32xf32> to vector<8x32xf32>
    %218 = arith.addf %215, %217 : vector<8x32xf32>
    %c0_136 = arith.constant 0 : index
    %c0_137 = arith.constant 0 : index
    %219 = vector.load %arg25[%c0_136, %c0_137] : memref<1x32xf32, #tpu.memory_space<vmem>>, vector<1x32xf32>
    %c0_138 = arith.constant 0 : index
    %c0_139 = arith.constant 0 : index
    %220 = vector.load %arg26[%c0_138, %c0_139] : memref<1x32xf32, #tpu.memory_space<vmem>>, vector<1x32xf32>
    %cst_140 = arith.constant dense<0.000000e+00> : vector<8xf32>
    %221 = vector.multi_reduction <add>, %218, %cst_140 [1] : vector<8x32xf32> to vector<8xf32>
    %222 = vector.shape_cast %221 : vector<8xf32> to vector<8x1xf32>
    %cst_141 = arith.constant 3.200000e+01 : f32
    %223 = vector.broadcast %cst_141 : f32 to vector<8x1xf32>
    %224 = arith.divf %222, %223 : vector<8x1xf32>
    %225 = vector.broadcast %224 : vector<8x1xf32> to vector<8x32xf32>
    %226 = arith.subf %218, %225 : vector<8x32xf32>
    %227 = arith.mulf %226, %226 : vector<8x32xf32>
    %cst_142 = arith.constant dense<0.000000e+00> : vector<8xf32>
    %228 = vector.multi_reduction <add>, %227, %cst_142 [1] : vector<8x32xf32> to vector<8xf32>
    %229 = vector.shape_cast %228 : vector<8xf32> to vector<8x1xf32>
    %cst_143 = arith.constant 3.200000e+01 : f32
    %230 = vector.broadcast %cst_143 : f32 to vector<8x1xf32>
    %231 = arith.divf %229, %230 : vector<8x1xf32>
    %cst_144 = arith.constant 9.99999974E-6 : f32
    %232 = vector.broadcast %cst_144 : f32 to vector<8x1xf32>
    %233 = arith.addf %231, %232 : vector<8x1xf32>
    %234 = math.rsqrt %233 : vector<8x1xf32>
    %235 = vector.broadcast %234 : vector<8x1xf32> to vector<8x32xf32>
    %236 = arith.mulf %226, %235 : vector<8x32xf32>
    %237 = vector.broadcast %219 : vector<1x32xf32> to vector<8x32xf32>
    %238 = arith.mulf %236, %237 : vector<8x32xf32>
    %239 = vector.broadcast %220 : vector<1x32xf32> to vector<8x32xf32>
    %240 = arith.addf %238, %239 : vector<8x32xf32>
    %c0_145 = arith.constant 0 : index
    %c0_146 = arith.constant 0 : index
    %c0_147 = arith.constant 0 : index
    %241 = vector.load %arg27[%c0_145, %c0_146, %c0_147] : memref<1x8x32xf32, #tpu.memory_space<vmem>>, vector<1x8x32xf32>
    %242 = vector.shape_cast %241 : vector<1x8x32xf32> to vector<8x32xf32>
    %243 = vector.shape_cast %240 : vector<8x32xf32> to vector<1x8x32xf32>
    tpu.vector_store %arg27[%c0_145, %c0_146, %c0_147], %243 {strides = array<i32>} : memref<1x8x32xf32, #tpu.memory_space<vmem>>, vector<1x8x32xf32>,
    return
  }
  func.func @transform_0(%arg0: i32, %arg1: i32) -> (i32, i32, i32) {
    %c0_i32 = arith.constant 0 : i32
    %c0_i32_0 = arith.constant 0 : i32
    return %arg0, %arg1, %c0_i32 : i32, i32, i32
  }
  func.func @transform_1(%arg0: i32, %arg1: i32) -> (i32, i32, i32) {
    %c0_i32 = arith.constant 0 : i32
    %c0_i32_0 = arith.constant 0 : i32
    %c0_i32_1 = arith.constant 0 : i32
    return %arg0, %c0_i32, %c0_i32_0 : i32, i32, i32
  }
  func.func @transform_2(%arg0: i32, %arg1: i32) -> (i32, i32, i32) {
    %c0_i32 = arith.constant 0 : i32
    %c0_i32_0 = arith.constant 0 : i32
    %c0_i32_1 = arith.constant 0 : i32
    return %arg0, %c0_i32, %c0_i32_0 : i32, i32, i32
  }
  func.func @transform_3(%arg0: i32, %arg1: i32) -> (i32, i32) {
    %c0_i32 = arith.constant 0 : i32
    %c0_i32_0 = arith.constant 0 : i32
    %c0_i32_1 = arith.constant 0 : i32
    return %c0_i32, %c0_i32_0 : i32, i32
  }
  func.func @transform_4(%arg0: i32, %arg1: i32) -> (i32, i32) {
    %c0_i32 = arith.constant 0 : i32
    %c0_i32_0 = arith.constant 0 : i32
    %c0_i32_1 = arith.constant 0 : i32
    return %c0_i32, %c0_i32_0 : i32, i32
  }
  func.func @transform_5(%arg0: i32, %arg1: i32) -> (i32, i32) {
    %c0_i32 = arith.constant 0 : i32
    %c0_i32_0 = arith.constant 0 : i32
    %c0_i32_1 = arith.constant 0 : i32
    return %c0_i32, %c0_i32_0 : i32, i32
  }
  func.func @transform_6(%arg0: i32, %arg1: i32) -> (i32, i32) {
    %c0_i32 = arith.constant 0 : i32
    %c0_i32_0 = arith.constant 0 : i32
    %c0_i32_1 = arith.constant 0 : i32
    return %c0_i32, %c0_i32_0 : i32, i32
  }
  func.func @transform_7(%arg0: i32, %arg1: i32) -> (i32, i32) {
    %c0_i32 = arith.constant 0 : i32
    %c0_i32_0 = arith.constant 0 : i32
    %c0_i32_1 = arith.constant 0 : i32
    return %c0_i32, %c0_i32_0 : i32, i32
  }
  func.func @transform_8(%arg0: i32, %arg1: i32) -> (i32, i32) {
    %c0_i32 = arith.constant 0 : i32
    %c0_i32_0 = arith.constant 0 : i32
    %c0_i32_1 = arith.constant 0 : i32
    return %c0_i32, %c0_i32_0 : i32, i32
  }
  func.func @transform_9(%arg0: i32, %arg1: i32) -> (i32, i32) {
    %c0_i32 = arith.constant 0 : i32
    %c0_i32_0 = arith.constant 0 : i32
    %c0_i32_1 = arith.constant 0 : i32
    return %c0_i32, %c0_i32_0 : i32, i32
  }
  func.func @transform_10(%arg0: i32, %arg1: i32) -> (i32, i32) {
    %c0_i32 = arith.constant 0 : i32
    %c0_i32_0 = arith.constant 0 : i32
    %c0_i32_1 = arith.constant 0 : i32
    return %c0_i32, %c0_i32_0 : i32, i32
  }
  func.func @transform_11(%arg0: i32, %arg1: i32) -> (i32, i32) {
    %c0_i32 = arith.constant 0 : i32
    %c0_i32_0 = arith.constant 0 : i32
    %c0_i32_1 = arith.constant 0 : i32
    return %c0_i32, %c0_i32_0 : i32, i32
  }
  func.func @transform_12(%arg0: i32, %arg1: i32) -> (i32, i32) {
    %c0_i32 = arith.constant 0 : i32
    %c0_i32_0 = arith.constant 0 : i32
    %c0_i32_1 = arith.constant 0 : i32
    return %c0_i32, %c0_i32_0 : i32, i32
  }
  func.func @transform_13(%arg0: i32, %arg1: i32) -> (i32, i32) {
    %c0_i32 = arith.constant 0 : i32
    %c0_i32_0 = arith.constant 0 : i32
    %c0_i32_1 = arith.constant 0 : i32
    return %c0_i32, %c0_i32_0 : i32, i32
  }
  func.func @transform_14(%arg0: i32, %arg1: i32) -> (i32, i32) {
    %c0_i32 = arith.constant 0 : i32
    %c0_i32_0 = arith.constant 0 : i32
    %c0_i32_1 = arith.constant 0 : i32
    return %c0_i32, %c0_i32_0 : i32, i32
  }
  func.func @transform_15(%arg0: i32, %arg1: i32) -> (i32, i32) {
    %c0_i32 = arith.constant 0 : i32
    %c0_i32_0 = arith.constant 0 : i32
    %c0_i32_1 = arith.constant 0 : i32
    return %c0_i32, %c0_i32_0 : i32, i32
  }
  func.func @transform_16(%arg0: i32, %arg1: i32) -> (i32, i32) {
    %c0_i32 = arith.constant 0 : i32
    %c0_i32_0 = arith.constant 0 : i32
    %c0_i32_1 = arith.constant 0 : i32
    return %c0_i32, %c0_i32_0 : i32, i32
  }
  func.func @transform_17(%arg0: i32, %arg1: i32) -> (i32, i32) {
    %c0_i32 = arith.constant 0 : i32
    %c0_i32_0 = arith.constant 0 : i32
    %c0_i32_1 = arith.constant 0 : i32
    return %c0_i32, %c0_i32_0 : i32, i32
  }
  func.func @transform_18(%arg0: i32, %arg1: i32) -> (i32, i32) {
    %c0_i32 = arith.constant 0 : i32
    %c0_i32_0 = arith.constant 0 : i32
    %c0_i32_1 = arith.constant 0 : i32
    return %c0_i32, %c0_i32_0 : i32, i32
  }
  func.func @transform_19(%arg0: i32, %arg1: i32) -> (i32, i32) {
    %c0_i32 = arith.constant 0 : i32
    %c0_i32_0 = arith.constant 0 : i32
    %c0_i32_1 = arith.constant 0 : i32
    return %c0_i32, %c0_i32_0 : i32, i32
  }
  func.func @transform_20(%arg0: i32, %arg1: i32) -> (i32, i32) {
    %c0_i32 = arith.constant 0 : i32
    %c0_i32_0 = arith.constant 0 : i32
    %c0_i32_1 = arith.constant 0 : i32
    return %c0_i32, %c0_i32_0 : i32, i32
  }
  func.func @transform_21(%arg0: i32, %arg1: i32) -> (i32, i32) {
    %c0_i32 = arith.constant 0 : i32
    %c0_i32_0 = arith.constant 0 : i32
    %c0_i32_1 = arith.constant 0 : i32
    return %c0_i32, %c0_i32_0 : i32, i32
  }
  func.func @transform_22(%arg0: i32, %arg1: i32) -> (i32, i32) {
    %c0_i32 = arith.constant 0 : i32
    %c0_i32_0 = arith.constant 0 : i32
    %c0_i32_1 = arith.constant 0 : i32
    return %c0_i32, %c0_i32_0 : i32, i32
  }
  func.func @transform_23(%arg0: i32, %arg1: i32) -> (i32, i32) {
    %c0_i32 = arith.constant 0 : i32
    %c0_i32_0 = arith.constant 0 : i32
    %c0_i32_1 = arith.constant 0 : i32
    return %c0_i32, %c0_i32_0 : i32, i32
  }
  func.func @transform_24(%arg0: i32, %arg1: i32) -> (i32, i32) {
    %c0_i32 = arith.constant 0 : i32
    %c0_i32_0 = arith.constant 0 : i32
    %c0_i32_1 = arith.constant 0 : i32
    return %c0_i32, %c0_i32_0 : i32, i32
  }
  func.func @transform_25(%arg0: i32, %arg1: i32) -> (i32, i32, i32) {
    %c0_i32 = arith.constant 0 : i32
    %c0_i32_0 = arith.constant 0 : i32
    return %arg0, %arg1, %c0_i32 : i32, i32, i32
  }
}

module attributes {stable_mosaic.version = 11 : i64} {
  func.func @tdb_kernel(%arg0: i32, %arg1: i32, %arg2: memref<1x8x32xf32, #tpu.memory_space<vmem>>, %arg3: memref<1x8x32xf32, #tpu.memory_space<vmem>>, %arg4: memref<1x12x32xf32, #tpu.memory_space<vmem>>, %arg5: memref<32x32xf32, #tpu.memory_space<vmem>>, %arg6: memref<1x32xf32, #tpu.memory_space<vmem>>, %arg7: memref<32x64xf32, #tpu.memory_space<vmem>>, %arg8: memref<1x64xf32, #tpu.memory_space<vmem>>, %arg9: memref<32x32xf32, #tpu.memory_space<vmem>>, %arg10: memref<1x32xf32, #tpu.memory_space<vmem>>, %arg11: memref<1x32xf32, #tpu.memory_space<vmem>>, %arg12: memref<1x32xf32, #tpu.memory_space<vmem>>, %arg13: memref<32x32xf32, #tpu.memory_space<vmem>>, %arg14: memref<1x32xf32, #tpu.memory_space<vmem>>, %arg15: memref<32x64xf32, #tpu.memory_space<vmem>>, %arg16: memref<1x64xf32, #tpu.memory_space<vmem>>, %arg17: memref<32x32xf32, #tpu.memory_space<vmem>>, %arg18: memref<1x32xf32, #tpu.memory_space<vmem>>, %arg19: memref<1x32xf32, #tpu.memory_space<vmem>>, %arg20: memref<1x32xf32, #tpu.memory_space<vmem>>, %arg21: memref<32x32xf32, #tpu.memory_space<vmem>>, %arg22: memref<1x32xf32, #tpu.memory_space<vmem>>, %arg23: memref<32x32xf32, #tpu.memory_space<vmem>>, %arg24: memref<1x32xf32, #tpu.memory_space<vmem>>, %arg25: memref<1x32xf32, #tpu.memory_space<vmem>>, %arg26: memref<1x32xf32, #tpu.memory_space<vmem>>, %arg27: memref<1x8x32xf32, #tpu.memory_space<vmem>>, %arg28: memref<8x64xf32, #tpu.memory_space<vmem>>, %arg29: memref<12x64xf32, #tpu.memory_space<vmem>>, %arg30: memref<8x32xf32, #tpu.memory_space<vmem>>) attributes {dimension_semantics = [#tpu.dimension_semantics<parallel>, #tpu.dimension_semantics<arbitrary>], iteration_bounds = array<i64: 2, 1>, scalar_prefetch = 0 : i64, scratch_operands = 3 : i64, tpu.core_type = #tpu.core_type<tc>, window_params = [{transform_indices = @transform_0, window_bounds = array<i64: 1, 8, 32>}, {transform_indices = @transform_1, window_bounds = array<i64: 1, 8, 32>}, {transform_indices = @transform_2, window_bounds = array<i64: 1, 12, 32>}, {pipeline_mode = #tpu.pipeline_mode<synchronous>, transform_indices = @transform_3, window_bounds = array<i64: 32, 32>}, {pipeline_mode = #tpu.pipeline_mode<synchronous>, transform_indices = @transform_4, window_bounds = array<i64: 1, 32>}, {pipeline_mode = #tpu.pipeline_mode<synchronous>, transform_indices = @transform_5, window_bounds = array<i64: 32, 64>}, {pipeline_mode = #tpu.pipeline_mode<synchronous>, transform_indices = @transform_6, window_bounds = array<i64: 1, 64>}, {pipeline_mode = #tpu.pipeline_mode<synchronous>, transform_indices = @transform_7, window_bounds = array<i64: 32, 32>}, {pipeline_mode = #tpu.pipeline_mode<synchronous>, transform_indices = @transform_8, window_bounds = array<i64: 1, 32>}, {pipeline_mode = #tpu.pipeline_mode<synchronous>, transform_indices = @transform_9, window_bounds = array<i64: 1, 32>}, {pipeline_mode = #tpu.pipeline_mode<synchronous>, transform_indices = @transform_10, window_bounds = array<i64: 1, 32>}, {pipeline_mode = #tpu.pipeline_mode<synchronous>, transform_indices = @transform_11, window_bounds = array<i64: 32, 32>}, {pipeline_mode = #tpu.pipeline_mode<synchronous>, transform_indices = @transform_12, window_bounds = array<i64: 1, 32>}, {pipeline_mode = #tpu.pipeline_mode<synchronous>, transform_indices = @transform_13, window_bounds = array<i64: 32, 64>}, {pipeline_mode = #tpu.pipeline_mode<synchronous>, transform_indices = @transform_14, window_bounds = array<i64: 1, 64>}, {pipeline_mode = #tpu.pipeline_mode<synchronous>, transform_indices = @transform_15, window_bounds = array<i64: 32, 32>}, {pipeline_mode = #tpu.pipeline_mode<synchronous>, transform_indices = @transform_16, window_bounds = array<i64: 1, 32>}, {pipeline_mode = #tpu.pipeline_mode<synchronous>, transform_indices = @transform_17, window_bounds = array<i64: 1, 32>}, {pipeline_mode = #tpu.pipeline_mode<synchronous>, transform_indices = @transform_18, window_bounds = array<i64: 1, 32>}, {pipeline_mode = #tpu.pipeline_mode<synchronous>, transform_indices = @transform_19, window_bounds = array<i64: 32, 32>}, {pipeline_mode = #tpu.pipeline_mode<synchronous>, transform_indices = @transform_20, window_bounds = array<i64: 1, 32>}, {pipeline_mode = #tpu.pipeline_mode<synchronous>, transform_indices = @transform_21, window_bounds = array<i64: 32, 32>}, {pipeline_mode = #tpu.pipeline_mode<synchronous>, transform_indices = @transform_22, window_bounds = array<i64: 1, 32>}, {pipeline_mode = #tpu.pipeline_mode<synchronous>, transform_indices = @transform_23, window_bounds = array<i64: 1, 32>}, {pipeline_mode = #tpu.pipeline_mode<synchronous>, transform_indices = @transform_24, window_bounds = array<i64: 1, 32>}, {transform_indices = @transform_25, window_bounds = array<i64: 1, 8, 32>}]} {
    %c0_i32 = arith.constant 0 : i32
    %0 = arith.cmpi eq, %arg1, %c0_i32 : i32
    %1 = arith.extui %0 : i1 to i32
    %c0_i32_0 = arith.constant 0 : i32
    %2 = arith.cmpi ne, %1, %c0_i32_0 : i32
    scf.if %2 {
      %c0_148 = arith.constant 0 : index
      %c0_149 = arith.constant 0 : index
      %c0_150 = arith.constant 0 : index
      %244 = vector.load %arg3[%c0_148, %c0_149, %c0_150] : memref<1x8x32xf32, #tpu.memory_space<vmem>>, vector<1x8x32xf32>
      %245 = vector.shape_cast %244 : vector<1x8x32xf32> to vector<8x32xf32>
      %c0_151 = arith.constant 0 : index
      %c0_152 = arith.constant 0 : index
      %246 = vector.load %arg7[%c0_151, %c0_152] : memref<32x64xf32, #tpu.memory_space<vmem>>, vector<32x64xf32>
      %cst_153 = arith.constant dense<0.000000e+00> : vector<8x64xf32>
      %247 = tpu.matmul %245, %246, %cst_153 {dimension_numbers = #tpu.dot_dimension_numbers<[1], [0], [0], [1], [0, 0, 1, 1], [], []>} : vector<8x32xf32>, vector<32x64xf32>, vector<8x64xf32> -> vector<8x64xf32>
      %c0_154 = arith.constant 0 : index
      %c0_155 = arith.constant 0 : index
      %248 = vector.load %arg8[%c0_154, %c0_155] : memref<1x64xf32, #tpu.memory_space<vmem>>, vector<1x64xf32>
      %249 = vector.broadcast %248 : vector<1x64xf32> to vector<8x64xf32>
      %250 = arith.addf %247, %249 : vector<8x64xf32>
      %c0_156 = arith.constant 0 : index
      %c0_157 = arith.constant 0 : index
      %251 = vector.load %arg28[%c0_156, %c0_157] : memref<8x64xf32, #tpu.memory_space<vmem>>, vector<8x64xf32>
      tpu.vector_store %arg28[%c0_156, %c0_157], %250 {strides = array<i32>} : memref<8x64xf32, #tpu.memory_space<vmem>>, vector<8x64xf32>,
      %c0_158 = arith.constant 0 : index
      %c0_159 = arith.constant 0 : index
      %c0_160 = arith.constant 0 : index
      %252 = vector.load %arg4[%c0_158, %c0_159, %c0_160] : memref<1x12x32xf32, #tpu.memory_space<vmem>>, vector<1x12x32xf32>
      %253 = vector.shape_cast %252 : vector<1x12x32xf32> to vector<12x32xf32>
      %c0_161 = arith.constant 0 : index
      %c0_162 = arith.constant 0 : index
      %254 = vector.load %arg15[%c0_161, %c0_162] : memref<32x64xf32, #tpu.memory_space<vmem>>, vector<32x64xf32>
      %cst_163 = arith.constant dense<0.000000e+00> : vector<12x64xf32>
      %255 = tpu.matmul %253, %254, %cst_163 {dimension_numbers = #tpu.dot_dimension_numbers<[1], [0], [0], [1], [0, 0, 1, 1], [], []>} : vector<12x32xf32>, vector<32x64xf32>, vector<12x64xf32> -> vector<12x64xf32>
      %c0_164 = arith.constant 0 : index
      %c0_165 = arith.constant 0 : index
      %256 = vector.load %arg16[%c0_164, %c0_165] : memref<1x64xf32, #tpu.memory_space<vmem>>, vector<1x64xf32>
      %257 = vector.broadcast %256 : vector<1x64xf32> to vector<12x64xf32>
      %258 = arith.addf %255, %257 : vector<12x64xf32>
      %c0_166 = arith.constant 0 : index
      %c0_167 = arith.constant 0 : index
      %259 = vector.load %arg29[%c0_166, %c0_167] : memref<12x64xf32, #tpu.memory_space<vmem>>, vector<12x64xf32>
      tpu.vector_store %arg29[%c0_166, %c0_167], %258 {strides = array<i32>} : memref<12x64xf32, #tpu.memory_space<vmem>>, vector<12x64xf32>,
    } else {
    }
    %c0 = arith.constant 0 : index
    %c0_1 = arith.constant 0 : index
    %c0_2 = arith.constant 0 : index
    %3 = vector.load %arg2[%c0, %c0_1, %c0_2] : memref<1x8x32xf32, #tpu.memory_space<vmem>>, vector<1x8x32xf32>
    %4 = vector.shape_cast %3 : vector<1x8x32xf32> to vector<8x32xf32>
    %c0_3 = arith.constant 0 : index
    %c0_4 = arith.constant 0 : index
    %5 = vector.load %arg5[%c0_3, %c0_4] : memref<32x32xf32, #tpu.memory_space<vmem>>, vector<32x32xf32>
    %cst = arith.constant dense<0.000000e+00> : vector<8x32xf32>
    %6 = tpu.matmul %4, %5, %cst {dimension_numbers = #tpu.dot_dimension_numbers<[1], [0], [0], [1], [0, 0, 1, 1], [], []>} : vector<8x32xf32>, vector<32x32xf32>, vector<8x32xf32> -> vector<8x32xf32>
    %c0_5 = arith.constant 0 : index
    %c0_6 = arith.constant 0 : index
    %7 = vector.load %arg6[%c0_5, %c0_6] : memref<1x32xf32, #tpu.memory_space<vmem>>, vector<1x32xf32>
    %8 = vector.broadcast %7 : vector<1x32xf32> to vector<8x32xf32>
    %9 = arith.addf %6, %8 : vector<8x32xf32>
    %c0_7 = arith.constant 0 : index
    %c0_8 = arith.constant 0 : index
    %10 = vector.load %arg9[%c0_7, %c0_8] : memref<32x32xf32, #tpu.memory_space<vmem>>, vector<32x32xf32>
    %c0_9 = arith.constant 0 : index
    %c0_10 = arith.constant 0 : index
    %11 = vector.load %arg10[%c0_9, %c0_10] : memref<1x32xf32, #tpu.memory_space<vmem>>, vector<1x32xf32>
    %12 = vector.extract_strided_slice %9 {offsets = [0, 0], sizes = [8, 8], strides = [1, 1]} : vector<8x32xf32> to vector<8x8xf32>
    %c0_11 = arith.constant 0 : index
    %c0_12 = arith.constant 0 : index
    %13 = vector.load %arg28[%c0_11, %c0_12] : memref<8x64xf32, #tpu.memory_space<vmem>>, vector<8x8xf32>
    %c0_13 = arith.constant 0 : index
    %c32 = arith.constant 32 : index
    %14 = vector.load %arg28[%c0_13, %c32] : memref<8x64xf32, #tpu.memory_space<vmem>>, vector<8x8xf32>
    %cst_14 = arith.constant dense<0.000000e+00> : vector<8x8xf32>
    %15 = tpu.matmul %12, %13, %cst_14 {dimension_numbers = #tpu.dot_dimension_numbers<[1], [1], [0], [0], [0, 0, 1, 0], [], []>} : vector<8x8xf32>, vector<8x8xf32>, vector<8x8xf32> -> vector<8x8xf32>
    %cst_15 = arith.constant dense<0xFF800000> : vector<8xf32>
    %16 = vector.multi_reduction <maximumf>, %15, %cst_15 [1] : vector<8x8xf32> to vector<8xf32>
    %17 = vector.shape_cast %16 : vector<8xf32> to vector<8x1xf32>
    %18 = vector.broadcast %17 : vector<8x1xf32> to vector<8x8xf32>
    %19 = arith.subf %15, %18 : vector<8x8xf32>
    %20 = math.exp %19 : vector<8x8xf32>
    %cst_16 = arith.constant dense<0.000000e+00> : vector<8xf32>
    %21 = vector.multi_reduction <add>, %20, %cst_16 [1] : vector<8x8xf32> to vector<8xf32>
    %22 = vector.shape_cast %21 : vector<8xf32> to vector<8x1xf32>
    %cst_17 = arith.constant 1.000000e+00 : f32
    %23 = vector.broadcast %cst_17 : f32 to vector<8x1xf32>
    %24 = arith.divf %23, %22 : vector<8x1xf32>
    %25 = vector.broadcast %24 : vector<8x1xf32> to vector<8x8xf32>
    %26 = arith.mulf %20, %25 : vector<8x8xf32>
    %cst_18 = arith.constant dense<0.000000e+00> : vector<8x8xf32>
    %27 = tpu.matmul %26, %14, %cst_18 {dimension_numbers = #tpu.dot_dimension_numbers<[1], [0], [0], [1], [0, 0, 1, 1], [], []>} : vector<8x8xf32>, vector<8x8xf32>, vector<8x8xf32> -> vector<8x8xf32>
    %c0_19 = arith.constant 0 : index
    %c0_20 = arith.constant 0 : index
    %28 = vector.load %arg30[%c0_19, %c0_20] : memref<8x32xf32, #tpu.memory_space<vmem>>, vector<8x8xf32>
    tpu.vector_store %arg30[%c0_19, %c0_20], %27 {strides = array<i32>} : memref<8x32xf32, #tpu.memory_space<vmem>>, vector<8x8xf32>,
    %29 = vector.extract_strided_slice %9 {offsets = [0, 8], sizes = [8, 8], strides = [1, 1]} : vector<8x32xf32> to vector<8x8xf32>
    %c0_21 = arith.constant 0 : index
    %c8 = arith.constant 8 : index
    %30 = vector.load %arg28[%c0_21, %c8] : memref<8x64xf32, #tpu.memory_space<vmem>>, vector<8x8xf32>
    %c0_22 = arith.constant 0 : index
    %c40 = arith.constant 40 : index
    %31 = vector.load %arg28[%c0_22, %c40] : memref<8x64xf32, #tpu.memory_space<vmem>>, vector<8x8xf32>
    %cst_23 = arith.constant dense<0.000000e+00> : vector<8x8xf32>
    %32 = tpu.matmul %29, %30, %cst_23 {dimension_numbers = #tpu.dot_dimension_numbers<[1], [1], [0], [0], [0, 0, 1, 0], [], []>} : vector<8x8xf32>, vector<8x8xf32>, vector<8x8xf32> -> vector<8x8xf32>
    %cst_24 = arith.constant dense<0xFF800000> : vector<8xf32>
    %33 = vector.multi_reduction <maximumf>, %32, %cst_24 [1] : vector<8x8xf32> to vector<8xf32>
    %34 = vector.shape_cast %33 : vector<8xf32> to vector<8x1xf32>
    %35 = vector.broadcast %34 : vector<8x1xf32> to vector<8x8xf32>
    %36 = arith.subf %32, %35 : vector<8x8xf32>
    %37 = math.exp %36 : vector<8x8xf32>
    %cst_25 = arith.constant dense<0.000000e+00> : vector<8xf32>
    %38 = vector.multi_reduction <add>, %37, %cst_25 [1] : vector<8x8xf32> to vector<8xf32>
    %39 = vector.shape_cast %38 : vector<8xf32> to vector<8x1xf32>
    %cst_26 = arith.constant 1.000000e+00 : f32
    %40 = vector.broadcast %cst_26 : f32 to vector<8x1xf32>
    %41 = arith.divf %40, %39 : vector<8x1xf32>
    %42 = vector.broadcast %41 : vector<8x1xf32> to vector<8x8xf32>
    %43 = arith.mulf %37, %42 : vector<8x8xf32>
    %cst_27 = arith.constant dense<0.000000e+00> : vector<8x8xf32>
    %44 = tpu.matmul %43, %31, %cst_27 {dimension_numbers = #tpu.dot_dimension_numbers<[1], [0], [0], [1], [0, 0, 1, 1], [], []>} : vector<8x8xf32>, vector<8x8xf32>, vector<8x8xf32> -> vector<8x8xf32>
    %c0_28 = arith.constant 0 : index
    %c8_29 = arith.constant 8 : index
    %45 = vector.load %arg30[%c0_28, %c8_29] : memref<8x32xf32, #tpu.memory_space<vmem>>, vector<8x8xf32>
    tpu.vector_store %arg30[%c0_28, %c8_29], %44 {strides = array<i32>} : memref<8x32xf32, #tpu.memory_space<vmem>>, vector<8x8xf32>,
    %46 = vector.extract_strided_slice %9 {offsets = [0, 16], sizes = [8, 8], strides = [1, 1]} : vector<8x32xf32> to vector<8x8xf32>
    %c0_30 = arith.constant 0 : index
    %c16 = arith.constant 16 : index
    %47 = vector.load %arg28[%c0_30, %c16] : memref<8x64xf32, #tpu.memory_space<vmem>>, vector<8x8xf32>
    %c0_31 = arith.constant 0 : index
    %c48 = arith.constant 48 : index
    %48 = vector.load %arg28[%c0_31, %c48] : memref<8x64xf32, #tpu.memory_space<vmem>>, vector<8x8xf32>
    %cst_32 = arith.constant dense<0.000000e+00> : vector<8x8xf32>
    %49 = tpu.matmul %46, %47, %cst_32 {dimension_numbers = #tpu.dot_dimension_numbers<[1], [1], [0], [0], [0, 0, 1, 0], [], []>} : vector<8x8xf32>, vector<8x8xf32>, vector<8x8xf32> -> vector<8x8xf32>
    %cst_33 = arith.constant dense<0xFF800000> : vector<8xf32>
    %50 = vector.multi_reduction <maximumf>, %49, %cst_33 [1] : vector<8x8xf32> to vector<8xf32>
    %51 = vector.shape_cast %50 : vector<8xf32> to vector<8x1xf32>
    %52 = vector.broadcast %51 : vector<8x1xf32> to vector<8x8xf32>
    %53 = arith.subf %49, %52 : vector<8x8xf32>
    %54 = math.exp %53 : vector<8x8xf32>
    %cst_34 = arith.constant dense<0.000000e+00> : vector<8xf32>
    %55 = vector.multi_reduction <add>, %54, %cst_34 [1] : vector<8x8xf32> to vector<8xf32>
    %56 = vector.shape_cast %55 : vector<8xf32> to vector<8x1xf32>
    %cst_35 = arith.constant 1.000000e+00 : f32
    %57 = vector.broadcast %cst_35 : f32 to vector<8x1xf32>
    %58 = arith.divf %57, %56 : vector<8x1xf32>
    %59 = vector.broadcast %58 : vector<8x1xf32> to vector<8x8xf32>
    %60 = arith.mulf %54, %59 : vector<8x8xf32>
    %cst_36 = arith.constant dense<0.000000e+00> : vector<8x8xf32>
    %61 = tpu.matmul %60, %48, %cst_36 {dimension_numbers = #tpu.dot_dimension_numbers<[1], [0], [0], [1], [0, 0, 1, 1], [], []>} : vector<8x8xf32>, vector<8x8xf32>, vector<8x8xf32> -> vector<8x8xf32>
    %c0_37 = arith.constant 0 : index
    %c16_38 = arith.constant 16 : index
    %62 = vector.load %arg30[%c0_37, %c16_38] : memref<8x32xf32, #tpu.memory_space<vmem>>, vector<8x8xf32>
    tpu.vector_store %arg30[%c0_37, %c16_38], %61 {strides = array<i32>} : memref<8x32xf32, #tpu.memory_space<vmem>>, vector<8x8xf32>,
    %63 = vector.extract_strided_slice %9 {offsets = [0, 24], sizes = [8, 8], strides = [1, 1]} : vector<8x32xf32> to vector<8x8xf32>
    %c0_39 = arith.constant 0 : index
    %c24 = arith.constant 24 : index
    %64 = vector.load %arg28[%c0_39, %c24] : memref<8x64xf32, #tpu.memory_space<vmem>>, vector<8x8xf32>
    %c0_40 = arith.constant 0 : index
    %c56 = arith.constant 56 : index
    %65 = vector.load %arg28[%c0_40, %c56] : memref<8x64xf32, #tpu.memory_space<vmem>>, vector<8x8xf32>
    %cst_41 = arith.constant dense<0.000000e+00> : vector<8x8xf32>
    %66 = tpu.matmul %63, %64, %cst_41 {dimension_numbers = #tpu.dot_dimension_numbers<[1], [1], [0], [0], [0, 0, 1, 0], [], []>} : vector<8x8xf32>, vector<8x8xf32>, vector<8x8xf32> -> vector<8x8xf32>
    %cst_42 = arith.constant dense<0xFF800000> : vector<8xf32>
    %67 = vector.multi_reduction <maximumf>, %66, %cst_42 [1] : vector<8x8xf32> to vector<8xf32>
    %68 = vector.shape_cast %67 : vector<8xf32> to vector<8x1xf32>
    %69 = vector.broadcast %68 : vector<8x1xf32> to vector<8x8xf32>
    %70 = arith.subf %66, %69 : vector<8x8xf32>
    %71 = math.exp %70 : vector<8x8xf32>
    %cst_43 = arith.constant dense<0.000000e+00> : vector<8xf32>
    %72 = vector.multi_reduction <add>, %71, %cst_43 [1] : vector<8x8xf32> to vector<8xf32>
    %73 = vector.shape_cast %72 : vector<8xf32> to vector<8x1xf32>
    %cst_44 = arith.constant 1.000000e+00 : f32
    %74 = vector.broadcast %cst_44 : f32 to vector<8x1xf32>
    %75 = arith.divf %74, %73 : vector<8x1xf32>
    %76 = vector.broadcast %75 : vector<8x1xf32> to vector<8x8xf32>
    %77 = arith.mulf %71, %76 : vector<8x8xf32>
    %cst_45 = arith.constant dense<0.000000e+00> : vector<8x8xf32>
    %78 = tpu.matmul %77, %65, %cst_45 {dimension_numbers = #tpu.dot_dimension_numbers<[1], [0], [0], [1], [0, 0, 1, 1], [], []>} : vector<8x8xf32>, vector<8x8xf32>, vector<8x8xf32> -> vector<8x8xf32>
    %c0_46 = arith.constant 0 : index
    %c24_47 = arith.constant 24 : index
    %79 = vector.load %arg30[%c0_46, %c24_47] : memref<8x32xf32, #tpu.memory_space<vmem>>, vector<8x8xf32>
    tpu.vector_store %arg30[%c0_46, %c24_47], %78 {strides = array<i32>} : memref<8x32xf32, #tpu.memory_space<vmem>>, vector<8x8xf32>,
    %c0_48 = arith.constant 0 : index
    %c0_49 = arith.constant 0 : index
    %80 = vector.load %arg30[%c0_48, %c0_49] : memref<8x32xf32, #tpu.memory_space<vmem>>, vector<8x32xf32>
    %cst_50 = arith.constant dense<0.000000e+00> : vector<8x32xf32>
    %81 = tpu.matmul %80, %10, %cst_50 {dimension_numbers = #tpu.dot_dimension_numbers<[1], [0], [0], [1], [0, 0, 1, 1], [], []>} : vector<8x32xf32>, vector<32x32xf32>, vector<8x32xf32> -> vector<8x32xf32>
    %82 = vector.broadcast %11 : vector<1x32xf32> to vector<8x32xf32>
    %83 = arith.addf %81, %82 : vector<8x32xf32>
    %c0_51 = arith.constant 0 : index
    %c0_52 = arith.constant 0 : index
    %84 = vector.load %arg11[%c0_51, %c0_52] : memref<1x32xf32, #tpu.memory_space<vmem>>, vector<1x32xf32>
    %c0_53 = arith.constant 0 : index
    %c0_54 = arith.constant 0 : index
    %85 = vector.load %arg12[%c0_53, %c0_54] : memref<1x32xf32, #tpu.memory_space<vmem>>, vector<1x32xf32>
    %cst_55 = arith.constant dense<0.000000e+00> : vector<8xf32>
    %86 = vector.multi_reduction <add>, %83, %cst_55 [1] : vector<8x32xf32> to vector<8xf32>
    %87 = vector.shape_cast %86 : vector<8xf32> to vector<8x1xf32>
    %cst_56 = arith.constant 3.200000e+01 : f32
    %88 = vector.broadcast %cst_56 : f32 to vector<8x1xf32>
    %89 = arith.divf %87, %88 : vector<8x1xf32>
    %90 = vector.broadcast %89 : vector<8x1xf32> to vector<8x32xf32>
    %91 = arith.subf %83, %90 : vector<8x32xf32>
    %92 = arith.mulf %91, %91 : vector<8x32xf32>
    %cst_57 = arith.constant dense<0.000000e+00> : vector<8xf32>
    %93 = vector.multi_reduction <add>, %92, %cst_57 [1] : vector<8x32xf32> to vector<8xf32>
    %94 = vector.shape_cast %93 : vector<8xf32> to vector<8x1xf32>
    %cst_58 = arith.constant 3.200000e+01 : f32
    %95 = vector.broadcast %cst_58 : f32 to vector<8x1xf32>
    %96 = arith.divf %94, %95 : vector<8x1xf32>
    %cst_59 = arith.constant 9.99999974E-6 : f32
    %97 = vector.broadcast %cst_59 : f32 to vector<8x1xf32>
    %98 = arith.addf %96, %97 : vector<8x1xf32>
    %99 = math.rsqrt %98 : vector<8x1xf32>
    %100 = vector.broadcast %99 : vector<8x1xf32> to vector<8x32xf32>
    %101 = arith.mulf %91, %100 : vector<8x32xf32>
    %102 = vector.broadcast %84 : vector<1x32xf32> to vector<8x32xf32>
    %103 = arith.mulf %101, %102 : vector<8x32xf32>
    %104 = vector.broadcast %85 : vector<1x32xf32> to vector<8x32xf32>
    %105 = arith.addf %103, %104 : vector<8x32xf32>
    %c0_60 = arith.constant 0 : index
    %c0_61 = arith.constant 0 : index
    %106 = vector.load %arg13[%c0_60, %c0_61] : memref<32x32xf32, #tpu.memory_space<vmem>>, vector<32x32xf32>
    %cst_62 = arith.constant dense<0.000000e+00> : vector<8x32xf32>
    %107 = tpu.matmul %105, %106, %cst_62 {dimension_numbers = #tpu.dot_dimension_numbers<[1], [0], [0], [1], [0, 0, 1, 1], [], []>} : vector<8x32xf32>, vector<32x32xf32>, vector<8x32xf32> -> vector<8x32xf32>
    %c0_63 = arith.constant 0 : index
    %c0_64 = arith.constant 0 : index
    %108 = vector.load %arg14[%c0_63, %c0_64] : memref<1x32xf32, #tpu.memory_space<vmem>>, vector<1x32xf32>
    %109 = vector.broadcast %108 : vector<1x32xf32> to vector<8x32xf32>
    %110 = arith.addf %107, %109 : vector<8x32xf32>
    %c0_65 = arith.constant 0 : index
    %c0_66 = arith.constant 0 : index
    %111 = vector.load %arg17[%c0_65, %c0_66] : memref<32x32xf32, #tpu.memory_space<vmem>>, vector<32x32xf32>
    %c0_67 = arith.constant 0 : index
    %c0_68 = arith.constant 0 : index
    %112 = vector.load %arg18[%c0_67, %c0_68] : memref<1x32xf32, #tpu.memory_space<vmem>>, vector<1x32xf32>
    %113 = vector.extract_strided_slice %110 {offsets = [0, 0], sizes = [8, 8], strides = [1, 1]} : vector<8x32xf32> to vector<8x8xf32>
    %c0_69 = arith.constant 0 : index
    %c0_70 = arith.constant 0 : index
    %114 = vector.load %arg29[%c0_69, %c0_70] : memref<12x64xf32, #tpu.memory_space<vmem>>, vector<12x8xf32>
    %c0_71 = arith.constant 0 : index
    %c32_72 = arith.constant 32 : index
    %115 = vector.load %arg29[%c0_71, %c32_72] : memref<12x64xf32, #tpu.memory_space<vmem>>, vector<12x8xf32>
    %cst_73 = arith.constant dense<0.000000e+00> : vector<8x12xf32>
    %116 = tpu.matmul %113, %114, %cst_73 {dimension_numbers = #tpu.dot_dimension_numbers<[1], [1], [0], [0], [0, 0, 1, 0], [], []>} : vector<8x8xf32>, vector<12x8xf32>, vector<8x12xf32> -> vector<8x12xf32>
    %cst_74 = arith.constant dense<0xFF800000> : vector<8xf32>
    %117 = vector.multi_reduction <maximumf>, %116, %cst_74 [1] : vector<8x12xf32> to vector<8xf32>
    %118 = vector.shape_cast %117 : vector<8xf32> to vector<8x1xf32>
    %119 = vector.broadcast %118 : vector<8x1xf32> to vector<8x12xf32>
    %120 = arith.subf %116, %119 : vector<8x12xf32>
    %121 = math.exp %120 : vector<8x12xf32>
    %cst_75 = arith.constant dense<0.000000e+00> : vector<8xf32>
    %122 = vector.multi_reduction <add>, %121, %cst_75 [1] : vector<8x12xf32> to vector<8xf32>
    %123 = vector.shape_cast %122 : vector<8xf32> to vector<8x1xf32>
    %cst_76 = arith.constant 1.000000e+00 : f32
    %124 = vector.broadcast %cst_76 : f32 to vector<8x1xf32>
    %125 = arith.divf %124, %123 : vector<8x1xf32>
    %126 = vector.broadcast %125 : vector<8x1xf32> to vector<8x12xf32>
    %127 = arith.mulf %121, %126 : vector<8x12xf32>
    %cst_77 = arith.constant dense<0.000000e+00> : vector<8x8xf32>
    %128 = tpu.matmul %127, %115, %cst_77 {dimension_numbers = #tpu.dot_dimension_numbers<[1], [0], [0], [1], [0, 0, 1, 1], [], []>} : vector<8x12xf32>, vector<12x8xf32>, vector<8x8xf32> -> vector<8x8xf32>
    %c0_78 = arith.constant 0 : index
    %c0_79 = arith.constant 0 : index
    %129 = vector.load %arg30[%c0_78, %c0_79] : memref<8x32xf32, #tpu.memory_space<vmem>>, vector<8x8xf32>
    tpu.vector_store %arg30[%c0_78, %c0_79], %128 {strides = array<i32>} : memref<8x32xf32, #tpu.memory_space<vmem>>, vector<8x8xf32>,
    %130 = vector.extract_strided_slice %110 {offsets = [0, 8], sizes = [8, 8], strides = [1, 1]} : vector<8x32xf32> to vector<8x8xf32>
    %c0_80 = arith.constant 0 : index
    %c8_81 = arith.constant 8 : index
    %131 = vector.load %arg29[%c0_80, %c8_81] : memref<12x64xf32, #tpu.memory_space<vmem>>, vector<12x8xf32>
    %c0_82 = arith.constant 0 : index
    %c40_83 = arith.constant 40 : index
    %132 = vector.load %arg29[%c0_82, %c40_83] : memref<12x64xf32, #tpu.memory_space<vmem>>, vector<12x8xf32>
    %cst_84 = arith.constant dense<0.000000e+00> : vector<8x12xf32>
    %133 = tpu.matmul %130, %131, %cst_84 {dimension_numbers = #tpu.dot_dimension_numbers<[1], [1], [0], [0], [0, 0, 1, 0], [], []>} : vector<8x8xf32>, vector<12x8xf32>, vector<8x12xf32> -> vector<8x12xf32>
    %cst_85 = arith.constant dense<0xFF800000> : vector<8xf32>
    %134 = vector.multi_reduction <maximumf>, %133, %cst_85 [1] : vector<8x12xf32> to vector<8xf32>
    %135 = vector.shape_cast %134 : vector<8xf32> to vector<8x1xf32>
    %136 = vector.broadcast %135 : vector<8x1xf32> to vector<8x12xf32>
    %137 = arith.subf %133, %136 : vector<8x12xf32>
    %138 = math.exp %137 : vector<8x12xf32>
    %cst_86 = arith.constant dense<0.000000e+00> : vector<8xf32>
    %139 = vector.multi_reduction <add>, %138, %cst_86 [1] : vector<8x12xf32> to vector<8xf32>
    %140 = vector.shape_cast %139 : vector<8xf32> to vector<8x1xf32>
    %cst_87 = arith.constant 1.000000e+00 : f32
    %141 = vector.broadcast %cst_87 : f32 to vector<8x1xf32>
    %142 = arith.divf %141, %140 : vector<8x1xf32>
    %143 = vector.broadcast %142 : vector<8x1xf32> to vector<8x12xf32>
    %144 = arith.mulf %138, %143 : vector<8x12xf32>
    %cst_88 = arith.constant dense<0.000000e+00> : vector<8x8xf32>
    %145 = tpu.matmul %144, %132, %cst_88 {dimension_numbers = #tpu.dot_dimension_numbers<[1], [0], [0], [1], [0, 0, 1, 1], [], []>} : vector<8x12xf32>, vector<12x8xf32>, vector<8x8xf32> -> vector<8x8xf32>
    %c0_89 = arith.constant 0 : index
    %c8_90 = arith.constant 8 : index
    %146 = vector.load %arg30[%c0_89, %c8_90] : memref<8x32xf32, #tpu.memory_space<vmem>>, vector<8x8xf32>
    tpu.vector_store %arg30[%c0_89, %c8_90], %145 {strides = array<i32>} : memref<8x32xf32, #tpu.memory_space<vmem>>, vector<8x8xf32>,
    %147 = vector.extract_strided_slice %110 {offsets = [0, 16], sizes = [8, 8], strides = [1, 1]} : vector<8x32xf32> to vector<8x8xf32>
    %c0_91 = arith.constant 0 : index
    %c16_92 = arith.constant 16 : index
    %148 = vector.load %arg29[%c0_91, %c16_92] : memref<12x64xf32, #tpu.memory_space<vmem>>, vector<12x8xf32>
    %c0_93 = arith.constant 0 : index
    %c48_94 = arith.constant 48 : index
    %149 = vector.load %arg29[%c0_93, %c48_94] : memref<12x64xf32, #tpu.memory_space<vmem>>, vector<12x8xf32>
    %cst_95 = arith.constant dense<0.000000e+00> : vector<8x12xf32>
    %150 = tpu.matmul %147, %148, %cst_95 {dimension_numbers = #tpu.dot_dimension_numbers<[1], [1], [0], [0], [0, 0, 1, 0], [], []>} : vector<8x8xf32>, vector<12x8xf32>, vector<8x12xf32> -> vector<8x12xf32>
    %cst_96 = arith.constant dense<0xFF800000> : vector<8xf32>
    %151 = vector.multi_reduction <maximumf>, %150, %cst_96 [1] : vector<8x12xf32> to vector<8xf32>
    %152 = vector.shape_cast %151 : vector<8xf32> to vector<8x1xf32>
    %153 = vector.broadcast %152 : vector<8x1xf32> to vector<8x12xf32>
    %154 = arith.subf %150, %153 : vector<8x12xf32>
    %155 = math.exp %154 : vector<8x12xf32>
    %cst_97 = arith.constant dense<0.000000e+00> : vector<8xf32>
    %156 = vector.multi_reduction <add>, %155, %cst_97 [1] : vector<8x12xf32> to vector<8xf32>
    %157 = vector.shape_cast %156 : vector<8xf32> to vector<8x1xf32>
    %cst_98 = arith.constant 1.000000e+00 : f32
    %158 = vector.broadcast %cst_98 : f32 to vector<8x1xf32>
    %159 = arith.divf %158, %157 : vector<8x1xf32>
    %160 = vector.broadcast %159 : vector<8x1xf32> to vector<8x12xf32>
    %161 = arith.mulf %155, %160 : vector<8x12xf32>
    %cst_99 = arith.constant dense<0.000000e+00> : vector<8x8xf32>
    %162 = tpu.matmul %161, %149, %cst_99 {dimension_numbers = #tpu.dot_dimension_numbers<[1], [0], [0], [1], [0, 0, 1, 1], [], []>} : vector<8x12xf32>, vector<12x8xf32>, vector<8x8xf32> -> vector<8x8xf32>
    %c0_100 = arith.constant 0 : index
    %c16_101 = arith.constant 16 : index
    %163 = vector.load %arg30[%c0_100, %c16_101] : memref<8x32xf32, #tpu.memory_space<vmem>>, vector<8x8xf32>
    tpu.vector_store %arg30[%c0_100, %c16_101], %162 {strides = array<i32>} : memref<8x32xf32, #tpu.memory_space<vmem>>, vector<8x8xf32>,
    %164 = vector.extract_strided_slice %110 {offsets = [0, 24], sizes = [8, 8], strides = [1, 1]} : vector<8x32xf32> to vector<8x8xf32>
    %c0_102 = arith.constant 0 : index
    %c24_103 = arith.constant 24 : index
    %165 = vector.load %arg29[%c0_102, %c24_103] : memref<12x64xf32, #tpu.memory_space<vmem>>, vector<12x8xf32>
    %c0_104 = arith.constant 0 : index
    %c56_105 = arith.constant 56 : index
    %166 = vector.load %arg29[%c0_104, %c56_105] : memref<12x64xf32, #tpu.memory_space<vmem>>, vector<12x8xf32>
    %cst_106 = arith.constant dense<0.000000e+00> : vector<8x12xf32>
    %167 = tpu.matmul %164, %165, %cst_106 {dimension_numbers = #tpu.dot_dimension_numbers<[1], [1], [0], [0], [0, 0, 1, 0], [], []>} : vector<8x8xf32>, vector<12x8xf32>, vector<8x12xf32> -> vector<8x12xf32>
    %cst_107 = arith.constant dense<0xFF800000> : vector<8xf32>
    %168 = vector.multi_reduction <maximumf>, %167, %cst_107 [1] : vector<8x12xf32> to vector<8xf32>
    %169 = vector.shape_cast %168 : vector<8xf32> to vector<8x1xf32>
    %170 = vector.broadcast %169 : vector<8x1xf32> to vector<8x12xf32>
    %171 = arith.subf %167, %170 : vector<8x12xf32>
    %172 = math.exp %171 : vector<8x12xf32>
    %cst_108 = arith.constant dense<0.000000e+00> : vector<8xf32>
    %173 = vector.multi_reduction <add>, %172, %cst_108 [1] : vector<8x12xf32> to vector<8xf32>
    %174 = vector.shape_cast %173 : vector<8xf32> to vector<8x1xf32>
    %cst_109 = arith.constant 1.000000e+00 : f32
    %175 = vector.broadcast %cst_109 : f32 to vector<8x1xf32>
    %176 = arith.divf %175, %174 : vector<8x1xf32>
    %177 = vector.broadcast %176 : vector<8x1xf32> to vector<8x12xf32>
    %178 = arith.mulf %172, %177 : vector<8x12xf32>
    %cst_110 = arith.constant dense<0.000000e+00> : vector<8x8xf32>
    %179 = tpu.matmul %178, %166, %cst_110 {dimension_numbers = #tpu.dot_dimension_numbers<[1], [0], [0], [1], [0, 0, 1, 1], [], []>} : vector<8x12xf32>, vector<12x8xf32>, vector<8x8xf32> -> vector<8x8xf32>
    %c0_111 = arith.constant 0 : index
    %c24_112 = arith.constant 24 : index
    %180 = vector.load %arg30[%c0_111, %c24_112] : memref<8x32xf32, #tpu.memory_space<vmem>>, vector<8x8xf32>
    tpu.vector_store %arg30[%c0_111, %c24_112], %179 {strides = array<i32>} : memref<8x32xf32, #tpu.memory_space<vmem>>, vector<8x8xf32>,
    %c0_113 = arith.constant 0 : index
    %c0_114 = arith.constant 0 : index
    %181 = vector.load %arg30[%c0_113, %c0_114] : memref<8x32xf32, #tpu.memory_space<vmem>>, vector<8x32xf32>
    %cst_115 = arith.constant dense<0.000000e+00> : vector<8x32xf32>
    %182 = tpu.matmul %181, %111, %cst_115 {dimension_numbers = #tpu.dot_dimension_numbers<[1], [0], [0], [1], [0, 0, 1, 1], [], []>} : vector<8x32xf32>, vector<32x32xf32>, vector<8x32xf32> -> vector<8x32xf32>
    %183 = vector.broadcast %112 : vector<1x32xf32> to vector<8x32xf32>
    %184 = arith.addf %182, %183 : vector<8x32xf32>
    %c0_116 = arith.constant 0 : index
    %c0_117 = arith.constant 0 : index
    %185 = vector.load %arg19[%c0_116, %c0_117] : memref<1x32xf32, #tpu.memory_space<vmem>>, vector<1x32xf32>
    %c0_118 = arith.constant 0 : index
    %c0_119 = arith.constant 0 : index
    %186 = vector.load %arg20[%c0_118, %c0_119] : memref<1x32xf32, #tpu.memory_space<vmem>>, vector<1x32xf32>
    %cst_120 = arith.constant dense<0.000000e+00> : vector<8xf32>
    %187 = vector.multi_reduction <add>, %184, %cst_120 [1] : vector<8x32xf32> to vector<8xf32>
    %188 = vector.shape_cast %187 : vector<8xf32> to vector<8x1xf32>
    %cst_121 = arith.constant 3.200000e+01 : f32
    %189 = vector.broadcast %cst_121 : f32 to vector<8x1xf32>
    %190 = arith.divf %188, %189 : vector<8x1xf32>
    %191 = vector.broadcast %190 : vector<8x1xf32> to vector<8x32xf32>
    %192 = arith.subf %184, %191 : vector<8x32xf32>
    %193 = arith.mulf %192, %192 : vector<8x32xf32>
    %cst_122 = arith.constant dense<0.000000e+00> : vector<8xf32>
    %194 = vector.multi_reduction <add>, %193, %cst_122 [1] : vector<8x32xf32> to vector<8xf32>
    %195 = vector.shape_cast %194 : vector<8xf32> to vector<8x1xf32>
    %cst_123 = arith.constant 3.200000e+01 : f32
    %196 = vector.broadcast %cst_123 : f32 to vector<8x1xf32>
    %197 = arith.divf %195, %196 : vector<8x1xf32>
    %cst_124 = arith.constant 9.99999974E-6 : f32
    %198 = vector.broadcast %cst_124 : f32 to vector<8x1xf32>
    %199 = arith.addf %197, %198 : vector<8x1xf32>
    %200 = math.rsqrt %199 : vector<8x1xf32>
    %201 = vector.broadcast %200 : vector<8x1xf32> to vector<8x32xf32>
    %202 = arith.mulf %192, %201 : vector<8x32xf32>
    %203 = vector.broadcast %185 : vector<1x32xf32> to vector<8x32xf32>
    %204 = arith.mulf %202, %203 : vector<8x32xf32>
    %205 = vector.broadcast %186 : vector<1x32xf32> to vector<8x32xf32>
    %206 = arith.addf %204, %205 : vector<8x32xf32>
    %c0_125 = arith.constant 0 : index
    %c0_126 = arith.constant 0 : index
    %207 = vector.load %arg21[%c0_125, %c0_126] : memref<32x32xf32, #tpu.memory_space<vmem>>, vector<32x32xf32>
    %cst_127 = arith.constant dense<0.000000e+00> : vector<8x32xf32>
    %208 = tpu.matmul %206, %207, %cst_127 {dimension_numbers = #tpu.dot_dimension_numbers<[1], [0], [0], [1], [0, 0, 1, 1], [], []>} : vector<8x32xf32>, vector<32x32xf32>, vector<8x32xf32> -> vector<8x32xf32>
    %c0_128 = arith.constant 0 : index
    %c0_129 = arith.constant 0 : index
    %209 = vector.load %arg22[%c0_128, %c0_129] : memref<1x32xf32, #tpu.memory_space<vmem>>, vector<1x32xf32>
    %210 = vector.broadcast %209 : vector<1x32xf32> to vector<8x32xf32>
    %211 = arith.addf %208, %210 : vector<8x32xf32>
    %cst_130 = arith.constant 0.000000e+00 : f32
    %212 = vector.broadcast %cst_130 : f32 to vector<8x32xf32>
    %213 = arith.maximumf %211, %212 : vector<8x32xf32>
    %c0_131 = arith.constant 0 : index
    %c0_132 = arith.constant 0 : index
    %214 = vector.load %arg23[%c0_131, %c0_132] : memref<32x32xf32, #tpu.memory_space<vmem>>, vector<32x32xf32>
    %cst_133 = arith.constant dense<0.000000e+00> : vector<8x32xf32>
    %215 = tpu.matmul %213, %214, %cst_133 {dimension_numbers = #tpu.dot_dimension_numbers<[1], [0], [0], [1], [0, 0, 1, 1], [], []>} : vector<8x32xf32>, vector<32x32xf32>, vector<8x32xf32> -> vector<8x32xf32>
    %c0_134 = arith.constant 0 : index
    %c0_135 = arith.constant 0 : index
    %216 = vector.load %arg24[%c0_134, %c0_135] : memref<1x32xf32, #tpu.memory_space<vmem>>, vector<1x32xf32>
    %217 = vector.broadcast %216 : vector<1x32xf32> to vector<8x32xf32>
    %218 = arith.addf %215, %217 : vector<8x32xf32>
    %c0_136 = arith.constant 0 : index
    %c0_137 = arith.constant 0 : index
    %219 = vector.load %arg25[%c0_136, %c0_137] : memref<1x32xf32, #tpu.memory_space<vmem>>, vector<1x32xf32>
    %c0_138 = arith.constant 0 : index
    %c0_139 = arith.constant 0 : index
    %220 = vector.load %arg26[%c0_138, %c0_139] : memref<1x32xf32, #tpu.memory_space<vmem>>, vector<1x32xf32>
    %cst_140 = arith.constant dense<0.000000e+00> : vector<8xf32>
    %221 = vector.multi_reduction <add>, %218, %cst_140 [1] : vector<8x32xf32> to vector<8xf32>
    %222 = vector.shape_cast %221 : vector<8xf32> to vector<8x1xf32>
    %cst_141 = arith.constant 3.200000e+01 : f32
    %223 = vector.broadcast %cst_141 : f32 to vector<8x1xf32>
    %224 = arith.divf %222, %223 : vector<8x1xf32>
    %225 = vector.broadcast %224 : vector<8x1xf32> to vector<8x32xf32>
    %226 = arith.subf %218, %225 : vector<8x32xf32>
    %227 = arith.mulf %226, %226 : vector<8x32xf32>
    %cst_142 = arith.constant dense<0.000000e+00> : vector<8xf32>
    %228 = vector.multi_reduction <add>, %227, %cst_142 [1] : vector<8x32xf32> to vector<8xf32>
    %229 = vector.shape_cast %228 : vector<8xf32> to vector<8x1xf32>
    %cst_143 = arith.constant 3.200000e+01 : f32
    %230 = vector.broadcast %cst_143 : f32 to vector<8x1xf32>
    %231 = arith.divf %229, %230 : vector<8x1xf32>
    %cst_144 = arith.constant 9.99999974E-6 : f32
    %232 = vector.broadcast %cst_144 : f32 to vector<8x1xf32>
    %233 = arith.addf %231, %232 : vector<8x1xf32>
    %234 = math.rsqrt %233 : vector<8x1xf32>
    %235 = vector.broadcast %234 : vector<8x1xf32> to vector<8x32xf32>
    %236 = arith.mulf %226, %235 : vector<8x32xf32>
    %237 = vector.broadcast %219 : vector<1x32xf32> to vector<8x32xf32>
    %238 = arith.mulf %236, %237 : vector<8x32xf32>
    %239 = vector.broadcast %220 : vector<1x32xf32> to vector<8x32xf32>
    %240 = arith.addf %238, %239 : vector<8x32xf32>
    %c0_145 = arith.constant 0 : index
    %c0_146 = arith.constant 0 : index
    %c0_147 = arith.constant 0 : index
    %241 = vector.load %arg27[%c0_145, %c0_146, %c0_147] : memref<1x8x32xf32, #tpu.memory_space<vmem>>, vector<1x8x32xf32>
    %242 = vector.shape_cast %241 : vector<1x8x32xf32> to vector<8x32xf32>
    %243 = vector.shape_cast %240 : vector<8x32xf32> to vector<1x8x32xf32>
    tpu.vector_store %arg27[%c0_145, %c0_146, %c0_147], %243 {strides = array<i32>} : memref<1x8x32xf32, #tpu.memory_space<vmem>>, vector<1x8x32xf32>,
    return
  }
  func.func @transform_0(%arg0: i32, %arg1: i32) -> (i32, i32, i32) {
    %c0_i32 = arith.constant 0 : i32
    %c0_i32_0 = arith.constant 0 : i32
    return %arg0, %arg1, %c0_i32 : i32, i32, i32
  }
  func.func @transform_1(%arg0: i32, %arg1: i32) -> (i32, i32, i32) {
    %c0_i32 = arith.constant 0 : i32
    %c0_i32_0 = arith.constant 0 : i32
    %c0_i32_1 = arith.constant 0 : i32
    return %arg0, %c0_i32, %c0_i32_0 : i32, i32, i32
  }
  func.func @transform_2(%arg0: i32, %arg1: i32) -> (i32, i32, i32) {
    %c0_i32 = arith.constant 0 : i32
    %c0_i32_0 = arith.constant 0 : i32
    %c0_i32_1 = arith.constant 0 : i32
    return %arg0, %c0_i32, %c0_i32_0 : i32, i32, i32
  }
  func.func @transform_3(%arg0: i32, %arg1: i32) -> (i32, i32) {
    %c0_i32 = arith.constant 0 : i32
    %c0_i32_0 = arith.constant 0 : i32
    %c0_i32_1 = arith.constant 0 : i32
    return %c0_i32, %c0_i32_0 : i32, i32
  }
  func.func @transform_4(%arg0: i32, %arg1: i32) -> (i32, i32) {
    %c0_i32 = arith.constant 0 : i32
    %c0_i32_0 = arith.constant 0 : i32
    %c0_i32_1 = arith.constant 0 : i32
    return %c0_i32, %c0_i32_0 : i32, i32
  }
  func.func @transform_5(%arg0: i32, %arg1: i32) -> (i32, i32) {
    %c0_i32 = arith.constant 0 : i32
    %c0_i32_0 = arith.constant 0 : i32
    %c0_i32_1 = arith.constant 0 : i32
    return %c0_i32, %c0_i32_0 : i32, i32
  }
  func.func @transform_6(%arg0: i32, %arg1: i32) -> (i32, i32) {
    %c0_i32 = arith.constant 0 : i32
    %c0_i32_0 = arith.constant 0 : i32
    %c0_i32_1 = arith.constant 0 : i32
    return %c0_i32, %c0_i32_0 : i32, i32
  }
  func.func @transform_7(%arg0: i32, %arg1: i32) -> (i32, i32) {
    %c0_i32 = arith.constant 0 : i32
    %c0_i32_0 = arith.constant 0 : i32
    %c0_i32_1 = arith.constant 0 : i32
    return %c0_i32, %c0_i32_0 : i32, i32
  }
  func.func @transform_8(%arg0: i32, %arg1: i32) -> (i32, i32) {
    %c0_i32 = arith.constant 0 : i32
    %c0_i32_0 = arith.constant 0 : i32
    %c0_i32_1 = arith.constant 0 : i32
    return %c0_i32, %c0_i32_0 : i32, i32
  }
  func.func @transform_9(%arg0: i32, %arg1: i32) -> (i32, i32) {
    %c0_i32 = arith.constant 0 : i32
    %c0_i32_0 = arith.constant 0 : i32
    %c0_i32_1 = arith.constant 0 : i32
    return %c0_i32, %c0_i32_0 : i32, i32
  }
  func.func @transform_10(%arg0: i32, %arg1: i32) -> (i32, i32) {
    %c0_i32 = arith.constant 0 : i32
    %c0_i32_0 = arith.constant 0 : i32
    %c0_i32_1 = arith.constant 0 : i32
    return %c0_i32, %c0_i32_0 : i32, i32
  }
  func.func @transform_11(%arg0: i32, %arg1: i32) -> (i32, i32) {
    %c0_i32 = arith.constant 0 : i32
    %c0_i32_0 = arith.constant 0 : i32
    %c0_i32_1 = arith.constant 0 : i32
    return %c0_i32, %c0_i32_0 : i32, i32
  }
  func.func @transform_12(%arg0: i32, %arg1: i32) -> (i32, i32) {
    %c0_i32 = arith.constant 0 : i32
    %c0_i32_0 = arith.constant 0 : i32
    %c0_i32_1 = arith.constant 0 : i32
    return %c0_i32, %c0_i32_0 : i32, i32
  }
  func.func @transform_13(%arg0: i32, %arg1: i32) -> (i32, i32) {
    %c0_i32 = arith.constant 0 : i32
    %c0_i32_0 = arith.constant 0 : i32
    %c0_i32_1 = arith.constant 0 : i32
    return %c0_i32, %c0_i32_0 : i32, i32
  }
  func.func @transform_14(%arg0: i32, %arg1: i32) -> (i32, i32) {
    %c0_i32 = arith.constant 0 : i32
    %c0_i32_0 = arith.constant 0 : i32
    %c0_i32_1 = arith.constant 0 : i32
    return %c0_i32, %c0_i32_0 : i32, i32
  }
  func.func @transform_15(%arg0: i32, %arg1: i32) -> (i32, i32) {
    %c0_i32 = arith.constant 0 : i32
    %c0_i32_0 = arith.constant 0 : i32
    %c0_i32_1 = arith.constant 0 : i32
    return %c0_i32, %c0_i32_0 : i32, i32
  }
  func.func @transform_16(%arg0: i32, %arg1: i32) -> (i32, i32) {
    %c0_i32 = arith.constant 0 : i32
    %c0_i32_0 = arith.constant 0 : i32
    %c0_i32_1 = arith.constant 0 : i32
    return %c0_i32, %c0_i32_0 : i32, i32
  }
  func.func @transform_17(%arg0: i32, %arg1: i32) -> (i32, i32) {
    %c0_i32 = arith.constant 0 : i32
    %c0_i32_0 = arith.constant 0 : i32
    %c0_i32_1 = arith.constant 0 : i32
    return %c0_i32, %c0_i32_0 : i32, i32
  }
  func.func @transform_18(%arg0: i32, %arg1: i32) -> (i32, i32) {
    %c0_i32 = arith.constant 0 : i32
    %c0_i32_0 = arith.constant 0 : i32
    %c0_i32_1 = arith.constant 0 : i32
    return %c0_i32, %c0_i32_0 : i32, i32
  }
  func.func @transform_19(%arg0: i32, %arg1: i32) -> (i32, i32) {
    %c0_i32 = arith.constant 0 : i32
    %c0_i32_0 = arith.constant 0 : i32
    %c0_i32_1 = arith.constant 0 : i32
    return %c0_i32, %c0_i32_0 : i32, i32
  }
  func.func @transform_20(%arg0: i32, %arg1: i32) -> (i32, i32) {
    %c0_i32 = arith.constant 0 : i32
    %c0_i32_0 = arith.constant 0 : i32
    %c0_i32_1 = arith.constant 0 : i32
    return %c0_i32, %c0_i32_0 : i32, i32
  }
  func.func @transform_21(%arg0: i32, %arg1: i32) -> (i32, i32) {
    %c0_i32 = arith.constant 0 : i32
    %c0_i32_0 = arith.constant 0 : i32
    %c0_i32_1 = arith.constant 0 : i32
    return %c0_i32, %c0_i32_0 : i32, i32
  }
  func.func @transform_22(%arg0: i32, %arg1: i32) -> (i32, i32) {
    %c0_i32 = arith.constant 0 : i32
    %c0_i32_0 = arith.constant 0 : i32
    %c0_i32_1 = arith.constant 0 : i32
    return %c0_i32, %c0_i32_0 : i32, i32
  }
  func.func @transform_23(%arg0: i32, %arg1: i32) -> (i32, i32) {
    %c0_i32 = arith.constant 0 : i32
    %c0_i32_0 = arith.constant 0 : i32
    %c0_i32_1 = arith.constant 0 : i32
    return %c0_i32, %c0_i32_0 : i32, i32
  }
  func.func @transform_24(%arg0: i32, %arg1: i32) -> (i32, i32) {
    %c0_i32 = arith.constant 0 : i32
    %c0_i32_0 = arith.constant 0 : i32
    %c0_i32_1 = arith.constant 0 : i32
    return %c0_i32, %c0_i32_0 : i32, i32
  }
  func.func @transform_25(%arg0: i32, %arg1: i32) -> (i32, i32, i32) {
    %c0_i32 = arith.constant 0 : i32
    %c0_i32_0 = arith.constant 0 : i32
    return %arg0, %arg1, %c0_i32 : i32, i32, i32
  }
}

</mosaic_0001>

<bundles_post_ra>
// kernel: tpu_custom_call.1
= control target key start
LH: loop header
LB: loop body
LE: loop exit
PB: predicated region body
PF: predicated region fallthrough
CT: control target
= control target key end

     0   :  { %s3768_s0 = inlined_call_operand.hbm [shape: f32[2,8,32], index: 0, kind: input, shape index: {}]   ;;  %s3769_s1 = inlined_call_operand.hbm [shape: f32[2,8,32], index: 1, kind: input, shape index: {}]   ;;  %s3770_s2 = inlined_call_operand.vmem [shape: f32[2,12,32], index: 2, kind: input, shape index: {}]   ;;  %s3771_s3 = inlined_call_operand.vmem [shape: f32[32,32], index: 3, kind: input, shape index: {}]   ;;  %s3772_s4 = inlined_call_operand.hbm [shape: f32[1,32], index: 4, kind: input, shape index: {}]   ;;  %s3773_s5 = inlined_call_operand.hbm [shape: f32[32,64], index: 5, kind: input, shape index: {}]   ;;  %s3774_s6 = inlined_call_operand.hbm [shape: f32[1,64], index: 6, kind: input, shape index: {}]   ;;  %s3775_s7 = inlined_call_operand.hbm [shape: f32[32,32], index: 7, kind: input, shape index: {}]   ;;  %s3776_s8 = inlined_call_operand.hbm [shape: f32[1,32], index: 8, kind: input, shape index: {}]   ;;  %s3777_s9 = inlined_call_operand.hbm [shape: f32[1,32], index: 9, kind: input, shape index: {}]   ;;  %s3778_s10 = inlined_call_operand.vmem [shape: f32[1,32], index: 10, kind: input, shape index: {}]   ;;  %s3779_s11 = inlined_call_operand.vmem [shape: f32[32,32], index: 11, kind: input, shape index: {}]   ;;  %s3780_s12 = inlined_call_operand.vmem [shape: f32[1,32], index: 12, kind: input, shape index: {}]   ;;  %s3781_s13 = inlined_call_operand.hbm [shape: f32[32,64], index: 13, kind: input, shape index: {}]   ;;  %s3782_s14 = inlined_call_operand.vmem [shape: f32[1,64], index: 14, kind: input, shape index: {}]   ;;  %s3783_s15 = inlined_call_operand.hbm [shape: f32[32,32], index: 15, kind: input, shape index: {}]   ;;  %s3784_s16 = inlined_call_operand.vmem [shape: f32[1,32], index: 16, kind: input, shape index: {}]   ;;  %s3785_s17 = inlined_call_operand.vmem [shape: f32[1,32], index: 17, kind: input, shape index: {}]   ;;  %s3786_s18 = inlined_call_operand.vmem [shape: f32[1,32], index: 18, kind: input, shape index: {}]   ;;  %s3787_s19 = inlined_call_operand.hbm [shape: f32[32,32], index: 19, kind: input, shape index: {}]   ;;  %s3788_s20 = inlined_call_operand.vmem [shape: f32[1,32], index: 20, kind: input, shape index: {}]   ;;  %s3789_s21 = inlined_call_operand.hbm [shape: f32[32,32], index: 21, kind: input, shape index: {}]   ;;  %s3790_s22 = inlined_call_operand.vmem [shape: f32[1,32], index: 22, kind: input, shape index: {}]   ;;  %s3791_s23 = inlined_call_operand.vmem [shape: f32[1,32], index: 23, kind: input, shape index: {}]   ;;  %s3792_s24 = inlined_call_operand.vmem [shape: f32[1,32], index: 24, kind: input, shape index: {}]   ;;  %s3793_s25 = inlined_call_operand.hbm [shape: f32[2,8,32], index: 25, kind: output, shape index: {}]  }
   0x1   :  { %3799 = sst [smem:[#allocation39_spill]] %s3768_s0 }
   0x2   :  { %3800 = sst [smem:[#allocation40_spill]] %s3769_s1 }
   0x3   :  { %3801 = sst [smem:[#allocation41_spill]] %s3770_s2 }
   0x4   :  { %3802 = sst [smem:[#allocation42_spill]] %s3771_s3 }
   0x5   :  { %3803 = sst [smem:[#allocation43_spill]] %s3772_s4 }
   0x6   :  { %3804 = sst [smem:[#allocation44_spill]] %s3773_s5 }
   0x7   :  { %3805 = sst [smem:[#allocation45_spill]] %s3774_s6 }
   0x8   :  { %3806 = sst [smem:[#allocation46_spill]] %s3775_s7 }
   0x9   :  { %3807 = sst [smem:[#allocation47_spill]] %s3776_s8 }
   0xa   :  { %3808 = sst [smem:[#allocation48_spill]] %s3777_s9 }
   0xb   :  { %3809 = sst [smem:[#allocation49_spill]] %s3778_s10 }
   0xc   :  { %3810 = sst [smem:[#allocation50_spill]] %s3780_s12 }
   0xd   :  { %3811 = sst [smem:[#allocation51_spill]] %s3781_s13 }
   0xe   :  { %3812 = sst [smem:[#allocation52_spill]] %s3783_s15 }
   0xf   :  { %3813 = sst [smem:[#allocation53_spill]] %s3784_s16 }
  0x10   :  { %3814 = sst [smem:[#allocation54_spill]] %s3785_s17 }
  0x11   :  { %3815 = sst [smem:[#allocation55_spill]] %s3786_s18 }
  0x12   :  { %3816 = sst [smem:[#allocation56_spill]] %s3787_s19 }
  0x13   :  { %3817 = sst [smem:[#allocation57_spill]] %s3788_s20 }
  0x14   :  { %3818 = sst [smem:[#allocation58_spill]] %s3789_s21 }
  0x15   :  { %3819 = sst [smem:[#allocation59_spill]] %s3790_s22 }
  0x16   :  { %3820 = sst [smem:[#allocation60_spill]] %s3791_s23 }
  0x17   :  { %3821 = sst [smem:[#allocation61_spill]] %s3792_s24 }
  0x18   :  { %3822 = sst [smem:[#allocation62_spill]] %s3793_s25 }
  0x19   :  { %30 = vsyncpa [#allocation6], 0 }
  0x1a   :  { %32 = vsyncpa [#allocation6 + $0x1], 0 }
  0x1b   :  { %33 = vsyncpa [#allocation9], 0 }
  0x1c   :  { %35 = vsyncpa [#allocation9 + $0x1], 0 }
  0x1d   :  { %36 = vsyncpa [#allocation12], 0 }
  0x1e   :  { %37 = vsyncpa [#allocation15], 0 }
  0x1f   :  { %38 = vsyncpa [#allocation18], 0 }
  0x20   :  { %39 = vsyncpa [#allocation21], 0 }
  0x21   :  { %40 = vsyncpa [#allocation24], 0 }
  0x22   :  { %41 = vsyncpa [#allocation7], 0 }
  0x23   :  { %43 = vsyncpa [#allocation7 + $0x1], 0  ;;  %s3276_s29 = smov 0   ;;  %s3278_s2 = smov 0  }
  0x24   :  { %s3280_s6 = smov 0   ;;  %s3282_s30 = smov 0  }
  0x25   :  { %s3284_s7 = smov 0   ;;  %s3286_s3 = smov 0  }
  0x26 LB: > { %3823 = sst [smem:[#allocation35_spill]] %s3109_s6  ;;  %s3307_s26 = sadd.s32 4294967295, %s3121_s3   ;;  %s3121_s3 = sphi %s3286_s3, %s49_s3   ;;  %s3117_s7 = sphi %s3284_s7, %s3865_s7   ;;  %s3113_s30 = sphi %s3282_s30, %s3861_s30   ;;  %s3109_s6 = sphi %s3280_s6, %s3860_s6   ;;  %s3105_s2 = sphi %s3278_s2, %s3864_s2   ;;  %s3101_s29 = sphi %s3276_s29, %s3863_s29  }
  0x27   : > { %3824 = sst [smem:[#allocation36_spill]] %s3117_s7  ;;  %p2338_p0 = scmp.ge.s32.totalorder %s3121_s3, 1 }
  0x28   : > { %p84_p1 = scmp.eq.s32.totalorder %s3307_s26, 0  ;;  %p636_p2 = scmp.lt.s32.totalorder %s3121_s3, 3 }
  0x29   : > { %s3825_s27 = sld [smem:[#allocation43_spill]]  ;;  %p2349_p4 = scmp.ge.s32.totalorder %s3121_s3, 2 }
  0x2a   : > { %p3315_p3 = pnand %p2338_p0, %p636_p2  ;;  %s3123_s9 = smov [#allocation10]  }
  0x2b   : > { %s653_s5 = sshll.u32 %s3123_s9, 4  ;;  %s3827_s25 = sld [smem:[#allocation44_spill]]  ;;  %s654_s5 = int_to_ptr.vmem [resolvable:$true] %s653_s5 }
  0x2c   : > { %p2462_p5 = pneg %p3315_p3  ;;  %s3124_s8 = smov [#allocation11]  }
  0x2d   : > { %s3125_s9 = smov 128   ;;  %s3126_s22 = smov 8  }
  0x2e   : > { %p3327_p6 = pnand %p2462_p5, %p84_p1  ;;  %s3829_s0 = sld [smem:[#allocation46_spill]] }
  0x2f   : > { %s651_s4 = sshll.u32 %s3825_s27, 4  ;;  %s664_s27 = sshll.u32 %s3124_s8, 4  ;;  %s652_s4 = int_to_ptr.hbm [resolvable:$true] %s651_s4  ;;  %s665_s27 = int_to_ptr.vmem [resolvable:$true] %s664_s27 }
  0x30   : > { %2465 = dma.hbm_to_vmem [thread:$0]  (!%p3327_p6), %s652_s4, 16, %s654_s5, [#allocation9]  }
  0x31   : > { %s662_s23 = sshll.u32 %s3827_s25, 4  ;;  %s3127_s18 = smov [#allocation14]   ;;  %s663_s23 = int_to_ptr.hbm [resolvable:$true] %s662_s23 }
  0x32   : > { %2468 = dma.hbm_to_vmem [thread:$0]  (!%p3327_p6), %s663_s23, 512, %s665_s27, [#allocation12], %s3125_s9, %s3125_s9, %s3126_s22  }
  0x33   : > { %s690_s17 = sshll.u32 %s3127_s18, 4  ;;  %s3830_s5 = sld [smem:[#allocation48_spill]]  ;;  %s691_s17 = int_to_ptr.vmem [resolvable:$true] %s690_s17 }
  0x34   : > { %s688_s20 = sshll.u32 %s3829_s0, 4  ;;  %s3128_s23 = smov [#allocation17]   ;;  %s689_s20 = int_to_ptr.hbm [resolvable:$true] %s688_s20 }
  0x35   : > { %2474 = dma.hbm_to_vmem [thread:$0]  (!%p3327_p6), %s689_s20, 512, %s691_s17, [#allocation15], %s3125_s9, %s3125_s9, %s3126_s22  }
  0x36   : > { %s717_s27 = sshll.u32 %s3128_s23, 4  ;;  %s3831_s15 = sld [smem:[#allocation52_spill]]  ;;  %s718_s27 = int_to_ptr.vmem [resolvable:$true] %s717_s27 }
  0x37   : > { %s3832_s8 = sld [smem:[#allocation45_spill]]  ;;  %s3130_s12 = smov [#allocation13]  }
  0x38   : > { %s679_s17 = sshll.u32 %s3130_s12, 4  ;;  %s3833_s24 = sld [smem:[#allocation47_spill]]  ;;  %s680_s17 = int_to_ptr.vmem [resolvable:$true] %s679_s17 }
  0x39   : > { %s715_s16 = sshll.u32 %s3830_s5, 4  ;;  %s3129_s5 = smov [#allocation20]   ;;  %s716_s16 = int_to_ptr.hbm [resolvable:$true] %s715_s16 }
  0x3a   : > { %2480 = dma.hbm_to_vmem [thread:$0]  (!%p3327_p6), %s716_s16, 16, %s718_s27, [#allocation18]  }
  0x3b   : > { %s754_s10 = sshll.u32 %s3129_s5, 4  ;;  %s3834_s13 = sld [smem:[#allocation51_spill]]  ;;  %s755_s10 = int_to_ptr.vmem [resolvable:$true] %s754_s10 }
  0x3c   : > { %s752_s25 = sshll.u32 %s3831_s15, 4  ;;  %s3835_s19 = sld [smem:[#allocation56_spill]]  ;;  %s753_s25 = int_to_ptr.hbm [resolvable:$true] %s752_s25 }
  0x3d   : > { %s677_s4 = sshll.u32 %s3832_s8, 4  ;;  %s3131_s8 = smov [#allocation16]   ;;  %s678_s4 = int_to_ptr.hbm [resolvable:$true] %s677_s4 }
  0x3e   : > { %2486 = dma.hbm_to_vmem [thread:$0]  (!%p3327_p6), %s753_s25, 512, %s755_s10, [#allocation21], %s3125_s9, %s3125_s9, %s3126_s22  }
  0x3f   : > { %s703_s16 = sshll.u32 %s3833_s24, 4  ;;  %s705_s5 = sshll.u32 %s3131_s8, 4  ;;  %s704_s16 = int_to_ptr.hbm [resolvable:$true] %s703_s16  ;;  %s706_s5 = int_to_ptr.vmem [resolvable:$true] %s705_s5 }
  0x40   : > { %2471 = dma.hbm_to_vmem [thread:$0]  (!%p3327_p6), %s678_s4, 16, %s680_s17, [#allocation12]  }
  0x41   : > { %s735_s0 = sshll.u32 %s3834_s13, 4  ;;  %s3132_s10 = smov [#allocation19]   ;;  %s736_s0 = int_to_ptr.hbm [resolvable:$true] %s735_s0 }
  0x42   : > { %2477 = dma.hbm_to_vmem [thread:$0]  (!%p3327_p6), %s704_s16, 16, %s706_s5, [#allocation15]  }
  0x43   : > { %s737_s25 = sshll.u32 %s3132_s10, 4  ;;  %s775_s4 = sshll.u32 %s3835_s19, 4  ;;  %s738_s25 = int_to_ptr.vmem [resolvable:$true] %s737_s25  ;;  %s776_s4 = int_to_ptr.hbm [resolvable:$true] %s775_s4 }
  0x44   : > { %2483 = dma.hbm_to_vmem [thread:$0]  (!%p3327_p6), %s736_s0, 512, %s738_s25, [#allocation18], %s3125_s9, %s3125_s9, %s3126_s22  }
  0x45   : > { %s3836_s21 = sld [smem:[#allocation58_spill]]  ;;  %s3133_s16 = smov [#allocation22]  }
  0x46   : > { %s777_s27 = sshll.u32 %s3133_s16, 4  ;;  %s3134_s18 = smov [#allocation23]   ;;  %s778_s27 = int_to_ptr.vmem [resolvable:$true] %s777_s27 }
  0x47   : > { %2489 = dma.hbm_to_vmem [thread:$0]  (!%p3327_p6), %s776_s4, 512, %s778_s27, [#allocation21], %s3125_s9, %s3125_s9, %s3126_s22  }
  0x48   : > { %s794_s0 = sshll.u32 %s3134_s18, 4  ;;  %s2337_s8 = sadd.s32 4294967294, %s3121_s3   ;;  %s795_s0 = int_to_ptr.vmem [resolvable:$true] %s794_s0 }
  0x49   : > { %s61_s5 = sadd.s32 1, %s3117_s7  ;;  %s70_s10 = sadd.s32 1, %s3109_s6 }
  0x4a   : > { %p63_p7 = scmp.ge.s32.totalorder %s61_s5, 2  ;;  %p77_p8 = scmp.ne.s32.totalorder %s3109_s6, %s3105_s2 }
  0x4b   : > { %s792_s24 = sshll.u32 %s3836_s21, 4  ;;  %p78_p9 = scmp.eq.s32.totalorder %s3121_s3, 0  ;;  %s793_s24 = int_to_ptr.hbm [resolvable:$true] %s792_s24 }
  0x4c   : > { %2492 = dma.hbm_to_vmem [thread:$0]  (!%p3327_p6), %s793_s24, 512, %s795_s0, [#allocation24], %s3125_s9, %s3125_s9, %s3126_s22  }
  0x4d   : > { %s3867_s5 = smov (%p63_p7, %s61_s5), 0  ;;  %p3401_p10 = por %p78_p9, %p77_p8 }
  0x4e   : > { %3837 = sst [smem:[#allocation37_spill]] %s3867_s5  ;;  %p83_p11 = scmp.ne.s32.totalorder %s3105_s2, %s3101_s29 }
  0x4f   : > { %s65_s1 = ssub.s32 %s3117_s7, %s3867_s5  ;;  %p623_p12 = scmp.eq.s32.totalorder %s3307_s26, 1 }
  0x50   : > { %p68_p13 = scmp.eq.s32.totalorder %s65_s1, 0  ;;  %p3412_p0 = por %p84_p1, %p83_p11 }
  0x51   : > { %p3416_p2 = por %p623_p12, %p77_p8  ;;  %p629_p5 = scmp.eq.s32.totalorder %s2337_s8, 1 }
  0x52   : > { %s3421_s12 = scalar_select %p68_p13, %s3109_s6, %s70_s10  }
  0x53   : > { %p3423_p6 = por %p629_p5, %p83_p11  ;;  %p2514_p7 = scmp.lt.s32.totalorder %s3121_s3, 2 }
  0x54   : > { %3841 = sst [smem:[#allocation38_spill]] %s3421_s12  ;;  %s817_s4 = sand.u32 1, %s3109_s6  }
  0x55   : > { %s2351_s17 = sshll.u32 %s3117_s7, 3  ;;  %s2350_s23 = sshll.u32 %s817_s4, 3 }
  0x56   : > { %s3843_s27 = sld [smem:[#allocation39_spill]]  ;;  %s821_s1 = scalar_lea.vmem [#allocation5], %s2350_s23 }
  0x57   : > { %s830_s13 = sshll.u32 %s821_s1, 4  ;;  %p2494_p8 = pnand %p2514_p7, %p3401_p10  ;;  %s831_s13 = int_to_ptr.vmem [resolvable:$true] %s830_s13 }
  0x58   : > { %s3844_s15 = sld [smem:[#allocation40_spill]]  ;;  %s837_s21 = sand.u32 1, %s3121_s3  }
  0x59   : > { %s818_s5 = scalar_lea.sflag [#allocation6], %s817_s4  ;;  %s841_s12 = scalar_lea.vmem [#allocation8], %s2350_s23 }
  0x5a   : > { %s849_s6 = sshll.u32 %s841_s12, 4  ;;  %s838_s24 = scalar_lea.sflag [#allocation9], %s837_s21  ;;  %s850_s6 = int_to_ptr.vmem [resolvable:$true] %s849_s6 }
  0x5b   : > { %s3442_s25 = sand.u32 (!%p3315_p3), 1, %s3105_s2  }
  0x5c   : > { %s826_s18 = scalar_lea.hbm %s3843_s27, %s2351_s17 }
  0x5d   : > { %s828_s0 = sshll.u32 %s826_s18, 4  ;;  %866 = sbr.rel (%p3315_p3) target bundleno = 3534 (0xdce), region = 120  ;;  %s829_s0 = int_to_ptr.hbm [resolvable:$true] %s828_s0 }
  0x5e   : > { %s845_s19 = scalar_lea.hbm %s3844_s15, %s2351_s17  ;;  %s3445_s15 = sshll.u32 (!%p3315_p3), %s3442_s25, 3 }
  0x5f   : > { %2496 = dma.hbm_to_vmem [thread:$0]  (!%p2494_p8), %s829_s0, 128, %s831_s13, %s818_s5  }
  0x60   : > { %s847_s7 = sshll.u32 %s845_s19, 4  ;;  %s869_s13 = scalar_lea.sflag (!%p3315_p3), [#allocation6], %s3442_s25  ;;  %s848_s7 = int_to_ptr.hbm [resolvable:$true] %s847_s7 }
  0x61   : > { %2499 = dma.hbm_to_vmem [thread:$0]  (!%p2494_p8), %s848_s7, 128, %s850_s6, %s838_s24  }
  0x62   : > { %s872_s19 = scalar_lea.vmem [#allocation5], %s3445_s15 }
  0x63   : > { %3064 = dma.done.wait (%p3412_p0), %s869_s13, 128  }
  0x64   : > { %3066 = vsyncadd (%p3412_p0), %s869_s13, 4294967168  ;;  %s878_s21 = sand.u32 1, %s3307_s26   ;;  %s882_s7 = scalar_lea.vmem [#allocation8], %s3445_s15 }
  0x65   : > { %s879_s6 = scalar_lea.sflag [#allocation9], %s878_s21 }
  0x66   : > { %3068 = dma.done.wait (%p3412_p0), %s879_s6, 128  }
  0x67   : > { %3070 = vsyncadd (%p3412_p0), %s879_s6, 4294967168 }
  0x68   : > { %3072 = dma.done.wait (%p84_p1), [#allocation9], 16  }
  0x69   : > { %3074 = vsyncadd (%p84_p1), [#allocation9], 4294967280 }
  0x6a   : > { %3076 = dma.done.wait (%p84_p1), [#allocation12], 528  }
  0x6b   : > { %3078 = vsyncadd (%p84_p1), [#allocation12], 4294966768 }
  0x6c   : > { %3080 = dma.done.wait (%p84_p1), [#allocation15], 528  }
  0x6d   : > { %3082 = vsyncadd (%p84_p1), [#allocation15], 4294966768 }
  0x6e   : > { %3084 = dma.done.wait (%p84_p1), [#allocation18], 528  }
  0x6f   : > { %3086 = vsyncadd (%p84_p1), [#allocation18], 4294966768 }
  0x70   : > { %3088 = dma.done.wait (%p84_p1), [#allocation21], 1024  }
  0x71   : > { %3090 = vsyncadd (%p84_p1), [#allocation21], 4294966272 }
  0x72   : > { %3092 = dma.done.wait (%p84_p1), [#allocation24], 512  }
  0x73   : > { %3094 = vsyncadd (%p84_p1), [#allocation24], 4294966784  ;;  %v1023_v0 = vld [vmem:[#allocation11 + $0x18] sm:$0xff]  ;;  %s3845_s22 = sld [smem:[#allocation42_spill]]  ;;  %v1022_v2 = vld [vmem:[#allocation11 + $0x10] sm:$0xff]  ;;  %vm1028_vm0 = vcmask 261120  }
  0x74   : > { %1044 = vmatpush.msra.mxu0 %v1023_v0  ;;  %v1021_v4 = vld [vmem:[#allocation11 + $0x8] sm:$0xff]  ;;  %v1020_v6 = vld [vmem:[#allocation11] sm:$0xff]  ;;  %vm1052_vm1 = vcmask 523264   ;;  %v2598_v13 = vld [vmem:[#allocation10] ss:$0 sm:$0xff]  ;;  %vm1135_vm2 = vcmask 64512  }
  0x75   : > { %v1019_v8 = vld [vmem:[%s882_s7] sm:$0xff]  ;;  %v1096_v9 = vld [vmem:[%s872_s19] sm:$0xff]  ;;  %s3135_s27 = smov 120   ;;  %s3136_s18 = smov 112   ;;  %vm1094_vm7 = vcmask 519168  }
  0x76   : > { %1045 = vmatpush.msra.mxu0 %v1022_v2  ;;  %v2597_v10 = vld [vmem:[#allocation13] ss:$0 sm:$0xff]  ;;  %s3137_s0 = smov 96   ;;  %s3138_s1 = smov 104   ;;  %v1058_v31 = vld [vmem:[#allocation19 + $0x10] sm:$0xff]  ;;  %v1057_v32 = vld [vmem:[#allocation19 + $0x8] sm:$0xff] }
  0x77   : > { %p1010_p1 = scmp.lt.s32.totalorder %s3113_s30, 1  ;;  %v1059_v30 = vld [vmem:[#allocation19 + $0x18] sm:$0xff]  ;;  %v1056_v33 = vld [vmem:[#allocation19] sm:$0xff]  ;;  %s3846_s19 = sld [smem:[#allocation41_spill]] }
  0x78   : > { %1046 = vmatpush.msra.mxu0 %v1021_v4  ;;  %1082 = vmatpush.msra.mxu1 %v1059_v30  ;;  %v2599_v51 = vld [vmem:[%s3782_s14] ss:$0 sm:$0xff]  ;;  %s3139_s28 = smov 72   ;;  %s3140_s5 = smov 88  }
  0x79   : > { %v1100_v1 = vld [vmem:[%s3845_s22 + $0x18] sm:$0xff]  ;;  %v1099_v3 = vld [vmem:[%s3845_s22 + $0x10] sm:$0xff]  ;;  %v1098_v5 = vld [vmem:[%s3845_s22 + $0x8] sm:$0xff]  ;;  %s1011_s8 = scalar_select %p1010_p1, %s3113_s30, 1 }
  0x7a   : > { %1121 = vmatpush.msra.mxu2 %v1100_v1  ;;  %v1097_v7 = vld [vmem:[%s3845_s22] sm:$0xff]  ;;  %1047 = vmatpush.msra.mxu0 %v1020_v6  ;;  %s3141_s12 = smov 80   ;;  %s3142_s4 = smov 16  }
  0x7b   : > { %2370 = vmatmul.msk.f32.vlgmr.msra.gmra.mxu0 %vm1028_vm0, %v1019_v8  ;;  %s2415_s10 = sshll.u32 %s1011_s8, 4  ;;  %1083 = vmatpush.msra.mxu1 %v1058_v31  ;;  %s3143_s17 = smov 8  }
  0x7c   : > { %1122 = vmatpush.msra.mxu2 %v1099_v3  ;;  %s3144_s23 = smov 24   ;;  %s3849_s7 = sld [smem:[#allocation49_spill]] }
  0x7d   : > { %1084 = vmatpush.msra.mxu1 %v1057_v32  ;;  %s1014_s21 = scalar_lea.vmem %s3846_s19, %s2415_s10  ;;  %s3850_s8 = sld [smem:[#allocation50_spill]] }
  0x7e   : > { %1123 = vmatpush.msra.mxu2 %v1098_v5  ;;  %v1054_v34 = vld [vmem:[%s1014_s21] sm:$0xff]  ;;  %v1055_v35 = vld [vmem:[%s1014_s21 + $0x8] sm:$0xf]  ;;  %s3854_s13 = sld [smem:[#allocation57_spill]]  ;;  %s2412_s6 = sshll.u32 %s3113_s30, 3 }
  0x7f   : > { %1085 = vmatpush.msra.mxu1 %v1056_v33  ;;  %s3856_s16 = sld [smem:[#allocation60_spill]]  ;;  %s1009_s30 = scalar_lea.vmem [#allocation25], %s3445_s15 }
  0x80   : > { %1124 = vmatpush.msra.mxu2 %v1097_v7  ;;  %2371 = vmatmul.msk.f32.vlgmr.msra.gmra.mxu1 %vm1028_vm0, %v1054_v34 }
  0x81   : > { %2373 = vmatmul.msk.f32.vlgmr.msra.gmra.mxu2 %vm1028_vm0, %v1096_v9 }
  0x88   : > { %2372 = vmatmul.msk.f32.gmra.mxu1 %vm1028_vm0, %v1055_v35 }
  0xf8   : > { %v1049_v11 = vpop.f32.mrf.mxu0 }
  0xf9   : > { %v1050_v12 = vadd.f32 %v2597_v10, %v1049_v11 }
  0xfb   : > { %1053 = vst.msk [vmem:[#allocation2] sm:$0xff] %vm1052_vm1, %v1050_v12 }
  0xfd   : > { %v1087_v52 = vpop.f32.mrf.mxu1 }
  0xfe   : > { %v1088_v53 = vadd.f32 %v2599_v51, %v1087_v52 }
 0x100   : > { %1093 = vst.msk [vmem:[#allocation3] sm:$0xff] %vm1052_vm1, %v1088_v53 }
 0x102   : > { %v3501_v16 = vld [vmem:[#allocation2] sm:$0xff] }
 0x103   : > { %1218 = vrot.lane.b32.xlu1 %v3501_v16, %s3135_s27  ;;  %2374 = vmatpush.xpose.msk.msra.mxu3 %vm1135_vm2, %v3501_v16 }
 0x104   : > { %v1126_v14 = vpop.f32.mrf.mxu2 }
 0x105   : > { %v1127_v15 = vadd.f32 %v2598_v13, %v1126_v14  ;;  %v1090_v54 = vpop.f32.mrf.mxu1 }
 0x106   : > { %v1091_v55 = vadd.f32 %v2599_v51, %v1090_v54 }
 0x107   : > { %1215 = vrot.lane.b32.xlu2 %v1127_v15, %s3135_s27  ;;  %2375 = vmatmul.msk.f32.vlgmr.msra.gmra.mxu3 %vm1135_vm2, %v1127_v15  ;;  %v3544_v57 = vld [vmem:[#allocation3] sm:$0xff] }
 0x108   : > { %1095 = vst.msk [vmem:[#allocation3 + $0x8] sm:$0xf] %vm1094_vm7, %v1091_v55  ;;  %vm1386_vm7 = vcmask 195712  }
 0x10b   : > { %1187 = vrot.lane.b32.xlu1 %v3501_v16, %s3137_s0 }
 0x10f   : > { %1305 = vrot.lane.b32.xlu2 %v3501_v16, %s3136_s18  ;;  %v3540_v56 = vld [vmem:[#allocation3 + $0x8] sm:$0xf] }
 0x113   : > { %1302 = vrot.lane.b32.xlu1 %v1127_v15, %s3136_s18 }
 0x117   : > { %1389 = vrot.lane.b32.xlu2 %v1127_v15, %s3138_s1 }
 0x161   : > { %v1216_v17 = vpop.permute.xlu2 %1215 }
 0x169   : > { %v1306_v20 = vpop.permute.xlu2 %1305 }
 0x171   : > { %v1390_v49 = vpop.permute.xlu2 %1389 }
 0x175   : > { %v1219_v18 = vpop.permute.xlu1 %1218 }
 0x176   : > { %2377 = vmatpush.xpose.msk.msrb.mxu0 %vm1135_vm2, %v1219_v18 }
 0x179   : > { %2378 = vmatmul.msk.f32.vlgmr.msrb.gmra.mxu0 %vm1135_vm2, %v1216_v17 }
 0x17d   : > { %v1188_v19 = vpop.permute.xlu1 %1187 }
 0x17e   : > { %1208 = vmatpush.msrb.mxu3 %v1188_v19 }
 0x180   : > { %2380 = vmatpush.xpose.msk.msra.mxu3 %vm1135_vm2, %v1306_v20 }
 0x185   : > { %v1303_v50 = vpop.permute.xlu1 %1302 }
 0x18a   : > { %v1159_v21 = vpop.f32.mrf.mxu3 }
 0x18b   : > { %v1162_v22 = vsel %vm1135_vm2, %v1159_v21, -inf }
 0x18c   : > { %1163 = vmax.xlane.f32.xlu0 %v1162_v22 }
 0x1f6   : > { %v3518_v23 = vpop.f32.mrf.mxu0 }
 0x1f7   : > { %v1244_v24 = vsel %vm1135_vm2, %v3518_v23, -inf }
 0x1f8   : > { %1245 = vmax.xlane.f32.xlu1 %v1244_v24 }
 0x1ff   : > { %v1164_v25 = vpop.xlane.xlu0 %1163 }
 0x200   : > { %v1165_v26 = vsub.f32 %v1159_v21, %v1164_v25 }
 0x202   : > { %v1166_v27 = vmul.f32 1.442695, %v1165_v26 }
 0x204   : > { %2611 = vpow2.f32 %v1166_v27 }
 0x20a   : > { %v2612_v28 = vpop.eup %2611 }
 0x20b   : > { %v1168_v29 = vsel %vm1135_vm2, %v2612_v28, 0.0 }
 0x20c   : > { %1169 = vadd.xlane.f32.xlu0 %v1168_v29 }
 0x220   : > { %1392 = vrot.lane.b32.xlu0 %v3501_v16, %s3138_s1 }
 0x26b   : > { %v1246_v58 = vpop.xlane.xlu1 %1245 }
 0x26c   : > { %v1247_v59 = vsub.f32 %v3518_v23, %v1246_v58 }
 0x26e   : > { %v1248_v60 = vmul.f32 1.442695, %v1247_v59  ;;  %v3585_v59 = vld [vmem:[#allocation3 + $0x8] sm:$0xf] }
 0x27f   : > { %v1170_v36 = vpop.xlane.xlu0 %1169 }
 0x280   : > { %2613 = vrcp.f32 %v1170_v36  ;;  %v1182_v40 = vand.u32 2147483648, %v1170_v36  ;;  %v1180_v42 = vand.u32 2147483647, %v1170_v36  ;;  %vm1176_vm4 = vweird.f32 %v1170_v36 }
 0x281   : > { %2615 = vpow2.f32 %v1248_v60  ;;  %v3591_v60 = vld [vmem:[#allocation3 + $0x8] sm:$0xf] }
 0x282   : > { %v1183_v44 = vor.u32 1.1754944e-38, %v1182_v40  ;;  %vm1181_vm6 = vcmp.eq.f32.partialorder %v1180_v42, 8.507059e+37 }
 0x286   : > { %v2614_v37 = vpop.eup %2613 }
 0x287   : > { %v1172_v38 = vmul.f32 %v2614_v37, %v1170_v36  ;;  %vm1177_vm3 = vweird.f32 %v2614_v37  ;;  %v3551_v0 = vpop.eup %2615 }
 0x288   : > { %vm1178_vm5 = vmor %vm1176_vm4, %vm1177_vm3  ;;  %v1250_v1 = vsel %vm1135_vm2, %v3551_v0, 0.0 }
 0x289   : > { %v1173_v39 = vsub.f32 1.0, %v1172_v38 }
 0x28b   : > { %v1174_v41 = vmul.f32 %v2614_v37, %v1173_v39 }
 0x28d   : > { %v1175_v43 = vadd.f32 %v2614_v37, %v1174_v41 }
 0x28f   : > { %v1179_v45 = vsel %vm1178_vm5, %v2614_v37, %v1175_v43 }
 0x290   : > { %v1184_v46 = vsel %vm1181_vm6, %v1183_v44, %v1179_v45  ;;  %vm1299_vm6 = vcmask 130112  }
 0x291   : > { %v1186_v47 = vmul.f32 %v2612_v28, %v1184_v46 }
 0x292   : > { %v1393_v48 = vpop.permute.xlu0 %1392 }
 0x293   : > { %2376 = vmatmul.msk.f32.vlgmr.msrb.gmra.mxu3 %vm1135_vm2, %v1186_v47  ;;  %2383 = vmatpush.xpose.msk.msrb.mxu1 %vm1135_vm2, %v1393_v48 }
 0x296   : > { %2384 = vmatmul.msk.f32.vlgmr.msrb.gmra.mxu1 %vm1135_vm2, %v1390_v49 }
 0x297   : > { %2388 = vmatpush.xpose.msk.msra.mxu1 %vm1135_vm2, %v3540_v56 }
 0x29b   : > { %2381 = vmatmul.msk.f32.vlgmr.msra.gmra.mxu3 %vm1135_vm2, %v1303_v50  ;;  %2389 = vmatpush.xpose.msk.msra.mxu1 %vm1135_vm2, %v3544_v57 }
 0x313   : > { %v1415_v61 = vpop.f32.mrf.mxu1 }
 0x314   : > { %v1418_v62 = vsel %vm1135_vm2, %v1415_v61, -inf }
 0x315   : > { %1419 = vmax.xlane.f32.xlu2 %v1418_v62  ;;  %v1132_v62 = vld [vmem:[#allocation14 + $0x18] sm:$0xff] }
 0x316   : > { %v1210_v63 = vpop.f32.mrf.mxu3  ;;  %1494 = vmatpush.msrb.mxu3 %v1132_v62 }
 0x317   : > { %1213 = vst.msk [vmem:[#allocation4] sm:$0xff] %vm1135_vm2, %v1210_v63  ;;  %v1131_v63 = vld [vmem:[#allocation14 + $0x10] sm:$0xff] }
 0x318   : > { %1495 = vmatpush.msrb.mxu3 %v1131_v63 }
 0x31d   : > { %1251 = vadd.xlane.f32.xlu2 %v1250_v1  ;;  %v1129_v1 = vld [vmem:[#allocation14] sm:$0xff] }
 0x31e   : > { %v1328_v2 = vpop.f32.mrf.mxu3 }
 0x31f   : > { %v1331_v3 = vsel %vm1135_vm2, %v1328_v2, -inf }
 0x320   : > { %1332 = vmax.xlane.f32.xlu0 %v1331_v3 }
 0x334   : > { %1443 = vrot.lane.b32.xlu0 %v3501_v16, %s3139_s28 }
 0x388   : > { %v1420_v4 = vpop.xlane.xlu2 %1419 }
 0x389   : > { %v1421_v5 = vsub.f32 %v1415_v61, %v1420_v4  ;;  %v3595_v61 = vld [vmem:[#allocation3 + $0x8] sm:$0xf] }
 0x38b   : > { %v1422_v6 = vmul.f32 1.442695, %v1421_v5 }
 0x38d   : > { %2617 = vpow2.f32 %v1422_v6 }
 0x390   : > { %v1252_v14 = vpop.xlane.xlu2 %1251 }
 0x391   : > { %v1264_v26 = vand.u32 2147483648, %v1252_v14  ;;  %vm1258_vm9 = vweird.f32 %v1252_v14  ;;  %v1262_v27 = vand.u32 2147483647, %v1252_v14 }
 0x393   : > { %v3558_v7 = vpop.eup %2617  ;;  %v1333_v8 = vpop.xlane.xlu0 %1332  ;;  %v1265_v30 = vor.u32 1.1754944e-38, %v1264_v26  ;;  %vm1263_vm11 = vcmp.eq.f32.partialorder %v1262_v27, 8.507059e+37 }
 0x394   : > { %v1334_v9 = vsub.f32 %v1328_v2, %v1333_v8  ;;  %v1424_v10 = vsel %vm1135_vm2, %v3558_v7, 0.0 }
 0x395   : > { %1425 = vadd.xlane.f32.xlu1 %v1424_v10  ;;  %v2600_v10 = vld [vmem:[#allocation16] ss:$0 sm:$0xff] }
 0x396   : > { %v1335_v11 = vmul.f32 1.442695, %v1334_v9 }
 0x398   : > { %2619 = vpow2.f32 %v1335_v11 }
 0x399   : > { %2621 = vrcp.f32 %v1252_v14 }
 0x39e   : > { %v3562_v12 = vpop.eup %2619 }
 0x39f   : > { %v1337_v13 = vsel %vm1135_vm2, %v3562_v12, 0.0  ;;  %v2622_v15 = vpop.eup %2621 }
 0x3a0   : > { %1338 = vadd.xlane.f32.xlu2 %v1337_v13  ;;  %v1254_v18 = vmul.f32 %v2622_v15, %v1252_v14  ;;  %vm1259_vm8 = vweird.f32 %v2622_v15  ;;  %v3145_v14 = vmov 32.0  }
 0x3a1   : > { %vm1260_vm10 = vmor %vm1258_vm9, %vm1259_vm8  ;;  %vm1473_vm8 = vcmask 261312  }
 0x3a2   : > { %v1255_v19 = vsub.f32 1.0, %v1254_v18 }
 0x3a4   : > { %v1256_v21 = vmul.f32 %v2622_v15, %v1255_v19 }
 0x3a6   : > { %v1257_v24 = vadd.f32 %v2622_v15, %v1256_v21  ;;  %v1444_v45 = vpop.permute.xlu0 %1443 }
 0x3a8   : > { %v1261_v29 = vsel %vm1260_vm10, %v2622_v15, %v1257_v24 }
 0x3a9   : > { %v1266_v34 = vsel %vm1263_vm11, %v1265_v30, %v1261_v29  ;;  %v1542_v29 = vld [vmem:[%s3779_s11 + $0x8] sm:$0xff]  ;;  %v1541_v30 = vld [vmem:[%s3779_s11] sm:$0xff] }
 0x3aa   : > { %v1268_v42 = vmul.f32 %v3551_v0, %v1266_v34  ;;  %v1130_v0 = vld [vmem:[#allocation14 + $0x8] sm:$0xff] }
 0x3ab   : > { %1496 = vmatpush.msrb.mxu3 %v1130_v0 }
 0x3ad   : > { %1497 = vmatpush.msrb.mxu3 %v1129_v1 }
 0x3ae   : > { %1269 = vrot.lane.b32.xlu1 %v3501_v16, %s3140_s5 }
 0x3b8   : > { %1356 = vrot.lane.b32.xlu2 %v3501_v16, %s3141_s12 }
 0x408   : > { %v1426_v17 = vpop.xlane.xlu1 %1425 }
 0x409   : > { %2623 = vrcp.f32 %v1426_v17  ;;  %v1438_v37 = vand.u32 2147483648, %v1426_v17  ;;  %vm1432_vm14 = vweird.f32 %v1426_v17  ;;  %v1436_v40 = vand.u32 2147483647, %v1426_v17 }
 0x40b   : > { %v1439_v48 = vor.u32 1.1754944e-38, %v1438_v37  ;;  %vm1437_vm5 = vcmp.eq.f32.partialorder %v1436_v40, 8.507059e+37 }
 0x40f   : > { %v2624_v20 = vpop.eup %2623 }
 0x410   : > { %v1428_v22 = vmul.f32 %v2624_v20, %v1426_v17  ;;  %vm1433_vm12 = vweird.f32 %v2624_v20 }
 0x411   : > { %vm3571_vm15 = vmor %vm1432_vm14, %vm1433_vm12  ;;  %vm1608_vm14 = vcmask 97280  }
 0x412   : > { %v1429_v25 = vsub.f32 1.0, %v1428_v22 }
 0x413   : > { %v1339_v23 = vpop.xlane.xlu2 %1338 }
 0x414   : > { %2625 = vrcp.f32 %v1339_v23  ;;  %v1430_v28 = vmul.f32 %v2624_v20, %v1429_v25  ;;  %v1351_v36 = vand.u32 2147483648, %v1339_v23  ;;  %v1349_v39 = vand.u32 2147483647, %v1339_v23 }
 0x415   : > { %vm1345_vm1 = vweird.f32 %v1339_v23  ;;  %2627 = vrcp.f32 %v3145_v14 }
 0x416   : > { %v1431_v35 = vadd.f32 %v2624_v20, %v1430_v28  ;;  %v1352_v47 = vor.u32 1.1754944e-38, %v1351_v36  ;;  %vm1350_vm4 = vcmp.eq.f32.partialorder %v1349_v39, 8.507059e+37  ;;  %v1543_v28 = vld [vmem:[%s3779_s11 + $0x10] sm:$0xff]  ;;  %v2601_v39 = vld [vmem:[#allocation17] ss:$0 sm:$0xff] }
 0x418   : > { %v1435_v46 = vsel %vm3571_vm15, %v2624_v20, %v1431_v35 }
 0x419   : > { %v1440_v51 = vsel %vm1437_vm5, %v1439_v48, %v1435_v46  ;;  %v2603_v48 = vld [vmem:[%s3850_s8] ss:$0 sm:$0xff] }
 0x41a   : > { %v2626_v16 = vpop.eup %2625  ;;  %v1442_v53 = vmul.f32 %v3558_v7, %v1440_v51 }
 0x41b   : > { %v1341_v31 = vmul.f32 %v2626_v16, %v1339_v23  ;;  %v1357_v32 = vpop.permute.xlu2 %1356  ;;  %vm1346_vm13 = vweird.f32 %v2626_v16  ;;  %v2628_v15 = vpop.eup %2627 }
 0x41c   : > { %1377 = vmatpush.msra.mxu0 %v1357_v32  ;;  %vm1347_vm3 = vmor %vm1345_vm1, %vm1346_vm13  ;;  %v1508_v17 = vmul.f32 32.0, %v2628_v15  ;;  %vm1512_vm9 = vweird.f32 %v2628_v15  ;;  %vm1642_vm13 = vcmask 1043456  }
 0x41d   : > { %v1342_v33 = vsub.f32 1.0, %v1341_v31 }
 0x41e   : > { %v1509_v18 = vsub.f32 1.0, %v1508_v17 }
 0x41f   : > { %v1343_v38 = vmul.f32 %v2626_v16, %v1342_v33 }
 0x420   : > { %v1270_v41 = vpop.permute.xlu1 %1269  ;;  %v1510_v19 = vmul.f32 %v2628_v15, %v1509_v18 }
 0x421   : > { %v1344_v44 = vadd.f32 %v2626_v16, %v1343_v38  ;;  %1290 = vmatpush.msrb.mxu2 %v1270_v41 }
 0x422   : > { %2379 = vmatmul.msk.f32.vlgmr.msrb.gmra.mxu2 %vm1135_vm2, %v1268_v42  ;;  %v1511_v20 = vadd.f32 %v2628_v15, %v1510_v19  ;;  %v2602_v42 = vld [vmem:[%s3849_s7] ss:$0 sm:$0xff] }
 0x423   : > { %v1348_v49 = vsel %vm1347_vm3, %v2626_v16, %v1344_v44  ;;  %1464 = vmatpush.msra.mxu2 %v1444_v45  ;;  %v1544_v16 = vld [vmem:[%s3779_s11 + $0x18] sm:$0xff] }
 0x424   : > { %v1353_v50 = vsel %vm1350_vm4, %v1352_v47, %v1348_v49  ;;  %v3612_v21 = vsel %vm1512_vm9, %v2628_v15, %v1511_v20  ;;  %1564 = vmatpush.msrb.mxu0 %v1544_v16 }
 0x425   : > { %v1355_v52 = vmul.f32 %v3562_v12, %v1353_v50 }
 0x426   : > { %1565 = vmatpush.msrb.mxu0 %v1543_v28 }
 0x427   : > { %2382 = vmatmul.msk.f32.vlgmr.msra.gmra.mxu0 %vm1135_vm2, %v1355_v52 }
 0x428   : > { %1566 = vmatpush.msrb.mxu0 %v1542_v29 }
 0x42a   : > { %2385 = vmatmul.msk.f32.vlgmr.msra.gmra.mxu2 %vm1135_vm2, %v1442_v53  ;;  %1567 = vmatpush.msrb.mxu0 %v1541_v30 }
 0x4a4   : > { %v1379_v54 = vpop.f32.mrf.mxu0 }
 0x4a5   : > { %v1292_v55 = vpop.f32.mrf.mxu2  ;;  %1383 = vrot.lane.b32.xlu1 %v1379_v54, %s3142_s4 }
 0x4a6   : > { %1296 = vrot.lane.b32.xlu0 %v1292_v55, %s3143_s17 }
 0x4ad   : > { %v1466_v58 = vpop.f32.mrf.mxu2 }
 0x4ae   : > { %1470 = vrot.lane.b32.xlu2 %v1466_v58, %s3144_s23 }
 0x4b6   : > { %1674 = vrot.lane.b32.xlu2 %v3585_v59, %s3135_s27 }
 0x4be   : > { %1672 = vrot.lane.b32.xlu2 %v3544_v57, %s3135_s27 }
 0x4c6   : > { %1770 = vrot.lane.b32.xlu2 %v3591_v60, %s3136_s18 }
 0x4ce   : > { %1866 = vrot.lane.b32.xlu2 %v3595_v61, %s3138_s1 }
 0x508   : > { %v1471_v2 = vpop.permute.xlu2 %1470 }
 0x510   : > { %v1675_v3 = vpop.permute.xlu2 %1674 }
 0x511   : > { %2393 = vmatpush.xpose.msk.msra.mxu3 %vm1135_vm2, %v1675_v3 }
 0x517   : > { %v1384_v6 = vpop.permute.xlu1 %1383 }
 0x518   : > { %v1673_v4 = vpop.permute.xlu2 %1672  ;;  %v1297_v5 = vpop.permute.xlu0 %1296 }
 0x519   : > { %1300 = vst.msk [vmem:[#allocation4] sm:$0xff] %vm1299_vm6, %v1297_v5  ;;  %2394 = vmatpush.xpose.msk.msra.mxu3 %vm1135_vm2, %v1673_v4 }
 0x51a   : > { %1387 = vst.msk [vmem:[#allocation4] sm:$0xff] %vm1386_vm7, %v1384_v6 }
 0x51b   : > { %1474 = vst.msk [vmem:[#allocation4] sm:$0xff] %vm1473_vm8, %v1471_v2 }
 0x520   : > { %v1771_v7 = vpop.permute.xlu2 %1770 }
 0x521   : > { %2398 = vmatpush.xpose.msk.msrb.mxu1 %vm1135_vm2, %v1771_v7 }
 0x522   : > { %v1475_v8 = vld [vmem:[#allocation4] sm:$0xff] }
 0x523   : > { %2386 = vmatmul.msk.f32.vlgmr.msrb.gmra.mxu3 %vm1028_vm0, %v1475_v8 }
 0x528   : > { %v1867_v9 = vpop.permute.xlu2 %1866 }
 0x529   : > { %2403 = vmatpush.xpose.msk.msrb.mxu3 %vm1135_vm2, %v1867_v9 }
 0x5a6   : > { %v1499_v11 = vpop.f32.mrf.mxu3 }
 0x5a7   : > { %v1500_v12 = vadd.f32 %v2600_v10, %v1499_v11 }
 0x5a9   : > { %v1504_v13 = vsel %vm1028_vm0, %v1500_v12, 0.0 }
 0x5aa   : > { %1505 = vadd.xlane.f32.xlu0 %v1504_v13 }
 0x5be   : > { %1768 = vrot.lane.b32.xlu0 %v3544_v57, %s3136_s18 }
 0x5c6   : > { %1634 = vrot.lane.b32.xlu0 %v3544_v57, %s3137_s0 }
 0x61d   : > { %v1506_v22 = vpop.xlane.xlu0 %1505 }
 0x61e   : > { %v1514_v23 = vmul.f32 %v3612_v21, %v1506_v22 }
 0x620   : > { %v1515_v24 = vsub.f32 %v1500_v12, %v1514_v23 }
 0x622   : > { %v1516_v25 = vmul.f32 %v1515_v24, %v1515_v24 }
 0x624   : > { %v1517_v26 = vsel %vm1028_vm0, %v1516_v25, 0.0 }
 0x625   : > { %1518 = vadd.xlane.f32.xlu1 %v1517_v26 }
 0x630   : > { %v1769_v27 = vpop.permute.xlu0 %1768 }
 0x631   : > { %2399 = vmatpush.xpose.msk.msrb.mxu1 %vm1135_vm2, %v1769_v27 }
 0x638   : > { %v1635_v47 = vpop.permute.xlu0 %1634 }
 0x63e   : > { %1864 = vrot.lane.b32.xlu1 %v3544_v57, %s3138_s1 }
 0x646   : > { %1636 = vrot.lane.b32.xlu1 %v3540_v56, %s3137_s0  ;;  %s3855_s0 = sld [smem:[#allocation59_spill]] }
 0x698   : > { %v1519_v56 = vpop.xlane.xlu1 %1518 }
 0x699   : > { %v1520_v31 = vmul.f32 %v1519_v56, %v3612_v21 }
 0x69b   : > { %v1521_v32 = vadd.f32 1e-05, %v1520_v31 }
 0x69d   : > { %2629 = vrsqrt.f32 %v1521_v32  ;;  %vm1528_vm11 = vweird.f32 %v1521_v32 }
 0x6a3   : > { %v2630_v33 = vpop.eup %2629 }
 0x6a4   : > { %v1523_v34 = vmul.f32 %v2630_v33, %v1521_v32  ;;  %vm1529_vm10 = vweird.f32 %v2630_v33 }
 0x6a5   : > { %vm1530_vm12 = vmor %vm1528_vm11, %vm1529_vm10 }
 0x6a6   : > { %v1524_v35 = vmul.f32 %v2630_v33, %v1523_v34 }
 0x6a8   : > { %v1525_v36 = vmul.f32 0.5, %v1524_v35 }
 0x6aa   : > { %v1526_v37 = vsub.f32 1.5, %v1525_v36 }
 0x6ac   : > { %v1527_v38 = vmul.f32 %v2630_v33, %v1526_v37 }
 0x6ae   : > { %v1531_v40 = vsel %vm1530_vm12, %v2630_v33, %v1527_v38 }
 0x6af   : > { %v1532_v41 = vmul.f32 %v1531_v40, %v1515_v24 }
 0x6b0   : > { %v1865_v43 = vpop.permute.xlu1 %1864 }
 0x6b1   : > { %v1536_v44 = vmul.f32 %v2601_v39, %v1532_v41  ;;  %2404 = vmatpush.xpose.msk.msrb.mxu3 %vm1135_vm2, %v1865_v43 }
 0x6b3   : > { %v1540_v45 = vadd.f32 %v2602_v42, %v1536_v44 }
 0x6b5   : > { %2387 = vmatmul.msk.f32.vlgmr.msrb.gmra.mxu0 %vm1028_vm0, %v1540_v45 }
 0x6b8   : > { %v1637_v46 = vpop.permute.xlu1 %1636 }
 0x6b9   : > { %2391 = vmatpush.msk.msrb.mxu2 %vm1642_vm13, %v1637_v46 }
 0x6bb   : > { %1660 = vmatpush.msrb.mxu2 %v1635_v47 }
 0x732   : > { %v1569_v49 = vpop.f32.mrf.mxu0 }
 0x733   : > { %v1570_v50 = vadd.f32 %v2603_v48, %v1569_v49 }
 0x735   : > { %1668 = vrot.lane.b32.xlu2 %v1570_v50, %s3135_s27  ;;  %2390 = vmatmul.msk.f32.vlgmr.msra.gmra.mxu1 %vm1135_vm2, %v1570_v50 }
 0x73d   : > { %1764 = vrot.lane.b32.xlu2 %v1570_v50, %s3136_s18  ;;  %s3857_s18 = sld [smem:[#allocation62_spill]] }
 0x743   : > { %s3031_s15 = scalar_lea.hbm %s3857_s18, 16 }
 0x745   : > { %1860 = vrot.lane.b32.xlu2 %v1570_v50, %s3138_s1  ;;  %s3851_s1 = sld [smem:[#allocation53_spill]] }
 0x78f   : > { %v1669_v51 = vpop.permute.xlu2 %1668 }
 0x790   : > { %2395 = vmatmul.msk.f32.vlgmr.msra.gmra.mxu3 %vm1135_vm2, %v1669_v51 }
 0x797   : > { %v1765_v52 = vpop.permute.xlu2 %1764 }
 0x798   : > { %2400 = vmatmul.msk.f32.vlgmr.msrb.gmra.mxu1 %vm1135_vm2, %v1765_v52 }
 0x79f   : > { %v1861_v53 = vpop.permute.xlu2 %1860 }
 0x7a0   : > { %2405 = vmatmul.msk.f32.vlgmr.msrb.gmra.mxu3 %vm1135_vm2, %v1861_v53 }
 0x7b2   : > { %v1605_v54 = vpop.f32.mrf.mxu1 }
 0x7b3   : > { %v1609_v55 = vsel %vm1608_vm14, %v1605_v54, -inf }
 0x7b4   : > { %1610 = vmax.xlane.f32.xlu0 %v1609_v55 }
 0x813   : > { %v1699_v58 = vpop.f32.mrf.mxu3 }
 0x814   : > { %v1702_v62 = vsel %vm1608_vm14, %v1699_v58, -inf }
 0x815   : > { %1703 = vmax.xlane.f32.xlu2 %v1702_v62  ;;  %v1795_v63 = vpop.f32.mrf.mxu1 }
 0x816   : > { %v1798_v0 = vsel %vm1608_vm14, %v1795_v63, -inf }
 0x817   : > { %1799 = vmax.xlane.f32.xlu1 %v1798_v0 }
 0x823   : > { %v1891_v1 = vpop.f32.mrf.mxu3 }
 0x824   : > { %v1894_v2 = vsel %vm1608_vm14, %v1891_v1, -inf }
 0x825   : > { %1895 = vmax.xlane.f32.xlu0 %v1894_v2 }
 0x827   : > { %v1611_v3 = vpop.xlane.xlu0 %1610 }
 0x828   : > { %v1612_v4 = vsub.f32 %v1605_v54, %v1611_v3 }
 0x82a   : > { %v1613_v5 = vmul.f32 1.442695, %v1612_v4 }
 0x82c   : > { %2631 = vpow2.f32 %v1613_v5 }
 0x82d   : > { %1729 = vrot.lane.b32.xlu2 %v3585_v59, %s3140_s5 }
 0x830   : > { %1727 = vrot.lane.b32.xlu1 %v3544_v57, %s3140_s5 }
 0x832   : > { %v2632_v6 = vpop.eup %2631 }
 0x833   : > { %v1615_v7 = vsel %vm1608_vm14, %v2632_v6, 0.0 }
 0x839   : > { %1825 = vrot.lane.b32.xlu0 %v3591_v60, %s3141_s12 }
 0x856   : > { %1616 = vadd.xlane.f32.xlu2 %v1615_v7 }
 0x888   : > { %v1704_v8 = vpop.xlane.xlu2 %1703 }
 0x889   : > { %v1705_v9 = vsub.f32 %v1699_v58, %v1704_v8 }
 0x88a   : > { %v1800_v10 = vpop.xlane.xlu1 %1799 }
 0x88b   : > { %v1706_v11 = vmul.f32 1.442695, %v1705_v9  ;;  %v1801_v12 = vsub.f32 %v1795_v63, %v1800_v10 }
 0x88d   : > { %2633 = vpow2.f32 %v1706_v11  ;;  %v1802_v59 = vmul.f32 1.442695, %v1801_v12 }
 0x88f   : > { %2635 = vpow2.f32 %v1802_v59 }
 0x890   : > { %v1730_v13 = vpop.permute.xlu2 %1729 }
 0x891   : > { %2396 = vmatpush.msk.msra.mxu0 %vm1642_vm13, %v1730_v13 }
 0x893   : > { %v3662_v60 = vpop.eup %2633 }
 0x894   : > { %v1708_v14 = vsel %vm1608_vm14, %v3662_v60, 0.0 }
 0x895   : > { %v3666_v15 = vpop.eup %2635  ;;  %1709 = vadd.xlane.f32.xlu1 %v1708_v14 }
 0x896   : > { %v1804_v17 = vsel %vm1608_vm14, %v3666_v15, 0.0 }
 0x897   : > { %1805 = vadd.xlane.f32.xlu0 %v1804_v17 }
 0x898   : > { %v1896_v18 = vpop.xlane.xlu0 %1895 }
 0x899   : > { %v1897_v19 = vsub.f32 %v1891_v1, %v1896_v18  ;;  %v1575_v18 = vld [vmem:[#allocation20 + $0x18] sm:$0xff] }
 0x89a   : > { %1973 = vmatpush.msra.mxu1 %v1575_v18 }
 0x89b   : > { %v1898_v20 = vmul.f32 1.442695, %v1897_v19  ;;  %v1574_v19 = vld [vmem:[#allocation20 + $0x10] sm:$0xff] }
 0x89c   : > { %1974 = vmatpush.msra.mxu1 %v1574_v19 }
 0x89d   : > { %2637 = vpow2.f32 %v1898_v20  ;;  %v1573_v20 = vld [vmem:[#allocation20 + $0x8] sm:$0xff] }
 0x89e   : > { %1975 = vmatpush.msra.mxu1 %v1573_v20 }
 0x8a2   : > { %v1728_v22 = vpop.permute.xlu1 %1727 }
 0x8a3   : > { %v3670_v23 = vpop.eup %2637  ;;  %1752 = vmatpush.msra.mxu0 %v1728_v22  ;;  %v1572_v22 = vld [vmem:[#allocation20] sm:$0xff] }
 0x8a4   : > { %v1900_v24 = vsel %vm1608_vm14, %v3670_v23, 0.0  ;;  %1976 = vmatpush.msra.mxu1 %v1572_v22 }
 0x8a5   : > { %1901 = vadd.xlane.f32.xlu2 %v1900_v24 }
 0x8ab   : > { %1921 = vrot.lane.b32.xlu0 %v3595_v61, %s3139_s28  ;;  %v1826_v25 = vpop.permute.xlu0 %1825 }
 0x8ac   : > { %2401 = vmatpush.msk.msra.mxu2 %vm1642_vm13, %v1826_v25 }
 0x8ae   : > { %1919 = vrot.lane.b32.xlu1 %v3544_v57, %s3139_s28 }
 0x8bd   : > { %1823 = vrot.lane.b32.xlu2 %v3544_v57, %s3141_s12  ;;  %s3852_s12 = sld [smem:[#allocation54_spill]] }
 0x8c9   : > { %v1617_v26 = vpop.xlane.xlu2 %1616 }
 0x8ca   : > { %2639 = vrcp.f32 %v1617_v26  ;;  %v1629_v29 = vand.u32 2147483648, %v1617_v26  ;;  %v1627_v56 = vand.u32 2147483647, %v1617_v26  ;;  %vm1623_vm1 = vweird.f32 %v1617_v26 }
 0x8cc   : > { %v1630_v61 = vor.u32 1.1754944e-38, %v1629_v29  ;;  %vm1628_vm4 = vcmp.eq.f32.partialorder %v1627_v56, 8.507059e+37 }
 0x8d0   : > { %v2640_v27 = vpop.eup %2639 }
 0x8d1   : > { %v1619_v16 = vmul.f32 %v2640_v27, %v1617_v26  ;;  %vm1624_vm15 = vweird.f32 %v2640_v27  ;;  %v2604_v26 = vld [vmem:[%s3851_s1] ss:$0 sm:$0xff]  ;;  %s2121_s1 = scalar_lea.hbm %s3857_s18, %s2412_s6 }
 0x8d2   : > { %vm1625_vm3 = vmor %vm1623_vm1, %vm1624_vm15 }
 0x8d3   : > { %v1620_v28 = vsub.f32 1.0, %v1619_v16 }
 0x8d5   : > { %v1621_v30 = vmul.f32 %v2640_v27, %v1620_v28 }
 0x8d7   : > { %v1622_v31 = vadd.f32 %v2640_v27, %v1621_v30 }
 0x8d9   : > { %v1626_v32 = vsel %vm1625_vm3, %v2640_v27, %v1622_v31 }
 0x8da   : > { %v1631_v33 = vsel %vm1628_vm4, %v1630_v61, %v1626_v32  ;;  %v2016_v32 = vld [vmem:[#allocation22 + $0x18] sm:$0xff] }
 0x8db   : > { %v1633_v34 = vmul.f32 %v2632_v6, %v1631_v33  ;;  %v2015_v33 = vld [vmem:[#allocation22 + $0x10] sm:$0xff] }
 0x8dd   : > { %2392 = vmatmul.msk.f32.vlgmr.msrb.gmra.mxu2 %vm1608_vm14, %v1633_v34  ;;  %v2014_v34 = vld [vmem:[#allocation22 + $0x8] sm:$0xff] }
 0x908   : > { %v1710_v57 = vpop.xlane.xlu1 %1709 }
 0x909   : > { %2641 = vrcp.f32 %v1710_v57  ;;  %v1720_v41 = vand.u32 2147483647, %v1710_v57  ;;  %v1722_v42 = vand.u32 2147483648, %v1710_v57  ;;  %vm1716_vm9 = vweird.f32 %v1710_v57 }
 0x90a   : > { %v1806_v35 = vpop.xlane.xlu0 %1805 }
 0x90b   : > { %2643 = vrcp.f32 %v1806_v35  ;;  %vm1721_vm12 = vcmp.eq.f32.partialorder %v1720_v41, 8.507059e+37  ;;  %v1723_v47 = vor.u32 1.1754944e-38, %v1722_v42  ;;  %v1818_v48 = vand.u32 2147483648, %v1806_v35 }
 0x90c   : > { %vm1812_vm15 = vweird.f32 %v1806_v35  ;;  %v1816_v51 = vand.u32 2147483647, %v1806_v35 }
 0x90d   : > { %v1819_v58 = vor.u32 1.1754944e-38, %v1818_v48 }
 0x90e   : > { %vm1817_vm3 = vcmp.eq.f32.partialorder %v1816_v51, 8.507059e+37  ;;  %v2047_v51 = vld [vmem:[#allocation23 + $0x10] sm:$0xff] }
 0x90f   : > { %v2642_v36 = vpop.eup %2641 }
 0x910   : > { %v1712_v37 = vmul.f32 %v2642_v36, %v1710_v57  ;;  %vm1717_vm5 = vweird.f32 %v2642_v36  ;;  %v2013_v57 = vld [vmem:[#allocation22] sm:$0xff] }
 0x911   : > { %v2644_v38 = vpop.eup %2643  ;;  %vm1718_vm11 = vmor %vm1716_vm9, %vm1717_vm5 }
 0x912   : > { %v1713_v39 = vsub.f32 1.0, %v1712_v37  ;;  %v1808_v40 = vmul.f32 %v2644_v38, %v1806_v35  ;;  %vm1813_vm10 = vweird.f32 %v2644_v38  ;;  %v2048_v35 = vld [vmem:[#allocation23 + $0x18] sm:$0xff] }
 0x913   : > { %vm1814_vm1 = vmor %vm1812_vm15, %vm1813_vm10  ;;  %2068 = vmatpush.msra.mxu3 %v2048_v35 }
 0x914   : > { %v1714_v43 = vmul.f32 %v2642_v36, %v1713_v39  ;;  %v1809_v44 = vsub.f32 1.0, %v1808_v40 }
 0x915   : > { %2069 = vmatpush.msra.mxu3 %v2047_v51 }
 0x916   : > { %v1715_v45 = vadd.f32 %v2642_v36, %v1714_v43  ;;  %v1810_v46 = vmul.f32 %v2644_v38, %v1809_v44 }
 0x918   : > { %v1719_v49 = vsel %vm1718_vm11, %v2642_v36, %v1715_v45  ;;  %v1811_v50 = vadd.f32 %v2644_v38, %v1810_v46  ;;  %v1902_v52 = vpop.xlane.xlu2 %1901  ;;  %v2605_v45 = vld [vmem:[%s3852_s12] ss:$0 sm:$0xff]  ;;  %s3858_s12 = sld [smem:[#allocation61_spill]] }
 0x919   : > { %v1724_v53 = vsel %vm1721_vm12, %v1723_v47, %v1719_v49  ;;  %2645 = vrcp.f32 %v1902_v52  ;;  %v1914_v6 = vand.u32 2147483648, %v1902_v52  ;;  %v1912_v8 = vand.u32 2147483647, %v1902_v52 }
 0x91a   : > { %v1815_v54 = vsel %vm1814_vm1, %v2644_v38, %v1811_v50  ;;  %v1726_v55 = vmul.f32 %v3662_v60, %v1724_v53  ;;  %vm1908_vm5 = vweird.f32 %v1902_v52  ;;  %v2045_v53 = vld [vmem:[#allocation23] sm:$0xff] }
 0x91b   : > { %v1820_v62 = vsel %vm1817_vm3, %v1819_v58, %v1815_v54  ;;  %v1915_v10 = vor.u32 1.1754944e-38, %v1914_v6  ;;  %v2607_v54 = vld [vmem:[%s3854_s13] ss:$0 sm:$0xff] }
 0x91c   : > { %2397 = vmatmul.msk.f32.vlgmr.msra.gmra.mxu0 %vm1608_vm14, %v1726_v55  ;;  %v1822_v4 = vmul.f32 %v3666_v15, %v1820_v62 }
 0x91d   : > { %v1922_v63 = vpop.permute.xlu0 %1921 }
 0x91e   : > { %2406 = vmatpush.msk.msrb.mxu0 %vm1642_vm13, %v1922_v63  ;;  %vm1913_vm13 = vcmp.eq.f32.partialorder %v1912_v8, 8.507059e+37  ;;  %v2608_v63 = vld [vmem:[%s3855_s0] ss:$0 sm:$0xff] }
 0x91f   : > { %v2646_v0 = vpop.eup %2645  ;;  %v2610_v18 = vld [vmem:[%s3858_s12] ss:$0 sm:$0xff] }
 0x920   : > { %v1904_v1 = vmul.f32 %v2646_v0, %v1902_v52  ;;  %v1920_v2 = vpop.permute.xlu1 %1919  ;;  %v1824_v3 = vpop.permute.xlu2 %1823  ;;  %vm1909_vm4 = vweird.f32 %v2646_v0  ;;  %v2046_v52 = vld [vmem:[#allocation23 + $0x8] sm:$0xff] }
 0x921   : > { %1848 = vmatpush.msra.mxu2 %v1824_v3  ;;  %1944 = vmatpush.msrb.mxu0 %v1920_v2  ;;  %vm1910_vm9 = vmor %vm1908_vm5, %vm1909_vm4 }
 0x922   : > { %v1905_v5 = vsub.f32 1.0, %v1904_v1  ;;  %2402 = vmatmul.msk.f32.vlgmr.msra.gmra.mxu2 %vm1608_vm14, %v1822_v4  ;;  %2070 = vmatpush.msra.mxu3 %v2046_v52 }
 0x923   : > { %2036 = vmatpush.msrb.mxu2 %v2016_v32 }
 0x924   : > { %v1906_v7 = vmul.f32 %v2646_v0, %v1905_v5  ;;  %2071 = vmatpush.msra.mxu3 %v2045_v53 }
 0x925   : > { %2037 = vmatpush.msrb.mxu2 %v2015_v33 }
 0x926   : > { %v1907_v9 = vadd.f32 %v2646_v0, %v1906_v7 }
 0x927   : > { %2038 = vmatpush.msrb.mxu2 %v2014_v34 }
 0x928   : > { %v1911_v11 = vsel %vm1910_vm9, %v2646_v0, %v1907_v9 }
 0x929   : > { %v1916_v12 = vsel %vm1913_vm13, %v1915_v10, %v1911_v11  ;;  %2039 = vmatpush.msrb.mxu2 %v2013_v57 }
 0x92a   : > { %v1918_v59 = vmul.f32 %v3670_v23, %v1916_v12 }
 0x92c   : > { %2407 = vmatmul.msk.f32.vlgmr.msrb.gmra.mxu0 %vm1608_vm14, %v1918_v59 }
 0x960   : > { %v1662_v13 = vpop.f32.mrf.mxu2 }
 0x961   : > { %1665 = vst.msk [vmem:[#allocation4] sm:$0xff] %vm1135_vm2, %v1662_v13 }
 0x999   : > { %v1754_v60 = vpop.f32.mrf.mxu0 }
 0x99a   : > { %1758 = vrot.lane.b32.xlu2 %v1754_v60, %s3143_s17  ;;  %s2125_s17 = sshll.u32 %s2121_s1, 4  ;;  %s2126_s17 = int_to_ptr.hbm [resolvable:$true] %s2125_s17 }
 0x99b   : > { %s3025_s10 = sshra.s32 %s2126_s17, 4  ;;  %s3026_s10 = int_to_ptr.hbm [resolvable:$true] %s3025_s10 }
 0x99c   : > { %s3027_s24 = scalar_lea.hbm %s3026_s10, 8  ;;  %p3032_p11 = scmp.lt.s32.totalorder %s3026_s10, %s3857_s18 }
 0x99d   : > { %p3028_p3 = scmp.ne.s32.totalorder %s3026_s10, %s3027_s24  ;;  %p3033_p12 = scmp.lt.s32.totalorder %s3031_s15, %s3027_s24 }
 0x99f   : > { %p3029_p9 = pnand %p3028_p3, %p3416_p2  ;;  %p3034_p13 = por %p3033_p12, %p3032_p11 }
 0x9a1   : > { %p3030_p10 = pneg %p3029_p9 }
 0x9a3   : > { %p3035_p0 = pnand %p3034_p13, %p3030_p10 }
 0x9a5   : > { %v1850_v14 = vpop.f32.mrf.mxu2 }
 0x9a6   : > { %1854 = vrot.lane.b32.xlu0 %v1850_v14, %s3142_s4  ;;  %s2123_s4 = sshll.u32 %s1009_s30, 4  ;;  %s2124_s4 = int_to_ptr.vmem [resolvable:$true] %s2123_s4 }
 0x9a9   : > { %v1946_v15 = vpop.f32.mrf.mxu0 }
 0x9aa   : > { %1950 = vrot.lane.b32.xlu1 %v1946_v15, %s3144_s23  ;;  %s3853_s23 = sld [smem:[#allocation55_spill]]  ;;  %v2609_v15 = vld [vmem:[%s3856_s16] ss:$0 sm:$0xff] }
 0x9b0   : > { %v2606_v48 = vld [vmem:[%s3853_s23] ss:$0 sm:$0xff]  ;;  %s2110_s23 = scalar_lea.sflag [#allocation7], %s3442_s25 }
 0x9f4   : > { %v1759_v17 = vpop.permute.xlu2 %1758 }
 0x9f5   : > { %1761 = vst.msk [vmem:[#allocation4] sm:$0xff] %vm1299_vm6, %v1759_v17 }
 0xa18   : > { %v1855_v23 = vpop.permute.xlu0 %1854 }
 0xa19   : > { %1857 = vst.msk [vmem:[#allocation4] sm:$0xff] %vm1386_vm7, %v1855_v23 }
 0xa1c   : > { %v1951_v24 = vpop.permute.xlu1 %1950 }
 0xa1d   : > { %1953 = vst.msk [vmem:[#allocation4] sm:$0xff] %vm1473_vm8, %v1951_v24 }
 0xa24   : > { %v1954_v25 = vld [vmem:[#allocation4] sm:$0xff] }
 0xa25   : > { %2408 = vmatmul.msk.f32.vlgmr.msra.gmra.mxu1 %vm1028_vm0, %v1954_v25 }
 0xaa2   : > { %v1978_v27 = vpop.f32.mrf.mxu1 }
 0xaa3   : > { %v1979_v16 = vadd.f32 %v2604_v26, %v1978_v27 }
 0xaa5   : > { %v1983_v28 = vsel %vm1028_vm0, %v1979_v16, 0.0 }
 0xaa6   : > { %1984 = vadd.xlane.f32.xlu2 %v1983_v28 }
 0xb19   : > { %v1985_v29 = vpop.xlane.xlu2 %1984 }
 0xb1a   : > { %v1986_v30 = vmul.f32 %v1985_v29, %v3612_v21 }
 0xb1c   : > { %v1987_v56 = vsub.f32 %v1979_v16, %v1986_v30 }
 0xb1e   : > { %v1988_v31 = vmul.f32 %v1987_v56, %v1987_v56 }
 0xb20   : > { %v1989_v61 = vsel %vm1028_vm0, %v1988_v31, 0.0 }
 0xb21   : > { %1990 = vadd.xlane.f32.xlu0 %v1989_v61 }
 0xb94   : > { %v1991_v36 = vpop.xlane.xlu0 %1990 }
 0xb95   : > { %v1992_v37 = vmul.f32 %v1991_v36, %v3612_v21 }
 0xb97   : > { %v1993_v38 = vadd.f32 1e-05, %v1992_v37 }
 0xb99   : > { %2647 = vrsqrt.f32 %v1993_v38  ;;  %vm2000_vm6 = vweird.f32 %v1993_v38 }
 0xb9f   : > { %v2648_v39 = vpop.eup %2647 }
 0xba0   : > { %v1995_v40 = vmul.f32 %v2648_v39, %v1993_v38  ;;  %vm2001_vm2 = vweird.f32 %v2648_v39 }
 0xba1   : > { %vm2002_vm7 = vmor %vm2000_vm6, %vm2001_vm2 }
 0xba2   : > { %v1996_v41 = vmul.f32 %v2648_v39, %v1995_v40 }
 0xba4   : > { %v1997_v42 = vmul.f32 0.5, %v1996_v41 }
 0xba6   : > { %v1998_v43 = vsub.f32 1.5, %v1997_v42 }
 0xba8   : > { %v1999_v44 = vmul.f32 %v2648_v39, %v1998_v43 }
 0xbaa   : > { %v2003_v46 = vsel %vm2002_vm7, %v2648_v39, %v1999_v44 }
 0xbab   : > { %v2004_v47 = vmul.f32 %v2003_v46, %v1987_v56 }
 0xbad   : > { %v2008_v49 = vmul.f32 %v2605_v45, %v2004_v47 }
 0xbaf   : > { %v2012_v50 = vadd.f32 %v2606_v48, %v2008_v49 }
 0xbb1   : > { %2409 = vmatmul.msk.f32.vlgmr.msrb.gmra.mxu2 %vm1028_vm0, %v2012_v50 }
 0xc34   : > { %v2041_v55 = vpop.f32.mrf.mxu2 }
 0xc35   : > { %v2042_v58 = vadd.f32 %v2607_v54, %v2041_v55 }
 0xc37   : > { %v2044_v62 = vmax.f32 %v2042_v58, 0.0 }
 0xc39   : > { %2410 = vmatmul.msk.f32.vlgmr.msra.gmra.mxu3 %vm1028_vm0, %v2044_v62 }
 0xcbc   : > { %v2073_v0 = vpop.f32.mrf.mxu3 }
 0xcbd   : > { %v2074_v1 = vadd.f32 %v2608_v63, %v2073_v0 }
 0xcbf   : > { %v2078_v2 = vsel %vm1028_vm0, %v2074_v1, 0.0 }
 0xcc0   : > { %2079 = vadd.xlane.f32.xlu1 %v2078_v2 }
 0xd33   : > { %v2080_v3 = vpop.xlane.xlu1 %2079 }
 0xd34   : > { %v2081_v4 = vmul.f32 %v2080_v3, %v3612_v21 }
 0xd36   : > { %v2082_v5 = vsub.f32 %v2074_v1, %v2081_v4 }
 0xd38   : > { %v2083_v6 = vmul.f32 %v2082_v5, %v2082_v5 }
 0xd3a   : > { %v2084_v7 = vsel %vm1028_vm0, %v2083_v6, 0.0 }
 0xd3b   : > { %2085 = vadd.xlane.f32.xlu2 %v2084_v7 }
 0xdae   : > { %v2086_v8 = vpop.xlane.xlu2 %2085 }
 0xdaf   : > { %v2087_v9 = vmul.f32 %v2086_v8, %v3612_v21 }
 0xdb1   : > { %v2088_v10 = vadd.f32 1e-05, %v2087_v9 }
 0xdb3   : > { %2649 = vrsqrt.f32 %v2088_v10  ;;  %vm2095_vm14 = vweird.f32 %v2088_v10 }
 0xdb9   : > { %v2650_v11 = vpop.eup %2649 }
 0xdba   : > { %v2090_v12 = vmul.f32 %v2650_v11, %v2088_v10  ;;  %vm2096_vm8 = vweird.f32 %v2650_v11 }
 0xdbb   : > { %vm2097_vm10 = vmor %vm2095_vm14, %vm2096_vm8 }
 0xdbc   : > { %v2091_v59 = vmul.f32 %v2650_v11, %v2090_v12 }
 0xdbe   : > { %v2092_v13 = vmul.f32 0.5, %v2091_v59 }
 0xdc0   : > { %v2093_v60 = vsub.f32 1.5, %v2092_v13 }
 0xdc2   : > { %v2094_v14 = vmul.f32 %v2650_v11, %v2093_v60 }
 0xdc4   : > { %v2098_v21 = vsel %vm2097_vm10, %v2650_v11, %v2094_v14 }
 0xdc5   : > { %v2099_v17 = vmul.f32 %v2098_v21, %v2082_v5 }
 0xdc7   : > { %v2103_v19 = vmul.f32 %v2609_v15, %v2099_v17 }
 0xdc9   : > { %v2107_v20 = vadd.f32 %v2610_v18, %v2103_v19 }
 0xdcb   : > { %2108 = vst.msk [vmem:[%s1009_s30] sm:$0xff] %vm1028_vm0, %v2107_v20 }
 0xdcc   : > { %3038 = shalt.err (!%p3035_p0)
}
 0xdcd   : > { %2460 = dma.vmem_to_hbm [thread:$0]  (%p3416_p2), %s2124_s4, 128, %s2126_s17, %s2110_s23  }
 0xdce PF: > { %s2137_s25 = sand.u32 1, %s3101_s29   ;;  %p2501_p5 = pnand %p2349_p4, %p3423_p6 }
 0xdcf   : > { %s2138_s6 = scalar_lea.sflag [#allocation7], %s2137_s25 }
 0xdd0   : > { %p2502_p7 = pneg %p2501_p5 }
 0xdd2   : > { %3096 = dma.done.wait (%p2502_p7), %s2138_s6, 128  }
 0xdd3   : > { %3098 = vsyncadd (%p2502_p7), %s2138_s6, 4294967168  ;;  %s49_s3 = sadd.s32 1, %s3121_s3   ;;  %s3859_s7 = sld [smem:[#allocation35_spill]] }
 0xdd4   : > { %p46_p8 = scmp.ge.s32.totalorder %s49_s3, 4   ;;  %s3860_s6 = sld [smem:[#allocation38_spill]] }
 0xdd5   : > { %s3861_s30 = sld [smem:[#allocation36_spill]]  ;;  %s3863_s29 = smov %s3105_s2 }
 0xdd6   : > { %s3862_s9 = sld [smem:[#allocation37_spill]] }
 0xdd8   :  { %48 = sbr.rel (!%p46_p8) target bundleno = 38 (0x26), region = 225 }
 0xdd9   : > { %s3864_s2 = smov %s3859_s7 }
 0xddc   : > { %s3865_s7 = smov %s3862_s9 }
 0xddd   :  { %2144 = vsyncpa [#allocation6], 1 }
 0xdde   :  { %2146 = vsyncpa [#allocation6 + $0x1], 1 }
 0xddf   :  { %2147 = vsyncpa [#allocation9], 1 }
 0xde0   :  { %2149 = vsyncpa [#allocation9 + $0x1], 1 }
 0xde1   :  { %2150 = vsyncpa [#allocation12], 1 }
 0xde2   :  { %2151 = vsyncpa [#allocation15], 1 }
 0xde3   :  { %2152 = vsyncpa [#allocation18], 1 }
 0xde4   :  { %2153 = vsyncpa [#allocation21], 1 }
 0xde5   :  { %2154 = vsyncpa [#allocation24], 1 }
 0xde6   :  { %2155 = vsyncpa [#allocation7], 1 }
 0xde7   :  { %2157 = vsyncpa [#allocation7 + $0x1], 1 }

// kernel: tpu_custom_call.1
= control target key start
LH: loop header
LB: loop body
LE: loop exit
PB: predicated region body
PF: predicated region fallthrough
CT: control target
= control target key end

     0   :  { %s3768_s0 = inlined_call_operand.hbm [shape: f32[2,8,32], index: 0, kind: input, shape index: {}]   ;;  %s3769_s1 = inlined_call_operand.hbm [shape: f32[2,8,32], index: 1, kind: input, shape index: {}]   ;;  %s3770_s2 = inlined_call_operand.vmem [shape: f32[2,12,32], index: 2, kind: input, shape index: {}]   ;;  %s3771_s3 = inlined_call_operand.vmem [shape: f32[32,32], index: 3, kind: input, shape index: {}]   ;;  %s3772_s4 = inlined_call_operand.hbm [shape: f32[1,32], index: 4, kind: input, shape index: {}]   ;;  %s3773_s5 = inlined_call_operand.hbm [shape: f32[32,64], index: 5, kind: input, shape index: {}]   ;;  %s3774_s6 = inlined_call_operand.hbm [shape: f32[1,64], index: 6, kind: input, shape index: {}]   ;;  %s3775_s7 = inlined_call_operand.hbm [shape: f32[32,32], index: 7, kind: input, shape index: {}]   ;;  %s3776_s8 = inlined_call_operand.hbm [shape: f32[1,32], index: 8, kind: input, shape index: {}]   ;;  %s3777_s9 = inlined_call_operand.hbm [shape: f32[1,32], index: 9, kind: input, shape index: {}]   ;;  %s3778_s10 = inlined_call_operand.vmem [shape: f32[1,32], index: 10, kind: input, shape index: {}]   ;;  %s3779_s11 = inlined_call_operand.vmem [shape: f32[32,32], index: 11, kind: input, shape index: {}]   ;;  %s3780_s12 = inlined_call_operand.vmem [shape: f32[1,32], index: 12, kind: input, shape index: {}]   ;;  %s3781_s13 = inlined_call_operand.hbm [shape: f32[32,64], index: 13, kind: input, shape index: {}]   ;;  %s3782_s14 = inlined_call_operand.vmem [shape: f32[1,64], index: 14, kind: input, shape index: {}]   ;;  %s3783_s15 = inlined_call_operand.hbm [shape: f32[32,32], index: 15, kind: input, shape index: {}]   ;;  %s3784_s16 = inlined_call_operand.vmem [shape: f32[1,32], index: 16, kind: input, shape index: {}]   ;;  %s3785_s17 = inlined_call_operand.vmem [shape: f32[1,32], index: 17, kind: input, shape index: {}]   ;;  %s3786_s18 = inlined_call_operand.vmem [shape: f32[1,32], index: 18, kind: input, shape index: {}]   ;;  %s3787_s19 = inlined_call_operand.hbm [shape: f32[32,32], index: 19, kind: input, shape index: {}]   ;;  %s3788_s20 = inlined_call_operand.vmem [shape: f32[1,32], index: 20, kind: input, shape index: {}]   ;;  %s3789_s21 = inlined_call_operand.hbm [shape: f32[32,32], index: 21, kind: input, shape index: {}]   ;;  %s3790_s22 = inlined_call_operand.vmem [shape: f32[1,32], index: 22, kind: input, shape index: {}]   ;;  %s3791_s23 = inlined_call_operand.vmem [shape: f32[1,32], index: 23, kind: input, shape index: {}]   ;;  %s3792_s24 = inlined_call_operand.vmem [shape: f32[1,32], index: 24, kind: input, shape index: {}]   ;;  %s3793_s25 = inlined_call_operand.hbm [shape: f32[2,8,32], index: 25, kind: output, shape index: {}]  }
   0x1   :  { %3799 = sst [smem:[#allocation39_spill]] %s3768_s0 }
   0x2   :  { %3800 = sst [smem:[#allocation40_spill]] %s3769_s1 }
   0x3   :  { %3801 = sst [smem:[#allocation41_spill]] %s3770_s2 }
   0x4   :  { %3802 = sst [smem:[#allocation42_spill]] %s3771_s3 }
   0x5   :  { %3803 = sst [smem:[#allocation43_spill]] %s3772_s4 }
   0x6   :  { %3804 = sst [smem:[#allocation44_spill]] %s3773_s5 }
   0x7   :  { %3805 = sst [smem:[#allocation45_spill]] %s3774_s6 }
   0x8   :  { %3806 = sst [smem:[#allocation46_spill]] %s3775_s7 }
   0x9   :  { %3807 = sst [smem:[#allocation47_spill]] %s3776_s8 }
   0xa   :  { %3808 = sst [smem:[#allocation48_spill]] %s3777_s9 }
   0xb   :  { %3809 = sst [smem:[#allocation49_spill]] %s3778_s10 }
   0xc   :  { %3810 = sst [smem:[#allocation50_spill]] %s3780_s12 }
   0xd   :  { %3811 = sst [smem:[#allocation51_spill]] %s3781_s13 }
   0xe   :  { %3812 = sst [smem:[#allocation52_spill]] %s3783_s15 }
   0xf   :  { %3813 = sst [smem:[#allocation53_spill]] %s3784_s16 }
  0x10   :  { %3814 = sst [smem:[#allocation54_spill]] %s3785_s17 }
  0x11   :  { %3815 = sst [smem:[#allocation55_spill]] %s3786_s18 }
  0x12   :  { %3816 = sst [smem:[#allocation56_spill]] %s3787_s19 }
  0x13   :  { %3817 = sst [smem:[#allocation57_spill]] %s3788_s20 }
  0x14   :  { %3818 = sst [smem:[#allocation58_spill]] %s3789_s21 }
  0x15   :  { %3819 = sst [smem:[#allocation59_spill]] %s3790_s22 }
  0x16   :  { %3820 = sst [smem:[#allocation60_spill]] %s3791_s23 }
  0x17   :  { %3821 = sst [smem:[#allocation61_spill]] %s3792_s24 }
  0x18   :  { %3822 = sst [smem:[#allocation62_spill]] %s3793_s25 }
  0x19   :  { %30 = vsyncpa [#allocation6], 0 }
  0x1a   :  { %32 = vsyncpa [#allocation6 + $0x1], 0 }
  0x1b   :  { %33 = vsyncpa [#allocation9], 0 }
  0x1c   :  { %35 = vsyncpa [#allocation9 + $0x1], 0 }
  0x1d   :  { %36 = vsyncpa [#allocation12], 0 }
  0x1e   :  { %37 = vsyncpa [#allocation15], 0 }
  0x1f   :  { %38 = vsyncpa [#allocation18], 0 }
  0x20   :  { %39 = vsyncpa [#allocation21], 0 }
  0x21   :  { %40 = vsyncpa [#allocation24], 0 }
  0x22   :  { %41 = vsyncpa [#allocation7], 0 }
  0x23   :  { %43 = vsyncpa [#allocation7 + $0x1], 0  ;;  %s3276_s29 = smov 0   ;;  %s3278_s2 = smov 0  }
  0x24   :  { %s3280_s6 = smov 0   ;;  %s3282_s30 = smov 0  }
  0x25   :  { %s3284_s7 = smov 0   ;;  %s3286_s3 = smov 0  }
  0x26 LB: > { %3823 = sst [smem:[#allocation35_spill]] %s3109_s6  ;;  %s3307_s26 = sadd.s32 4294967295, %s3121_s3   ;;  %s3121_s3 = sphi %s3286_s3, %s49_s3   ;;  %s3117_s7 = sphi %s3284_s7, %s3865_s7   ;;  %s3113_s30 = sphi %s3282_s30, %s3861_s30   ;;  %s3109_s6 = sphi %s3280_s6, %s3860_s6   ;;  %s3105_s2 = sphi %s3278_s2, %s3864_s2   ;;  %s3101_s29 = sphi %s3276_s29, %s3863_s29  }
  0x27   : > { %3824 = sst [smem:[#allocation36_spill]] %s3117_s7  ;;  %p2338_p0 = scmp.ge.s32.totalorder %s3121_s3, 1 }
  0x28   : > { %p84_p1 = scmp.eq.s32.totalorder %s3307_s26, 0  ;;  %p636_p2 = scmp.lt.s32.totalorder %s3121_s3, 3 }
  0x29   : > { %s3825_s27 = sld [smem:[#allocation43_spill]]  ;;  %p2349_p4 = scmp.ge.s32.totalorder %s3121_s3, 2 }
  0x2a   : > { %p3315_p3 = pnand %p2338_p0, %p636_p2  ;;  %s3123_s9 = smov [#allocation10]  }
  0x2b   : > { %s653_s5 = sshll.u32 %s3123_s9, 4  ;;  %s3827_s25 = sld [smem:[#allocation44_spill]]  ;;  %s654_s5 = int_to_ptr.vmem [resolvable:$true] %s653_s5 }
  0x2c   : > { %p2462_p5 = pneg %p3315_p3  ;;  %s3124_s8 = smov [#allocation11]  }
  0x2d   : > { %s3125_s9 = smov 128   ;;  %s3126_s22 = smov 8  }
  0x2e   : > { %p3327_p6 = pnand %p2462_p5, %p84_p1  ;;  %s3829_s0 = sld [smem:[#allocation46_spill]] }
  0x2f   : > { %s651_s4 = sshll.u32 %s3825_s27, 4  ;;  %s664_s27 = sshll.u32 %s3124_s8, 4  ;;  %s652_s4 = int_to_ptr.hbm [resolvable:$true] %s651_s4  ;;  %s665_s27 = int_to_ptr.vmem [resolvable:$true] %s664_s27 }
  0x30   : > { %2465 = dma.hbm_to_vmem [thread:$0]  (!%p3327_p6), %s652_s4, 16, %s654_s5, [#allocation9]  }
  0x31   : > { %s662_s23 = sshll.u32 %s3827_s25, 4  ;;  %s3127_s18 = smov [#allocation14]   ;;  %s663_s23 = int_to_ptr.hbm [resolvable:$true] %s662_s23 }
  0x32   : > { %2468 = dma.hbm_to_vmem [thread:$0]  (!%p3327_p6), %s663_s23, 512, %s665_s27, [#allocation12], %s3125_s9, %s3125_s9, %s3126_s22  }
  0x33   : > { %s690_s17 = sshll.u32 %s3127_s18, 4  ;;  %s3830_s5 = sld [smem:[#allocation48_spill]]  ;;  %s691_s17 = int_to_ptr.vmem [resolvable:$true] %s690_s17 }
  0x34   : > { %s688_s20 = sshll.u32 %s3829_s0, 4  ;;  %s3128_s23 = smov [#allocation17]   ;;  %s689_s20 = int_to_ptr.hbm [resolvable:$true] %s688_s20 }
  0x35   : > { %2474 = dma.hbm_to_vmem [thread:$0]  (!%p3327_p6), %s689_s20, 512, %s691_s17, [#allocation15], %s3125_s9, %s3125_s9, %s3126_s22  }
  0x36   : > { %s717_s27 = sshll.u32 %s3128_s23, 4  ;;  %s3831_s15 = sld [smem:[#allocation52_spill]]  ;;  %s718_s27 = int_to_ptr.vmem [resolvable:$true] %s717_s27 }
  0x37   : > { %s3832_s8 = sld [smem:[#allocation45_spill]]  ;;  %s3130_s12 = smov [#allocation13]  }
  0x38   : > { %s679_s17 = sshll.u32 %s3130_s12, 4  ;;  %s3833_s24 = sld [smem:[#allocation47_spill]]  ;;  %s680_s17 = int_to_ptr.vmem [resolvable:$true] %s679_s17 }
  0x39   : > { %s715_s16 = sshll.u32 %s3830_s5, 4  ;;  %s3129_s5 = smov [#allocation20]   ;;  %s716_s16 = int_to_ptr.hbm [resolvable:$true] %s715_s16 }
  0x3a   : > { %2480 = dma.hbm_to_vmem [thread:$0]  (!%p3327_p6), %s716_s16, 16, %s718_s27, [#allocation18]  }
  0x3b   : > { %s754_s10 = sshll.u32 %s3129_s5, 4  ;;  %s3834_s13 = sld [smem:[#allocation51_spill]]  ;;  %s755_s10 = int_to_ptr.vmem [resolvable:$true] %s754_s10 }
  0x3c   : > { %s752_s25 = sshll.u32 %s3831_s15, 4  ;;  %s3835_s19 = sld [smem:[#allocation56_spill]]  ;;  %s753_s25 = int_to_ptr.hbm [resolvable:$true] %s752_s25 }
  0x3d   : > { %s677_s4 = sshll.u32 %s3832_s8, 4  ;;  %s3131_s8 = smov [#allocation16]   ;;  %s678_s4 = int_to_ptr.hbm [resolvable:$true] %s677_s4 }
  0x3e   : > { %2486 = dma.hbm_to_vmem [thread:$0]  (!%p3327_p6), %s753_s25, 512, %s755_s10, [#allocation21], %s3125_s9, %s3125_s9, %s3126_s22  }
  0x3f   : > { %s703_s16 = sshll.u32 %s3833_s24, 4  ;;  %s705_s5 = sshll.u32 %s3131_s8, 4  ;;  %s704_s16 = int_to_ptr.hbm [resolvable:$true] %s703_s16  ;;  %s706_s5 = int_to_ptr.vmem [resolvable:$true] %s705_s5 }
  0x40   : > { %2471 = dma.hbm_to_vmem [thread:$0]  (!%p3327_p6), %s678_s4, 16, %s680_s17, [#allocation12]  }
  0x41   : > { %s735_s0 = sshll.u32 %s3834_s13, 4  ;;  %s3132_s10 = smov [#allocation19]   ;;  %s736_s0 = int_to_ptr.hbm [resolvable:$true] %s735_s0 }
  0x42   : > { %2477 = dma.hbm_to_vmem [thread:$0]  (!%p3327_p6), %s704_s16, 16, %s706_s5, [#allocation15]  }
  0x43   : > { %s737_s25 = sshll.u32 %s3132_s10, 4  ;;  %s775_s4 = sshll.u32 %s3835_s19, 4  ;;  %s738_s25 = int_to_ptr.vmem [resolvable:$true] %s737_s25  ;;  %s776_s4 = int_to_ptr.hbm [resolvable:$true] %s775_s4 }
  0x44   : > { %2483 = dma.hbm_to_vmem [thread:$0]  (!%p3327_p6), %s736_s0, 512, %s738_s25, [#allocation18], %s3125_s9, %s3125_s9, %s3126_s22  }
  0x45   : > { %s3836_s21 = sld [smem:[#allocation58_spill]]  ;;  %s3133_s16 = smov [#allocation22]  }
  0x46   : > { %s777_s27 = sshll.u32 %s3133_s16, 4  ;;  %s3134_s18 = smov [#allocation23]   ;;  %s778_s27 = int_to_ptr.vmem [resolvable:$true] %s777_s27 }
  0x47   : > { %2489 = dma.hbm_to_vmem [thread:$0]  (!%p3327_p6), %s776_s4, 512, %s778_s27, [#allocation21], %s3125_s9, %s3125_s9, %s3126_s22  }
  0x48   : > { %s794_s0 = sshll.u32 %s3134_s18, 4  ;;  %s2337_s8 = sadd.s32 4294967294, %s3121_s3   ;;  %s795_s0 = int_to_ptr.vmem [resolvable:$true] %s794_s0 }
  0x49   : > { %s61_s5 = sadd.s32 1, %s3117_s7  ;;  %s70_s10 = sadd.s32 1, %s3109_s6 }
  0x4a   : > { %p63_p7 = scmp.ge.s32.totalorder %s61_s5, 2  ;;  %p77_p8 = scmp.ne.s32.totalorder %s3109_s6, %s3105_s2 }
  0x4b   : > { %s792_s24 = sshll.u32 %s3836_s21, 4  ;;  %p78_p9 = scmp.eq.s32.totalorder %s3121_s3, 0  ;;  %s793_s24 = int_to_ptr.hbm [resolvable:$true] %s792_s24 }
  0x4c   : > { %2492 = dma.hbm_to_vmem [thread:$0]  (!%p3327_p6), %s793_s24, 512, %s795_s0, [#allocation24], %s3125_s9, %s3125_s9, %s3126_s22  }
  0x4d   : > { %s3867_s5 = smov (%p63_p7, %s61_s5), 0  ;;  %p3401_p10 = por %p78_p9, %p77_p8 }
  0x4e   : > { %3837 = sst [smem:[#allocation37_spill]] %s3867_s5  ;;  %p83_p11 = scmp.ne.s32.totalorder %s3105_s2, %s3101_s29 }
  0x4f   : > { %s65_s1 = ssub.s32 %s3117_s7, %s3867_s5  ;;  %p623_p12 = scmp.eq.s32.totalorder %s3307_s26, 1 }
  0x50   : > { %p68_p13 = scmp.eq.s32.totalorder %s65_s1, 0  ;;  %p3412_p0 = por %p84_p1, %p83_p11 }
  0x51   : > { %p3416_p2 = por %p623_p12, %p77_p8  ;;  %p629_p5 = scmp.eq.s32.totalorder %s2337_s8, 1 }
  0x52   : > { %s3421_s12 = scalar_select %p68_p13, %s3109_s6, %s70_s10  }
  0x53   : > { %p3423_p6 = por %p629_p5, %p83_p11  ;;  %p2514_p7 = scmp.lt.s32.totalorder %s3121_s3, 2 }
  0x54   : > { %3841 = sst [smem:[#allocation38_spill]] %s3421_s12  ;;  %s817_s4 = sand.u32 1, %s3109_s6  }
  0x55   : > { %s2351_s17 = sshll.u32 %s3117_s7, 3  ;;  %s2350_s23 = sshll.u32 %s817_s4, 3 }
  0x56   : > { %s3843_s27 = sld [smem:[#allocation39_spill]]  ;;  %s821_s1 = scalar_lea.vmem [#allocation5], %s2350_s23 }
  0x57   : > { %s830_s13 = sshll.u32 %s821_s1, 4  ;;  %p2494_p8 = pnand %p2514_p7, %p3401_p10  ;;  %s831_s13 = int_to_ptr.vmem [resolvable:$true] %s830_s13 }
  0x58   : > { %s3844_s15 = sld [smem:[#allocation40_spill]]  ;;  %s837_s21 = sand.u32 1, %s3121_s3  }
  0x59   : > { %s818_s5 = scalar_lea.sflag [#allocation6], %s817_s4  ;;  %s841_s12 = scalar_lea.vmem [#allocation8], %s2350_s23 }
  0x5a   : > { %s849_s6 = sshll.u32 %s841_s12, 4  ;;  %s838_s24 = scalar_lea.sflag [#allocation9], %s837_s21  ;;  %s850_s6 = int_to_ptr.vmem [resolvable:$true] %s849_s6 }
  0x5b   : > { %s3442_s25 = sand.u32 (!%p3315_p3), 1, %s3105_s2  }
  0x5c   : > { %s826_s18 = scalar_lea.hbm %s3843_s27, %s2351_s17 }
  0x5d   : > { %s828_s0 = sshll.u32 %s826_s18, 4  ;;  %866 = sbr.rel (%p3315_p3) target bundleno = 3534 (0xdce), region = 120  ;;  %s829_s0 = int_to_ptr.hbm [resolvable:$true] %s828_s0 }
  0x5e   : > { %s845_s19 = scalar_lea.hbm %s3844_s15, %s2351_s17  ;;  %s3445_s15 = sshll.u32 (!%p3315_p3), %s3442_s25, 3 }
  0x5f   : > { %2496 = dma.hbm_to_vmem [thread:$0]  (!%p2494_p8), %s829_s0, 128, %s831_s13, %s818_s5  }
  0x60   : > { %s847_s7 = sshll.u32 %s845_s19, 4  ;;  %s869_s13 = scalar_lea.sflag (!%p3315_p3), [#allocation6], %s3442_s25  ;;  %s848_s7 = int_to_ptr.hbm [resolvable:$true] %s847_s7 }
  0x61   : > { %2499 = dma.hbm_to_vmem [thread:$0]  (!%p2494_p8), %s848_s7, 128, %s850_s6, %s838_s24  }
  0x62   : > { %s872_s19 = scalar_lea.vmem [#allocation5], %s3445_s15 }
  0x63   : > { %3064 = dma.done.wait (%p3412_p0), %s869_s13, 128  }
  0x64   : > { %3066 = vsyncadd (%p3412_p0), %s869_s13, 4294967168  ;;  %s878_s21 = sand.u32 1, %s3307_s26   ;;  %s882_s7 = scalar_lea.vmem [#allocation8], %s3445_s15 }
  0x65   : > { %s879_s6 = scalar_lea.sflag [#allocation9], %s878_s21 }
  0x66   : > { %3068 = dma.done.wait (%p3412_p0), %s879_s6, 128  }
  0x67   : > { %3070 = vsyncadd (%p3412_p0), %s879_s6, 4294967168 }
  0x68   : > { %3072 = dma.done.wait (%p84_p1), [#allocation9], 16  }
  0x69   : > { %3074 = vsyncadd (%p84_p1), [#allocation9], 4294967280 }
  0x6a   : > { %3076 = dma.done.wait (%p84_p1), [#allocation12], 528  }
  0x6b   : > { %3078 = vsyncadd (%p84_p1), [#allocation12], 4294966768 }
  0x6c   : > { %3080 = dma.done.wait (%p84_p1), [#allocation15], 528  }
  0x6d   : > { %3082 = vsyncadd (%p84_p1), [#allocation15], 4294966768 }
  0x6e   : > { %3084 = dma.done.wait (%p84_p1), [#allocation18], 528  }
  0x6f   : > { %3086 = vsyncadd (%p84_p1), [#allocation18], 4294966768 }
  0x70   : > { %3088 = dma.done.wait (%p84_p1), [#allocation21], 1024  }
  0x71   : > { %3090 = vsyncadd (%p84_p1), [#allocation21], 4294966272 }
  0x72   : > { %3092 = dma.done.wait (%p84_p1), [#allocation24], 512  }
  0x73   : > { %3094 = vsyncadd (%p84_p1), [#allocation24], 4294966784  ;;  %v1023_v0 = vld [vmem:[#allocation11 + $0x18] sm:$0xff]  ;;  %s3845_s22 = sld [smem:[#allocation42_spill]]  ;;  %v1022_v2 = vld [vmem:[#allocation11 + $0x10] sm:$0xff]  ;;  %vm1028_vm0 = vcmask 261120  }
  0x74   : > { %1044 = vmatpush.msra.mxu0 %v1023_v0  ;;  %v1021_v4 = vld [vmem:[#allocation11 + $0x8] sm:$0xff]  ;;  %v1020_v6 = vld [vmem:[#allocation11] sm:$0xff]  ;;  %vm1052_vm1 = vcmask 523264   ;;  %v2598_v13 = vld [vmem:[#allocation10] ss:$0 sm:$0xff]  ;;  %vm1135_vm2 = vcmask 64512  }
  0x75   : > { %v1019_v8 = vld [vmem:[%s882_s7] sm:$0xff]  ;;  %v1096_v9 = vld [vmem:[%s872_s19] sm:$0xff]  ;;  %s3135_s27 = smov 120   ;;  %s3136_s18 = smov 112   ;;  %vm1094_vm7 = vcmask 519168  }
  0x76   : > { %1045 = vmatpush.msra.mxu0 %v1022_v2  ;;  %v2597_v10 = vld [vmem:[#allocation13] ss:$0 sm:$0xff]  ;;  %s3137_s0 = smov 96   ;;  %s3138_s1 = smov 104   ;;  %v1058_v31 = vld [vmem:[#allocation19 + $0x10] sm:$0xff]  ;;  %v1057_v32 = vld [vmem:[#allocation19 + $0x8] sm:$0xff] }
  0x77   : > { %p1010_p1 = scmp.lt.s32.totalorder %s3113_s30, 1  ;;  %v1059_v30 = vld [vmem:[#allocation19 + $0x18] sm:$0xff]  ;;  %v1056_v33 = vld [vmem:[#allocation19] sm:$0xff]  ;;  %s3846_s19 = sld [smem:[#allocation41_spill]] }
  0x78   : > { %1046 = vmatpush.msra.mxu0 %v1021_v4  ;;  %1082 = vmatpush.msra.mxu1 %v1059_v30  ;;  %v2599_v51 = vld [vmem:[%s3782_s14] ss:$0 sm:$0xff]  ;;  %s3139_s28 = smov 72   ;;  %s3140_s5 = smov 88  }
  0x79   : > { %v1100_v1 = vld [vmem:[%s3845_s22 + $0x18] sm:$0xff]  ;;  %v1099_v3 = vld [vmem:[%s3845_s22 + $0x10] sm:$0xff]  ;;  %v1098_v5 = vld [vmem:[%s3845_s22 + $0x8] sm:$0xff]  ;;  %s1011_s8 = scalar_select %p1010_p1, %s3113_s30, 1 }
  0x7a   : > { %1121 = vmatpush.msra.mxu2 %v1100_v1  ;;  %v1097_v7 = vld [vmem:[%s3845_s22] sm:$0xff]  ;;  %1047 = vmatpush.msra.mxu0 %v1020_v6  ;;  %s3141_s12 = smov 80   ;;  %s3142_s4 = smov 16  }
  0x7b   : > { %2370 = vmatmul.msk.f32.vlgmr.msra.gmra.mxu0 %vm1028_vm0, %v1019_v8  ;;  %s2415_s10 = sshll.u32 %s1011_s8, 4  ;;  %1083 = vmatpush.msra.mxu1 %v1058_v31  ;;  %s3143_s17 = smov 8  }
  0x7c   : > { %1122 = vmatpush.msra.mxu2 %v1099_v3  ;;  %s3144_s23 = smov 24   ;;  %s3849_s7 = sld [smem:[#allocation49_spill]] }
  0x7d   : > { %1084 = vmatpush.msra.mxu1 %v1057_v32  ;;  %s1014_s21 = scalar_lea.vmem %s3846_s19, %s2415_s10  ;;  %s3850_s8 = sld [smem:[#allocation50_spill]] }
  0x7e   : > { %1123 = vmatpush.msra.mxu2 %v1098_v5  ;;  %v1054_v34 = vld [vmem:[%s1014_s21] sm:$0xff]  ;;  %v1055_v35 = vld [vmem:[%s1014_s21 + $0x8] sm:$0xf]  ;;  %s3854_s13 = sld [smem:[#allocation57_spill]]  ;;  %s2412_s6 = sshll.u32 %s3113_s30, 3 }
  0x7f   : > { %1085 = vmatpush.msra.mxu1 %v1056_v33  ;;  %s3856_s16 = sld [smem:[#allocation60_spill]]  ;;  %s1009_s30 = scalar_lea.vmem [#allocation25], %s3445_s15 }
  0x80   : > { %1124 = vmatpush.msra.mxu2 %v1097_v7  ;;  %2371 = vmatmul.msk.f32.vlgmr.msra.gmra.mxu1 %vm1028_vm0, %v1054_v34 }
  0x81   : > { %2373 = vmatmul.msk.f32.vlgmr.msra.gmra.mxu2 %vm1028_vm0, %v1096_v9 }
  0x88   : > { %2372 = vmatmul.msk.f32.gmra.mxu1 %vm1028_vm0, %v1055_v35 }
  0xf8   : > { %v1049_v11 = vpop.f32.mrf.mxu0 }
  0xf9   : > { %v1050_v12 = vadd.f32 %v2597_v10, %v1049_v11 }
  0xfb   : > { %1053 = vst.msk [vmem:[#allocation2] sm:$0xff] %vm1052_vm1, %v1050_v12 }
  0xfd   : > { %v1087_v52 = vpop.f32.mrf.mxu1 }
  0xfe   : > { %v1088_v53 = vadd.f32 %v2599_v51, %v1087_v52 }
 0x100   : > { %1093 = vst.msk [vmem:[#allocation3] sm:$0xff] %vm1052_vm1, %v1088_v53 }
 0x102   : > { %v3501_v16 = vld [vmem:[#allocation2] sm:$0xff] }
 0x103   : > { %1218 = vrot.lane.b32.xlu1 %v3501_v16, %s3135_s27  ;;  %2374 = vmatpush.xpose.msk.msra.mxu3 %vm1135_vm2, %v3501_v16 }
 0x104   : > { %v1126_v14 = vpop.f32.mrf.mxu2 }
 0x105   : > { %v1127_v15 = vadd.f32 %v2598_v13, %v1126_v14  ;;  %v1090_v54 = vpop.f32.mrf.mxu1 }
 0x106   : > { %v1091_v55 = vadd.f32 %v2599_v51, %v1090_v54 }
 0x107   : > { %1215 = vrot.lane.b32.xlu2 %v1127_v15, %s3135_s27  ;;  %2375 = vmatmul.msk.f32.vlgmr.msra.gmra.mxu3 %vm1135_vm2, %v1127_v15  ;;  %v3544_v57 = vld [vmem:[#allocation3] sm:$0xff] }
 0x108   : > { %1095 = vst.msk [vmem:[#allocation3 + $0x8] sm:$0xf] %vm1094_vm7, %v1091_v55  ;;  %vm1386_vm7 = vcmask 195712  }
 0x10b   : > { %1187 = vrot.lane.b32.xlu1 %v3501_v16, %s3137_s0 }
 0x10f   : > { %1305 = vrot.lane.b32.xlu2 %v3501_v16, %s3136_s18  ;;  %v3540_v56 = vld [vmem:[#allocation3 + $0x8] sm:$0xf] }
 0x113   : > { %1302 = vrot.lane.b32.xlu1 %v1127_v15, %s3136_s18 }
 0x117   : > { %1389 = vrot.lane.b32.xlu2 %v1127_v15, %s3138_s1 }
 0x161   : > { %v1216_v17 = vpop.permute.xlu2 %1215 }
 0x169   : > { %v1306_v20 = vpop.permute.xlu2 %1305 }
 0x171   : > { %v1390_v49 = vpop.permute.xlu2 %1389 }
 0x175   : > { %v1219_v18 = vpop.permute.xlu1 %1218 }
 0x176   : > { %2377 = vmatpush.xpose.msk.msrb.mxu0 %vm1135_vm2, %v1219_v18 }
 0x179   : > { %2378 = vmatmul.msk.f32.vlgmr.msrb.gmra.mxu0 %vm1135_vm2, %v1216_v17 }
 0x17d   : > { %v1188_v19 = vpop.permute.xlu1 %1187 }
 0x17e   : > { %1208 = vmatpush.msrb.mxu3 %v1188_v19 }
 0x180   : > { %2380 = vmatpush.xpose.msk.msra.mxu3 %vm1135_vm2, %v1306_v20 }
 0x185   : > { %v1303_v50 = vpop.permute.xlu1 %1302 }
 0x18a   : > { %v1159_v21 = vpop.f32.mrf.mxu3 }
 0x18b   : > { %v1162_v22 = vsel %vm1135_vm2, %v1159_v21, -inf }
 0x18c   : > { %1163 = vmax.xlane.f32.xlu0 %v1162_v22 }
 0x1f6   : > { %v3518_v23 = vpop.f32.mrf.mxu0 }
 0x1f7   : > { %v1244_v24 = vsel %vm1135_vm2, %v3518_v23, -inf }
 0x1f8   : > { %1245 = vmax.xlane.f32.xlu1 %v1244_v24 }
 0x1ff   : > { %v1164_v25 = vpop.xlane.xlu0 %1163 }
 0x200   : > { %v1165_v26 = vsub.f32 %v1159_v21, %v1164_v25 }
 0x202   : > { %v1166_v27 = vmul.f32 1.442695, %v1165_v26 }
 0x204   : > { %2611 = vpow2.f32 %v1166_v27 }
 0x20a   : > { %v2612_v28 = vpop.eup %2611 }
 0x20b   : > { %v1168_v29 = vsel %vm1135_vm2, %v2612_v28, 0.0 }
 0x20c   : > { %1169 = vadd.xlane.f32.xlu0 %v1168_v29 }
 0x220   : > { %1392 = vrot.lane.b32.xlu0 %v3501_v16, %s3138_s1 }
 0x26b   : > { %v1246_v58 = vpop.xlane.xlu1 %1245 }
 0x26c   : > { %v1247_v59 = vsub.f32 %v3518_v23, %v1246_v58 }
 0x26e   : > { %v1248_v60 = vmul.f32 1.442695, %v1247_v59  ;;  %v3585_v59 = vld [vmem:[#allocation3 + $0x8] sm:$0xf] }
 0x27f   : > { %v1170_v36 = vpop.xlane.xlu0 %1169 }
 0x280   : > { %2613 = vrcp.f32 %v1170_v36  ;;  %v1182_v40 = vand.u32 2147483648, %v1170_v36  ;;  %v1180_v42 = vand.u32 2147483647, %v1170_v36  ;;  %vm1176_vm4 = vweird.f32 %v1170_v36 }
 0x281   : > { %2615 = vpow2.f32 %v1248_v60  ;;  %v3591_v60 = vld [vmem:[#allocation3 + $0x8] sm:$0xf] }
 0x282   : > { %v1183_v44 = vor.u32 1.1754944e-38, %v1182_v40  ;;  %vm1181_vm6 = vcmp.eq.f32.partialorder %v1180_v42, 8.507059e+37 }
 0x286   : > { %v2614_v37 = vpop.eup %2613 }
 0x287   : > { %v1172_v38 = vmul.f32 %v2614_v37, %v1170_v36  ;;  %vm1177_vm3 = vweird.f32 %v2614_v37  ;;  %v3551_v0 = vpop.eup %2615 }
 0x288   : > { %vm1178_vm5 = vmor %vm1176_vm4, %vm1177_vm3  ;;  %v1250_v1 = vsel %vm1135_vm2, %v3551_v0, 0.0 }
 0x289   : > { %v1173_v39 = vsub.f32 1.0, %v1172_v38 }
 0x28b   : > { %v1174_v41 = vmul.f32 %v2614_v37, %v1173_v39 }
 0x28d   : > { %v1175_v43 = vadd.f32 %v2614_v37, %v1174_v41 }
 0x28f   : > { %v1179_v45 = vsel %vm1178_vm5, %v2614_v37, %v1175_v43 }
 0x290   : > { %v1184_v46 = vsel %vm1181_vm6, %v1183_v44, %v1179_v45  ;;  %vm1299_vm6 = vcmask 130112  }
 0x291   : > { %v1186_v47 = vmul.f32 %v2612_v28, %v1184_v46 }
 0x292   : > { %v1393_v48 = vpop.permute.xlu0 %1392 }
 0x293   : > { %2376 = vmatmul.msk.f32.vlgmr.msrb.gmra.mxu3 %vm1135_vm2, %v1186_v47  ;;  %2383 = vmatpush.xpose.msk.msrb.mxu1 %vm1135_vm2, %v1393_v48 }
 0x296   : > { %2384 = vmatmul.msk.f32.vlgmr.msrb.gmra.mxu1 %vm1135_vm2, %v1390_v49 }
 0x297   : > { %2388 = vmatpush.xpose.msk.msra.mxu1 %vm1135_vm2, %v3540_v56 }
 0x29b   : > { %2381 = vmatmul.msk.f32.vlgmr.msra.gmra.mxu3 %vm1135_vm2, %v1303_v50  ;;  %2389 = vmatpush.xpose.msk.msra.mxu1 %vm1135_vm2, %v3544_v57 }
 0x313   : > { %v1415_v61 = vpop.f32.mrf.mxu1 }
 0x314   : > { %v1418_v62 = vsel %vm1135_vm2, %v1415_v61, -inf }
 0x315   : > { %1419 = vmax.xlane.f32.xlu2 %v1418_v62  ;;  %v1132_v62 = vld [vmem:[#allocation14 + $0x18] sm:$0xff] }
 0x316   : > { %v1210_v63 = vpop.f32.mrf.mxu3  ;;  %1494 = vmatpush.msrb.mxu3 %v1132_v62 }
 0x317   : > { %1213 = vst.msk [vmem:[#allocation4] sm:$0xff] %vm1135_vm2, %v1210_v63  ;;  %v1131_v63 = vld [vmem:[#allocation14 + $0x10] sm:$0xff] }
 0x318   : > { %1495 = vmatpush.msrb.mxu3 %v1131_v63 }
 0x31d   : > { %1251 = vadd.xlane.f32.xlu2 %v1250_v1  ;;  %v1129_v1 = vld [vmem:[#allocation14] sm:$0xff] }
 0x31e   : > { %v1328_v2 = vpop.f32.mrf.mxu3 }
 0x31f   : > { %v1331_v3 = vsel %vm1135_vm2, %v1328_v2, -inf }
 0x320   : > { %1332 = vmax.xlane.f32.xlu0 %v1331_v3 }
 0x334   : > { %1443 = vrot.lane.b32.xlu0 %v3501_v16, %s3139_s28 }
 0x388   : > { %v1420_v4 = vpop.xlane.xlu2 %1419 }
 0x389   : > { %v1421_v5 = vsub.f32 %v1415_v61, %v1420_v4  ;;  %v3595_v61 = vld [vmem:[#allocation3 + $0x8] sm:$0xf] }
 0x38b   : > { %v1422_v6 = vmul.f32 1.442695, %v1421_v5 }
 0x38d   : > { %2617 = vpow2.f32 %v1422_v6 }
 0x390   : > { %v1252_v14 = vpop.xlane.xlu2 %1251 }
 0x391   : > { %v1264_v26 = vand.u32 2147483648, %v1252_v14  ;;  %vm1258_vm9 = vweird.f32 %v1252_v14  ;;  %v1262_v27 = vand.u32 2147483647, %v1252_v14 }
 0x393   : > { %v3558_v7 = vpop.eup %2617  ;;  %v1333_v8 = vpop.xlane.xlu0 %1332  ;;  %v1265_v30 = vor.u32 1.1754944e-38, %v1264_v26  ;;  %vm1263_vm11 = vcmp.eq.f32.partialorder %v1262_v27, 8.507059e+37 }
 0x394   : > { %v1334_v9 = vsub.f32 %v1328_v2, %v1333_v8  ;;  %v1424_v10 = vsel %vm1135_vm2, %v3558_v7, 0.0 }
 0x395   : > { %1425 = vadd.xlane.f32.xlu1 %v1424_v10  ;;  %v2600_v10 = vld [vmem:[#allocation16] ss:$0 sm:$0xff] }
 0x396   : > { %v1335_v11 = vmul.f32 1.442695, %v1334_v9 }
 0x398   : > { %2619 = vpow2.f32 %v1335_v11 }
 0x399   : > { %2621 = vrcp.f32 %v1252_v14 }
 0x39e   : > { %v3562_v12 = vpop.eup %2619 }
 0x39f   : > { %v1337_v13 = vsel %vm1135_vm2, %v3562_v12, 0.0  ;;  %v2622_v15 = vpop.eup %2621 }
 0x3a0   : > { %1338 = vadd.xlane.f32.xlu2 %v1337_v13  ;;  %v1254_v18 = vmul.f32 %v2622_v15, %v1252_v14  ;;  %vm1259_vm8 = vweird.f32 %v2622_v15  ;;  %v3145_v14 = vmov 32.0  }
 0x3a1   : > { %vm1260_vm10 = vmor %vm1258_vm9, %vm1259_vm8  ;;  %vm1473_vm8 = vcmask 261312  }
 0x3a2   : > { %v1255_v19 = vsub.f32 1.0, %v1254_v18 }
 0x3a4   : > { %v1256_v21 = vmul.f32 %v2622_v15, %v1255_v19 }
 0x3a6   : > { %v1257_v24 = vadd.f32 %v2622_v15, %v1256_v21  ;;  %v1444_v45 = vpop.permute.xlu0 %1443 }
 0x3a8   : > { %v1261_v29 = vsel %vm1260_vm10, %v2622_v15, %v1257_v24 }
 0x3a9   : > { %v1266_v34 = vsel %vm1263_vm11, %v1265_v30, %v1261_v29  ;;  %v1542_v29 = vld [vmem:[%s3779_s11 + $0x8] sm:$0xff]  ;;  %v1541_v30 = vld [vmem:[%s3779_s11] sm:$0xff] }
 0x3aa   : > { %v1268_v42 = vmul.f32 %v3551_v0, %v1266_v34  ;;  %v1130_v0 = vld [vmem:[#allocation14 + $0x8] sm:$0xff] }
 0x3ab   : > { %1496 = vmatpush.msrb.mxu3 %v1130_v0 }
 0x3ad   : > { %1497 = vmatpush.msrb.mxu3 %v1129_v1 }
 0x3ae   : > { %1269 = vrot.lane.b32.xlu1 %v3501_v16, %s3140_s5 }
 0x3b8   : > { %1356 = vrot.lane.b32.xlu2 %v3501_v16, %s3141_s12 }
 0x408   : > { %v1426_v17 = vpop.xlane.xlu1 %1425 }
 0x409   : > { %2623 = vrcp.f32 %v1426_v17  ;;  %v1438_v37 = vand.u32 2147483648, %v1426_v17  ;;  %vm1432_vm14 = vweird.f32 %v1426_v17  ;;  %v1436_v40 = vand.u32 2147483647, %v1426_v17 }
 0x40b   : > { %v1439_v48 = vor.u32 1.1754944e-38, %v1438_v37  ;;  %vm1437_vm5 = vcmp.eq.f32.partialorder %v1436_v40, 8.507059e+37 }
 0x40f   : > { %v2624_v20 = vpop.eup %2623 }
 0x410   : > { %v1428_v22 = vmul.f32 %v2624_v20, %v1426_v17  ;;  %vm1433_vm12 = vweird.f32 %v2624_v20 }
 0x411   : > { %vm3571_vm15 = vmor %vm1432_vm14, %vm1433_vm12  ;;  %vm1608_vm14 = vcmask 97280  }
 0x412   : > { %v1429_v25 = vsub.f32 1.0, %v1428_v22 }
 0x413   : > { %v1339_v23 = vpop.xlane.xlu2 %1338 }
 0x414   : > { %2625 = vrcp.f32 %v1339_v23  ;;  %v1430_v28 = vmul.f32 %v2624_v20, %v1429_v25  ;;  %v1351_v36 = vand.u32 2147483648, %v1339_v23  ;;  %v1349_v39 = vand.u32 2147483647, %v1339_v23 }
 0x415   : > { %vm1345_vm1 = vweird.f32 %v1339_v23  ;;  %2627 = vrcp.f32 %v3145_v14 }
 0x416   : > { %v1431_v35 = vadd.f32 %v2624_v20, %v1430_v28  ;;  %v1352_v47 = vor.u32 1.1754944e-38, %v1351_v36  ;;  %vm1350_vm4 = vcmp.eq.f32.partialorder %v1349_v39, 8.507059e+37  ;;  %v1543_v28 = vld [vmem:[%s3779_s11 + $0x10] sm:$0xff]  ;;  %v2601_v39 = vld [vmem:[#allocation17] ss:$0 sm:$0xff] }
 0x418   : > { %v1435_v46 = vsel %vm3571_vm15, %v2624_v20, %v1431_v35 }
 0x419   : > { %v1440_v51 = vsel %vm1437_vm5, %v1439_v48, %v1435_v46  ;;  %v2603_v48 = vld [vmem:[%s3850_s8] ss:$0 sm:$0xff] }
 0x41a   : > { %v2626_v16 = vpop.eup %2625  ;;  %v1442_v53 = vmul.f32 %v3558_v7, %v1440_v51 }
 0x41b   : > { %v1341_v31 = vmul.f32 %v2626_v16, %v1339_v23  ;;  %v1357_v32 = vpop.permute.xlu2 %1356  ;;  %vm1346_vm13 = vweird.f32 %v2626_v16  ;;  %v2628_v15 = vpop.eup %2627 }
 0x41c   : > { %1377 = vmatpush.msra.mxu0 %v1357_v32  ;;  %vm1347_vm3 = vmor %vm1345_vm1, %vm1346_vm13  ;;  %v1508_v17 = vmul.f32 32.0, %v2628_v15  ;;  %vm1512_vm9 = vweird.f32 %v2628_v15  ;;  %vm1642_vm13 = vcmask 1043456  }
 0x41d   : > { %v1342_v33 = vsub.f32 1.0, %v1341_v31 }
 0x41e   : > { %v1509_v18 = vsub.f32 1.0, %v1508_v17 }
 0x41f   : > { %v1343_v38 = vmul.f32 %v2626_v16, %v1342_v33 }
 0x420   : > { %v1270_v41 = vpop.permute.xlu1 %1269  ;;  %v1510_v19 = vmul.f32 %v2628_v15, %v1509_v18 }
 0x421   : > { %v1344_v44 = vadd.f32 %v2626_v16, %v1343_v38  ;;  %1290 = vmatpush.msrb.mxu2 %v1270_v41 }
 0x422   : > { %2379 = vmatmul.msk.f32.vlgmr.msrb.gmra.mxu2 %vm1135_vm2, %v1268_v42  ;;  %v1511_v20 = vadd.f32 %v2628_v15, %v1510_v19  ;;  %v2602_v42 = vld [vmem:[%s3849_s7] ss:$0 sm:$0xff] }
 0x423   : > { %v1348_v49 = vsel %vm1347_vm3, %v2626_v16, %v1344_v44  ;;  %1464 = vmatpush.msra.mxu2 %v1444_v45  ;;  %v1544_v16 = vld [vmem:[%s3779_s11 + $0x18] sm:$0xff] }
 0x424   : > { %v1353_v50 = vsel %vm1350_vm4, %v1352_v47, %v1348_v49  ;;  %v3612_v21 = vsel %vm1512_vm9, %v2628_v15, %v1511_v20  ;;  %1564 = vmatpush.msrb.mxu0 %v1544_v16 }
 0x425   : > { %v1355_v52 = vmul.f32 %v3562_v12, %v1353_v50 }
 0x426   : > { %1565 = vmatpush.msrb.mxu0 %v1543_v28 }
 0x427   : > { %2382 = vmatmul.msk.f32.vlgmr.msra.gmra.mxu0 %vm1135_vm2, %v1355_v52 }
 0x428   : > { %1566 = vmatpush.msrb.mxu0 %v1542_v29 }
 0x42a   : > { %2385 = vmatmul.msk.f32.vlgmr.msra.gmra.mxu2 %vm1135_vm2, %v1442_v53  ;;  %1567 = vmatpush.msrb.mxu0 %v1541_v30 }
 0x4a4   : > { %v1379_v54 = vpop.f32.mrf.mxu0 }
 0x4a5   : > { %v1292_v55 = vpop.f32.mrf.mxu2  ;;  %1383 = vrot.lane.b32.xlu1 %v1379_v54, %s3142_s4 }
 0x4a6   : > { %1296 = vrot.lane.b32.xlu0 %v1292_v55, %s3143_s17 }
 0x4ad   : > { %v1466_v58 = vpop.f32.mrf.mxu2 }
 0x4ae   : > { %1470 = vrot.lane.b32.xlu2 %v1466_v58, %s3144_s23 }
 0x4b6   : > { %1674 = vrot.lane.b32.xlu2 %v3585_v59, %s3135_s27 }
 0x4be   : > { %1672 = vrot.lane.b32.xlu2 %v3544_v57, %s3135_s27 }
 0x4c6   : > { %1770 = vrot.lane.b32.xlu2 %v3591_v60, %s3136_s18 }
 0x4ce   : > { %1866 = vrot.lane.b32.xlu2 %v3595_v61, %s3138_s1 }
 0x508   : > { %v1471_v2 = vpop.permute.xlu2 %1470 }
 0x510   : > { %v1675_v3 = vpop.permute.xlu2 %1674 }
 0x511   : > { %2393 = vmatpush.xpose.msk.msra.mxu3 %vm1135_vm2, %v1675_v3 }
 0x517   : > { %v1384_v6 = vpop.permute.xlu1 %1383 }
 0x518   : > { %v1673_v4 = vpop.permute.xlu2 %1672  ;;  %v1297_v5 = vpop.permute.xlu0 %1296 }
 0x519   : > { %1300 = vst.msk [vmem:[#allocation4] sm:$0xff] %vm1299_vm6, %v1297_v5  ;;  %2394 = vmatpush.xpose.msk.msra.mxu3 %vm1135_vm2, %v1673_v4 }
 0x51a   : > { %1387 = vst.msk [vmem:[#allocation4] sm:$0xff] %vm1386_vm7, %v1384_v6 }
 0x51b   : > { %1474 = vst.msk [vmem:[#allocation4] sm:$0xff] %vm1473_vm8, %v1471_v2 }
 0x520   : > { %v1771_v7 = vpop.permute.xlu2 %1770 }
 0x521   : > { %2398 = vmatpush.xpose.msk.msrb.mxu1 %vm1135_vm2, %v1771_v7 }
 0x522   : > { %v1475_v8 = vld [vmem:[#allocation4] sm:$0xff] }
 0x523   : > { %2386 = vmatmul.msk.f32.vlgmr.msrb.gmra.mxu3 %vm1028_vm0, %v1475_v8 }
 0x528   : > { %v1867_v9 = vpop.permute.xlu2 %1866 }
 0x529   : > { %2403 = vmatpush.xpose.msk.msrb.mxu3 %vm1135_vm2, %v1867_v9 }
 0x5a6   : > { %v1499_v11 = vpop.f32.mrf.mxu3 }
 0x5a7   : > { %v1500_v12 = vadd.f32 %v2600_v10, %v1499_v11 }
 0x5a9   : > { %v1504_v13 = vsel %vm1028_vm0, %v1500_v12, 0.0 }
 0x5aa   : > { %1505 = vadd.xlane.f32.xlu0 %v1504_v13 }
 0x5be   : > { %1768 = vrot.lane.b32.xlu0 %v3544_v57, %s3136_s18 }
 0x5c6   : > { %1634 = vrot.lane.b32.xlu0 %v3544_v57, %s3137_s0 }
 0x61d   : > { %v1506_v22 = vpop.xlane.xlu0 %1505 }
 0x61e   : > { %v1514_v23 = vmul.f32 %v3612_v21, %v1506_v22 }
 0x620   : > { %v1515_v24 = vsub.f32 %v1500_v12, %v1514_v23 }
 0x622   : > { %v1516_v25 = vmul.f32 %v1515_v24, %v1515_v24 }
 0x624   : > { %v1517_v26 = vsel %vm1028_vm0, %v1516_v25, 0.0 }
 0x625   : > { %1518 = vadd.xlane.f32.xlu1 %v1517_v26 }
 0x630   : > { %v1769_v27 = vpop.permute.xlu0 %1768 }
 0x631   : > { %2399 = vmatpush.xpose.msk.msrb.mxu1 %vm1135_vm2, %v1769_v27 }
 0x638   : > { %v1635_v47 = vpop.permute.xlu0 %1634 }
 0x63e   : > { %1864 = vrot.lane.b32.xlu1 %v3544_v57, %s3138_s1 }
 0x646   : > { %1636 = vrot.lane.b32.xlu1 %v3540_v56, %s3137_s0  ;;  %s3855_s0 = sld [smem:[#allocation59_spill]] }
 0x698   : > { %v1519_v56 = vpop.xlane.xlu1 %1518 }
 0x699   : > { %v1520_v31 = vmul.f32 %v1519_v56, %v3612_v21 }
 0x69b   : > { %v1521_v32 = vadd.f32 1e-05, %v1520_v31 }
 0x69d   : > { %2629 = vrsqrt.f32 %v1521_v32  ;;  %vm1528_vm11 = vweird.f32 %v1521_v32 }
 0x6a3   : > { %v2630_v33 = vpop.eup %2629 }
 0x6a4   : > { %v1523_v34 = vmul.f32 %v2630_v33, %v1521_v32  ;;  %vm1529_vm10 = vweird.f32 %v2630_v33 }
 0x6a5   : > { %vm1530_vm12 = vmor %vm1528_vm11, %vm1529_vm10 }
 0x6a6   : > { %v1524_v35 = vmul.f32 %v2630_v33, %v1523_v34 }
 0x6a8   : > { %v1525_v36 = vmul.f32 0.5, %v1524_v35 }
 0x6aa   : > { %v1526_v37 = vsub.f32 1.5, %v1525_v36 }
 0x6ac   : > { %v1527_v38 = vmul.f32 %v2630_v33, %v1526_v37 }
 0x6ae   : > { %v1531_v40 = vsel %vm1530_vm12, %v2630_v33, %v1527_v38 }
 0x6af   : > { %v1532_v41 = vmul.f32 %v1531_v40, %v1515_v24 }
 0x6b0   : > { %v1865_v43 = vpop.permute.xlu1 %1864 }
 0x6b1   : > { %v1536_v44 = vmul.f32 %v2601_v39, %v1532_v41  ;;  %2404 = vmatpush.xpose.msk.msrb.mxu3 %vm1135_vm2, %v1865_v43 }
 0x6b3   : > { %v1540_v45 = vadd.f32 %v2602_v42, %v1536_v44 }
 0x6b5   : > { %2387 = vmatmul.msk.f32.vlgmr.msrb.gmra.mxu0 %vm1028_vm0, %v1540_v45 }
 0x6b8   : > { %v1637_v46 = vpop.permute.xlu1 %1636 }
 0x6b9   : > { %2391 = vmatpush.msk.msrb.mxu2 %vm1642_vm13, %v1637_v46 }
 0x6bb   : > { %1660 = vmatpush.msrb.mxu2 %v1635_v47 }
 0x732   : > { %v1569_v49 = vpop.f32.mrf.mxu0 }
 0x733   : > { %v1570_v50 = vadd.f32 %v2603_v48, %v1569_v49 }
 0x735   : > { %1668 = vrot.lane.b32.xlu2 %v1570_v50, %s3135_s27  ;;  %2390 = vmatmul.msk.f32.vlgmr.msra.gmra.mxu1 %vm1135_vm2, %v1570_v50 }
 0x73d   : > { %1764 = vrot.lane.b32.xlu2 %v1570_v50, %s3136_s18  ;;  %s3857_s18 = sld [smem:[#allocation62_spill]] }
 0x743   : > { %s3031_s15 = scalar_lea.hbm %s3857_s18, 16 }
 0x745   : > { %1860 = vrot.lane.b32.xlu2 %v1570_v50, %s3138_s1  ;;  %s3851_s1 = sld [smem:[#allocation53_spill]] }
 0x78f   : > { %v1669_v51 = vpop.permute.xlu2 %1668 }
 0x790   : > { %2395 = vmatmul.msk.f32.vlgmr.msra.gmra.mxu3 %vm1135_vm2, %v1669_v51 }
 0x797   : > { %v1765_v52 = vpop.permute.xlu2 %1764 }
 0x798   : > { %2400 = vmatmul.msk.f32.vlgmr.msrb.gmra.mxu1 %vm1135_vm2, %v1765_v52 }
 0x79f   : > { %v1861_v53 = vpop.permute.xlu2 %1860 }
 0x7a0   : > { %2405 = vmatmul.msk.f32.vlgmr.msrb.gmra.mxu3 %vm1135_vm2, %v1861_v53 }
 0x7b2   : > { %v1605_v54 = vpop.f32.mrf.mxu1 }
 0x7b3   : > { %v1609_v55 = vsel %vm1608_vm14, %v1605_v54, -inf }
 0x7b4   : > { %1610 = vmax.xlane.f32.xlu0 %v1609_v55 }
 0x813   : > { %v1699_v58 = vpop.f32.mrf.mxu3 }
 0x814   : > { %v1702_v62 = vsel %vm1608_vm14, %v1699_v58, -inf }
 0x815   : > { %1703 = vmax.xlane.f32.xlu2 %v1702_v62  ;;  %v1795_v63 = vpop.f32.mrf.mxu1 }
 0x816   : > { %v1798_v0 = vsel %vm1608_vm14, %v1795_v63, -inf }
 0x817   : > { %1799 = vmax.xlane.f32.xlu1 %v1798_v0 }
 0x823   : > { %v1891_v1 = vpop.f32.mrf.mxu3 }
 0x824   : > { %v1894_v2 = vsel %vm1608_vm14, %v1891_v1, -inf }
 0x825   : > { %1895 = vmax.xlane.f32.xlu0 %v1894_v2 }
 0x827   : > { %v1611_v3 = vpop.xlane.xlu0 %1610 }
 0x828   : > { %v1612_v4 = vsub.f32 %v1605_v54, %v1611_v3 }
 0x82a   : > { %v1613_v5 = vmul.f32 1.442695, %v1612_v4 }
 0x82c   : > { %2631 = vpow2.f32 %v1613_v5 }
 0x82d   : > { %1729 = vrot.lane.b32.xlu2 %v3585_v59, %s3140_s5 }
 0x830   : > { %1727 = vrot.lane.b32.xlu1 %v3544_v57, %s3140_s5 }
 0x832   : > { %v2632_v6 = vpop.eup %2631 }
 0x833   : > { %v1615_v7 = vsel %vm1608_vm14, %v2632_v6, 0.0 }
 0x839   : > { %1825 = vrot.lane.b32.xlu0 %v3591_v60, %s3141_s12 }
 0x856   : > { %1616 = vadd.xlane.f32.xlu2 %v1615_v7 }
 0x888   : > { %v1704_v8 = vpop.xlane.xlu2 %1703 }
 0x889   : > { %v1705_v9 = vsub.f32 %v1699_v58, %v1704_v8 }
 0x88a   : > { %v1800_v10 = vpop.xlane.xlu1 %1799 }
 0x88b   : > { %v1706_v11 = vmul.f32 1.442695, %v1705_v9  ;;  %v1801_v12 = vsub.f32 %v1795_v63, %v1800_v10 }
 0x88d   : > { %2633 = vpow2.f32 %v1706_v11  ;;  %v1802_v59 = vmul.f32 1.442695, %v1801_v12 }
 0x88f   : > { %2635 = vpow2.f32 %v1802_v59 }
 0x890   : > { %v1730_v13 = vpop.permute.xlu2 %1729 }
 0x891   : > { %2396 = vmatpush.msk.msra.mxu0 %vm1642_vm13, %v1730_v13 }
 0x893   : > { %v3662_v60 = vpop.eup %2633 }
 0x894   : > { %v1708_v14 = vsel %vm1608_vm14, %v3662_v60, 0.0 }
 0x895   : > { %v3666_v15 = vpop.eup %2635  ;;  %1709 = vadd.xlane.f32.xlu1 %v1708_v14 }
 0x896   : > { %v1804_v17 = vsel %vm1608_vm14, %v3666_v15, 0.0 }
 0x897   : > { %1805 = vadd.xlane.f32.xlu0 %v1804_v17 }
 0x898   : > { %v1896_v18 = vpop.xlane.xlu0 %1895 }
 0x899   : > { %v1897_v19 = vsub.f32 %v1891_v1, %v1896_v18  ;;  %v1575_v18 = vld [vmem:[#allocation20 + $0x18] sm:$0xff] }
 0x89a   : > { %1973 = vmatpush.msra.mxu1 %v1575_v18 }
 0x89b   : > { %v1898_v20 = vmul.f32 1.442695, %v1897_v19  ;;  %v1574_v19 = vld [vmem:[#allocation20 + $0x10] sm:$0xff] }
 0x89c   : > { %1974 = vmatpush.msra.mxu1 %v1574_v19 }
 0x89d   : > { %2637 = vpow2.f32 %v1898_v20  ;;  %v1573_v20 = vld [vmem:[#allocation20 + $0x8] sm:$0xff] }
 0x89e   : > { %1975 = vmatpush.msra.mxu1 %v1573_v20 }
 0x8a2   : > { %v1728_v22 = vpop.permute.xlu1 %1727 }
 0x8a3   : > { %v3670_v23 = vpop.eup %2637  ;;  %1752 = vmatpush.msra.mxu0 %v1728_v22  ;;  %v1572_v22 = vld [vmem:[#allocation20] sm:$0xff] }
 0x8a4   : > { %v1900_v24 = vsel %vm1608_vm14, %v3670_v23, 0.0  ;;  %1976 = vmatpush.msra.mxu1 %v1572_v22 }
 0x8a5   : > { %1901 = vadd.xlane.f32.xlu2 %v1900_v24 }
 0x8ab   : > { %1921 = vrot.lane.b32.xlu0 %v3595_v61, %s3139_s28  ;;  %v1826_v25 = vpop.permute.xlu0 %1825 }
 0x8ac   : > { %2401 = vmatpush.msk.msra.mxu2 %vm1642_vm13, %v1826_v25 }
 0x8ae   : > { %1919 = vrot.lane.b32.xlu1 %v3544_v57, %s3139_s28 }
 0x8bd   : > { %1823 = vrot.lane.b32.xlu2 %v3544_v57, %s3141_s12  ;;  %s3852_s12 = sld [smem:[#allocation54_spill]] }
 0x8c9   : > { %v1617_v26 = vpop.xlane.xlu2 %1616 }
 0x8ca   : > { %2639 = vrcp.f32 %v1617_v26  ;;  %v1629_v29 = vand.u32 2147483648, %v1617_v26  ;;  %v1627_v56 = vand.u32 2147483647, %v1617_v26  ;;  %vm1623_vm1 = vweird.f32 %v1617_v26 }
 0x8cc   : > { %v1630_v61 = vor.u32 1.1754944e-38, %v1629_v29  ;;  %vm1628_vm4 = vcmp.eq.f32.partialorder %v1627_v56, 8.507059e+37 }
 0x8d0   : > { %v2640_v27 = vpop.eup %2639 }
 0x8d1   : > { %v1619_v16 = vmul.f32 %v2640_v27, %v1617_v26  ;;  %vm1624_vm15 = vweird.f32 %v2640_v27  ;;  %v2604_v26 = vld [vmem:[%s3851_s1] ss:$0 sm:$0xff]  ;;  %s2121_s1 = scalar_lea.hbm %s3857_s18, %s2412_s6 }
 0x8d2   : > { %vm1625_vm3 = vmor %vm1623_vm1, %vm1624_vm15 }
 0x8d3   : > { %v1620_v28 = vsub.f32 1.0, %v1619_v16 }
 0x8d5   : > { %v1621_v30 = vmul.f32 %v2640_v27, %v1620_v28 }
 0x8d7   : > { %v1622_v31 = vadd.f32 %v2640_v27, %v1621_v30 }
 0x8d9   : > { %v1626_v32 = vsel %vm1625_vm3, %v2640_v27, %v1622_v31 }
 0x8da   : > { %v1631_v33 = vsel %vm1628_vm4, %v1630_v61, %v1626_v32  ;;  %v2016_v32 = vld [vmem:[#allocation22 + $0x18] sm:$0xff] }
 0x8db   : > { %v1633_v34 = vmul.f32 %v2632_v6, %v1631_v33  ;;  %v2015_v33 = vld [vmem:[#allocation22 + $0x10] sm:$0xff] }
 0x8dd   : > { %2392 = vmatmul.msk.f32.vlgmr.msrb.gmra.mxu2 %vm1608_vm14, %v1633_v34  ;;  %v2014_v34 = vld [vmem:[#allocation22 + $0x8] sm:$0xff] }
 0x908   : > { %v1710_v57 = vpop.xlane.xlu1 %1709 }
 0x909   : > { %2641 = vrcp.f32 %v1710_v57  ;;  %v1720_v41 = vand.u32 2147483647, %v1710_v57  ;;  %v1722_v42 = vand.u32 2147483648, %v1710_v57  ;;  %vm1716_vm9 = vweird.f32 %v1710_v57 }
 0x90a   : > { %v1806_v35 = vpop.xlane.xlu0 %1805 }
 0x90b   : > { %2643 = vrcp.f32 %v1806_v35  ;;  %vm1721_vm12 = vcmp.eq.f32.partialorder %v1720_v41, 8.507059e+37  ;;  %v1723_v47 = vor.u32 1.1754944e-38, %v1722_v42  ;;  %v1818_v48 = vand.u32 2147483648, %v1806_v35 }
 0x90c   : > { %vm1812_vm15 = vweird.f32 %v1806_v35  ;;  %v1816_v51 = vand.u32 2147483647, %v1806_v35 }
 0x90d   : > { %v1819_v58 = vor.u32 1.1754944e-38, %v1818_v48 }
 0x90e   : > { %vm1817_vm3 = vcmp.eq.f32.partialorder %v1816_v51, 8.507059e+37  ;;  %v2047_v51 = vld [vmem:[#allocation23 + $0x10] sm:$0xff] }
 0x90f   : > { %v2642_v36 = vpop.eup %2641 }
 0x910   : > { %v1712_v37 = vmul.f32 %v2642_v36, %v1710_v57  ;;  %vm1717_vm5 = vweird.f32 %v2642_v36  ;;  %v2013_v57 = vld [vmem:[#allocation22] sm:$0xff] }
 0x911   : > { %v2644_v38 = vpop.eup %2643  ;;  %vm1718_vm11 = vmor %vm1716_vm9, %vm1717_vm5 }
 0x912   : > { %v1713_v39 = vsub.f32 1.0, %v1712_v37  ;;  %v1808_v40 = vmul.f32 %v2644_v38, %v1806_v35  ;;  %vm1813_vm10 = vweird.f32 %v2644_v38  ;;  %v2048_v35 = vld [vmem:[#allocation23 + $0x18] sm:$0xff] }
 0x913   : > { %vm1814_vm1 = vmor %vm1812_vm15, %vm1813_vm10  ;;  %2068 = vmatpush.msra.mxu3 %v2048_v35 }
 0x914   : > { %v1714_v43 = vmul.f32 %v2642_v36, %v1713_v39  ;;  %v1809_v44 = vsub.f32 1.0, %v1808_v40 }
 0x915   : > { %2069 = vmatpush.msra.mxu3 %v2047_v51 }
 0x916   : > { %v1715_v45 = vadd.f32 %v2642_v36, %v1714_v43  ;;  %v1810_v46 = vmul.f32 %v2644_v38, %v1809_v44 }
 0x918   : > { %v1719_v49 = vsel %vm1718_vm11, %v2642_v36, %v1715_v45  ;;  %v1811_v50 = vadd.f32 %v2644_v38, %v1810_v46  ;;  %v1902_v52 = vpop.xlane.xlu2 %1901  ;;  %v2605_v45 = vld [vmem:[%s3852_s12] ss:$0 sm:$0xff]  ;;  %s3858_s12 = sld [smem:[#allocation61_spill]] }
 0x919   : > { %v1724_v53 = vsel %vm1721_vm12, %v1723_v47, %v1719_v49  ;;  %2645 = vrcp.f32 %v1902_v52  ;;  %v1914_v6 = vand.u32 2147483648, %v1902_v52  ;;  %v1912_v8 = vand.u32 2147483647, %v1902_v52 }
 0x91a   : > { %v1815_v54 = vsel %vm1814_vm1, %v2644_v38, %v1811_v50  ;;  %v1726_v55 = vmul.f32 %v3662_v60, %v1724_v53  ;;  %vm1908_vm5 = vweird.f32 %v1902_v52  ;;  %v2045_v53 = vld [vmem:[#allocation23] sm:$0xff] }
 0x91b   : > { %v1820_v62 = vsel %vm1817_vm3, %v1819_v58, %v1815_v54  ;;  %v1915_v10 = vor.u32 1.1754944e-38, %v1914_v6  ;;  %v2607_v54 = vld [vmem:[%s3854_s13] ss:$0 sm:$0xff] }
 0x91c   : > { %2397 = vmatmul.msk.f32.vlgmr.msra.gmra.mxu0 %vm1608_vm14, %v1726_v55  ;;  %v1822_v4 = vmul.f32 %v3666_v15, %v1820_v62 }
 0x91d   : > { %v1922_v63 = vpop.permute.xlu0 %1921 }
 0x91e   : > { %2406 = vmatpush.msk.msrb.mxu0 %vm1642_vm13, %v1922_v63  ;;  %vm1913_vm13 = vcmp.eq.f32.partialorder %v1912_v8, 8.507059e+37  ;;  %v2608_v63 = vld [vmem:[%s3855_s0] ss:$0 sm:$0xff] }
 0x91f   : > { %v2646_v0 = vpop.eup %2645  ;;  %v2610_v18 = vld [vmem:[%s3858_s12] ss:$0 sm:$0xff] }
 0x920   : > { %v1904_v1 = vmul.f32 %v2646_v0, %v1902_v52  ;;  %v1920_v2 = vpop.permute.xlu1 %1919  ;;  %v1824_v3 = vpop.permute.xlu2 %1823  ;;  %vm1909_vm4 = vweird.f32 %v2646_v0  ;;  %v2046_v52 = vld [vmem:[#allocation23 + $0x8] sm:$0xff] }
 0x921   : > { %1848 = vmatpush.msra.mxu2 %v1824_v3  ;;  %1944 = vmatpush.msrb.mxu0 %v1920_v2  ;;  %vm1910_vm9 = vmor %vm1908_vm5, %vm1909_vm4 }
 0x922   : > { %v1905_v5 = vsub.f32 1.0, %v1904_v1  ;;  %2402 = vmatmul.msk.f32.vlgmr.msra.gmra.mxu2 %vm1608_vm14, %v1822_v4  ;;  %2070 = vmatpush.msra.mxu3 %v2046_v52 }
 0x923   : > { %2036 = vmatpush.msrb.mxu2 %v2016_v32 }
 0x924   : > { %v1906_v7 = vmul.f32 %v2646_v0, %v1905_v5  ;;  %2071 = vmatpush.msra.mxu3 %v2045_v53 }
 0x925   : > { %2037 = vmatpush.msrb.mxu2 %v2015_v33 }
 0x926   : > { %v1907_v9 = vadd.f32 %v2646_v0, %v1906_v7 }
 0x927   : > { %2038 = vmatpush.msrb.mxu2 %v2014_v34 }
 0x928   : > { %v1911_v11 = vsel %vm1910_vm9, %v2646_v0, %v1907_v9 }
 0x929   : > { %v1916_v12 = vsel %vm1913_vm13, %v1915_v10, %v1911_v11  ;;  %2039 = vmatpush.msrb.mxu2 %v2013_v57 }
 0x92a   : > { %v1918_v59 = vmul.f32 %v3670_v23, %v1916_v12 }
 0x92c   : > { %2407 = vmatmul.msk.f32.vlgmr.msrb.gmra.mxu0 %vm1608_vm14, %v1918_v59 }
 0x960   : > { %v1662_v13 = vpop.f32.mrf.mxu2 }
 0x961   : > { %1665 = vst.msk [vmem:[#allocation4] sm:$0xff] %vm1135_vm2, %v1662_v13 }
 0x999   : > { %v1754_v60 = vpop.f32.mrf.mxu0 }
 0x99a   : > { %1758 = vrot.lane.b32.xlu2 %v1754_v60, %s3143_s17  ;;  %s2125_s17 = sshll.u32 %s2121_s1, 4  ;;  %s2126_s17 = int_to_ptr.hbm [resolvable:$true] %s2125_s17 }
 0x99b   : > { %s3025_s10 = sshra.s32 %s2126_s17, 4  ;;  %s3026_s10 = int_to_ptr.hbm [resolvable:$true] %s3025_s10 }
 0x99c   : > { %s3027_s24 = scalar_lea.hbm %s3026_s10, 8  ;;  %p3032_p11 = scmp.lt.s32.totalorder %s3026_s10, %s3857_s18 }
 0x99d   : > { %p3028_p3 = scmp.ne.s32.totalorder %s3026_s10, %s3027_s24  ;;  %p3033_p12 = scmp.lt.s32.totalorder %s3031_s15, %s3027_s24 }
 0x99f   : > { %p3029_p9 = pnand %p3028_p3, %p3416_p2  ;;  %p3034_p13 = por %p3033_p12, %p3032_p11 }
 0x9a1   : > { %p3030_p10 = pneg %p3029_p9 }
 0x9a3   : > { %p3035_p0 = pnand %p3034_p13, %p3030_p10 }
 0x9a5   : > { %v1850_v14 = vpop.f32.mrf.mxu2 }
 0x9a6   : > { %1854 = vrot.lane.b32.xlu0 %v1850_v14, %s3142_s4  ;;  %s2123_s4 = sshll.u32 %s1009_s30, 4  ;;  %s2124_s4 = int_to_ptr.vmem [resolvable:$true] %s2123_s4 }
 0x9a9   : > { %v1946_v15 = vpop.f32.mrf.mxu0 }
 0x9aa   : > { %1950 = vrot.lane.b32.xlu1 %v1946_v15, %s3144_s23  ;;  %s3853_s23 = sld [smem:[#allocation55_spill]]  ;;  %v2609_v15 = vld [vmem:[%s3856_s16] ss:$0 sm:$0xff] }
 0x9b0   : > { %v2606_v48 = vld [vmem:[%s3853_s23] ss:$0 sm:$0xff]  ;;  %s2110_s23 = scalar_lea.sflag [#allocation7], %s3442_s25 }
 0x9f4   : > { %v1759_v17 = vpop.permute.xlu2 %1758 }
 0x9f5   : > { %1761 = vst.msk [vmem:[#allocation4] sm:$0xff] %vm1299_vm6, %v1759_v17 }
 0xa18   : > { %v1855_v23 = vpop.permute.xlu0 %1854 }
 0xa19   : > { %1857 = vst.msk [vmem:[#allocation4] sm:$0xff] %vm1386_vm7, %v1855_v23 }
 0xa1c   : > { %v1951_v24 = vpop.permute.xlu1 %1950 }
 0xa1d   : > { %1953 = vst.msk [vmem:[#allocation4] sm:$0xff] %vm1473_vm8, %v1951_v24 }
 0xa24   : > { %v1954_v25 = vld [vmem:[#allocation4] sm:$0xff] }
 0xa25   : > { %2408 = vmatmul.msk.f32.vlgmr.msra.gmra.mxu1 %vm1028_vm0, %v1954_v25 }
 0xaa2   : > { %v1978_v27 = vpop.f32.mrf.mxu1 }
 0xaa3   : > { %v1979_v16 = vadd.f32 %v2604_v26, %v1978_v27 }
 0xaa5   : > { %v1983_v28 = vsel %vm1028_vm0, %v1979_v16, 0.0 }
 0xaa6   : > { %1984 = vadd.xlane.f32.xlu2 %v1983_v28 }
 0xb19   : > { %v1985_v29 = vpop.xlane.xlu2 %1984 }
 0xb1a   : > { %v1986_v30 = vmul.f32 %v1985_v29, %v3612_v21 }
 0xb1c   : > { %v1987_v56 = vsub.f32 %v1979_v16, %v1986_v30 }
 0xb1e   : > { %v1988_v31 = vmul.f32 %v1987_v56, %v1987_v56 }
 0xb20   : > { %v1989_v61 = vsel %vm1028_vm0, %v1988_v31, 0.0 }
 0xb21   : > { %1990 = vadd.xlane.f32.xlu0 %v1989_v61 }
 0xb94   : > { %v1991_v36 = vpop.xlane.xlu0 %1990 }
 0xb95   : > { %v1992_v37 = vmul.f32 %v1991_v36, %v3612_v21 }
 0xb97   : > { %v1993_v38 = vadd.f32 1e-05, %v1992_v37 }
 0xb99   : > { %2647 = vrsqrt.f32 %v1993_v38  ;;  %vm2000_vm6 = vweird.f32 %v1993_v38 }
 0xb9f   : > { %v2648_v39 = vpop.eup %2647 }
 0xba0   : > { %v1995_v40 = vmul.f32 %v2648_v39, %v1993_v38  ;;  %vm2001_vm2 = vweird.f32 %v2648_v39 }
 0xba1   : > { %vm2002_vm7 = vmor %vm2000_vm6, %vm2001_vm2 }
 0xba2   : > { %v1996_v41 = vmul.f32 %v2648_v39, %v1995_v40 }
 0xba4   : > { %v1997_v42 = vmul.f32 0.5, %v1996_v41 }
 0xba6   : > { %v1998_v43 = vsub.f32 1.5, %v1997_v42 }
 0xba8   : > { %v1999_v44 = vmul.f32 %v2648_v39, %v1998_v43 }
 0xbaa   : > { %v2003_v46 = vsel %vm2002_vm7, %v2648_v39, %v1999_v44 }
 0xbab   : > { %v2004_v47 = vmul.f32 %v2003_v46, %v1987_v56 }
 0xbad   : > { %v2008_v49 = vmul.f32 %v2605_v45, %v2004_v47 }
 0xbaf   : > { %v2012_v50 = vadd.f32 %v2606_v48, %v2008_v49 }
 0xbb1   : > { %2409 = vmatmul.msk.f32.vlgmr.msrb.gmra.mxu2 %vm1028_vm0, %v2012_v50 }
 0xc34   : > { %v2041_v55 = vpop.f32.mrf.mxu2 }
 0xc35   : > { %v2042_v58 = vadd.f32 %v2607_v54, %v2041_v55 }
 0xc37   : > { %v2044_v62 = vmax.f32 %v2042_v58, 0.0 }
 0xc39   : > { %2410 = vmatmul.msk.f32.vlgmr.msra.gmra.mxu3 %vm1028_vm0, %v2044_v62 }
 0xcbc   : > { %v2073_v0 = vpop.f32.mrf.mxu3 }
 0xcbd   : > { %v2074_v1 = vadd.f32 %v2608_v63, %v2073_v0 }
 0xcbf   : > { %v2078_v2 = vsel %vm1028_vm0, %v2074_v1, 0.0 }
 0xcc0   : > { %2079 = vadd.xlane.f32.xlu1 %v2078_v2 }
 0xd33   : > { %v2080_v3 = vpop.xlane.xlu1 %2079 }
 0xd34   : > { %v2081_v4 = vmul.f32 %v2080_v3, %v3612_v21 }
 0xd36   : > { %v2082_v5 = vsub.f32 %v2074_v1, %v2081_v4 }
 0xd38   : > { %v2083_v6 = vmul.f32 %v2082_v5, %v2082_v5 }
 0xd3a   : > { %v2084_v7 = vsel %vm1028_vm0, %v2083_v6, 0.0 }
 0xd3b   : > { %2085 = vadd.xlane.f32.xlu2 %v2084_v7 }
 0xdae   : > { %v2086_v8 = vpop.xlane.xlu2 %2085 }
 0xdaf   : > { %v2087_v9 = vmul.f32 %v2086_v8, %v3612_v21 }
 0xdb1   : > { %v2088_v10 = vadd.f32 1e-05, %v2087_v9 }
 0xdb3   : > { %2649 = vrsqrt.f32 %v2088_v10  ;;  %vm2095_vm14 = vweird.f32 %v2088_v10 }
 0xdb9   : > { %v2650_v11 = vpop.eup %2649 }
 0xdba   : > { %v2090_v12 = vmul.f32 %v2650_v11, %v2088_v10  ;;  %vm2096_vm8 = vweird.f32 %v2650_v11 }
 0xdbb   : > { %vm2097_vm10 = vmor %vm2095_vm14, %vm2096_vm8 }
 0xdbc   : > { %v2091_v59 = vmul.f32 %v2650_v11, %v2090_v12 }
 0xdbe   : > { %v2092_v13 = vmul.f32 0.5, %v2091_v59 }
 0xdc0   : > { %v2093_v60 = vsub.f32 1.5, %v2092_v13 }
 0xdc2   : > { %v2094_v14 = vmul.f32 %v2650_v11, %v2093_v60 }
 0xdc4   : > { %v2098_v21 = vsel %vm2097_vm10, %v2650_v11, %v2094_v14 }
 0xdc5   : > { %v2099_v17 = vmul.f32 %v2098_v21, %v2082_v5 }
 0xdc7   : > { %v2103_v19 = vmul.f32 %v2609_v15, %v2099_v17 }
 0xdc9   : > { %v2107_v20 = vadd.f32 %v2610_v18, %v2103_v19 }
 0xdcb   : > { %2108 = vst.msk [vmem:[%s1009_s30] sm:$0xff] %vm1028_vm0, %v2107_v20 }
 0xdcc   : > { %3038 = shalt.err (!%p3035_p0)
}
 0xdcd   : > { %2460 = dma.vmem_to_hbm [thread:$0]  (%p3416_p2), %s2124_s4, 128, %s2126_s17, %s2110_s23  }
 0xdce PF: > { %s2137_s25 = sand.u32 1, %s3101_s29   ;;  %p2501_p5 = pnand %p2349_p4, %p3423_p6 }
 0xdcf   : > { %s2138_s6 = scalar_lea.sflag [#allocation7], %s2137_s25 }
 0xdd0   : > { %p2502_p7 = pneg %p2501_p5 }
 0xdd2   : > { %3096 = dma.done.wait (%p2502_p7), %s2138_s6, 128  }
 0xdd3   : > { %3098 = vsyncadd (%p2502_p7), %s2138_s6, 4294967168  ;;  %s49_s3 = sadd.s32 1, %s3121_s3   ;;  %s3859_s7 = sld [smem:[#allocation35_spill]] }
 0xdd4   : > { %p46_p8 = scmp.ge.s32.totalorder %s49_s3, 4   ;;  %s3860_s6 = sld [smem:[#allocation38_spill]] }
 0xdd5   : > { %s3861_s30 = sld [smem:[#allocation36_spill]]  ;;  %s3863_s29 = smov %s3105_s2 }
 0xdd6   : > { %s3862_s9 = sld [smem:[#allocation37_spill]] }
 0xdd8   :  { %48 = sbr.rel (!%p46_p8) target bundleno = 38 (0x26), region = 225 }
 0xdd9   : > { %s3864_s2 = smov %s3859_s7 }
 0xddc   : > { %s3865_s7 = smov %s3862_s9 }
 0xddd   :  { %2144 = vsyncpa [#allocation6], 1 }
 0xdde   :  { %2146 = vsyncpa [#allocation6 + $0x1], 1 }
 0xddf   :  { %2147 = vsyncpa [#allocation9], 1 }
 0xde0   :  { %2149 = vsyncpa [#allocation9 + $0x1], 1 }
 0xde1   :  { %2150 = vsyncpa [#allocation12], 1 }
 0xde2   :  { %2151 = vsyncpa [#allocation15], 1 }
 0xde3   :  { %2152 = vsyncpa [#allocation18], 1 }
 0xde4   :  { %2153 = vsyncpa [#allocation21], 1 }
 0xde5   :  { %2154 = vsyncpa [#allocation24], 1 }
 0xde6   :  { %2155 = vsyncpa [#allocation7], 1 }
 0xde7   :  { %2157 = vsyncpa [#allocation7 + $0x1], 1 }

</bundles_post_ra>
